<compile_context>
chip_gen: v5e
topology: v5e:2x2
jax: 0.10.0
libtpu: 0.0.40
codegen_flags: <defaults>
</compile_context>

<pallas_src>
import jax
import jax.numpy as jnp
from jax import lax
from jax.experimental import pallas as pl
from jax.experimental.pallas import tpu as pltpu

S = 8        # sequence length (len(src))
N = 2        # batch size
E = 15       # d_model == feature_size
H = 15       # nhead -> head_dim = 1, attention scale = 1.0
FF = 2048    # dim_feedforward (PyTorch TransformerEncoderLayer default)
L = 3        # num_layers
EPS = 1e-5   # layer_norm_eps (PyTorch default)
NEG = -1e30  # finite "-inf" for the additive mask
SN = S * N   # fused row count
C = SN * E   # packed lane width (query, head) pairs: column c = i*E + h


def trm_kernel(x_ref, maskp_ref, selh_ref, seli_ref,
               attw_ref, vecs_ref, l1w_ref, l1b_ref, l2w_ref,
               decw_ref, decb_ref, o_ref):
    x = x_ref[...]            # (SN, E)   both batch elements, seq-first flattening
    maskp = maskp_ref[...]    # (SN, C)   packed additive mask: maskp[j, i*E+h] = mask[j, i]
    sel_h = selh_ref[...]     # (E,  C)   sel_h[h', i*E+h] = (h'==h)   (head selector)
    sel_i = seli_ref[...]     # (SN, C)   sel_i[i', i*E+h] = (i'==i)   (query selector)

    def layer_norm(h, w, b):
        mu = jnp.mean(h, axis=-1, keepdims=True)
        d = h - mu
        var = jnp.mean(d * d, axis=-1, keepdims=True)      # biased, like torch
        return d * lax.rsqrt(var + EPS) * w + b            # rsqrt -> EUP slot

    for l in range(L):        # static unroll over the 3 encoder layers
        aw = attw_ref[l]      # (4, E, E): Wq.T, Wk.T, Wv.T, Wo.T
        vv = vecs_ref[l]      # (9, E):   bq, bk, bv, bo, ln1w, ln1b, ln2w, ln2b, l2b
        wq, wk, wv, opw = aw[0], aw[1], aw[2], aw[3]
        bq, bk, bv, opb = vv[0:1], vv[1:2], vv[2:3], vv[3:4]
        ln1w, ln1b = vv[4:5], vv[5:6]
        ln2w, ln2b = vv[6:7], vv[7:8]
        l2b = vv[8:9]

        # ---- self attention (15 heads of dim 1, scale = 1), lane-packed ----
        q = jnp.dot(x, wq, preferred_element_type=jnp.float32) + bq   # (SN, E)
        k = jnp.dot(x, wk, preferred_element_type=jnp.float32) + bk
        v = jnp.dot(x, wv, preferred_element_type=jnp.float32) + bv
        # head-replicate onto packed lanes via selection matmul (exact 0/1 weights)
        qp = jnp.dot(q, sel_h, preferred_element_type=jnp.float32)    # (SN, C) q[i', h(c)]
        kp = jnp.dot(k, sel_h, preferred_element_type=jnp.float32)    # (SN, C) k[j,  h(c)]
        vp = jnp.dot(v, sel_h, preferred_element_type=jnp.float32)    # (SN, C) v[j,  h(c)]
        # pick the query row belonging to each packed column: q_row[0,c] = q[i(c), h(c)]
        q_row = jnp.sum(qp * sel_i, axis=0, keepdims=True)            # (1, C)
        scores = kp * q_row + maskp                                   # (SN_j, C)
        m = jnp.max(scores, axis=0, keepdims=True)
        p = jnp.exp(scores - m)
        den = jnp.sum(p, axis=0, keepdims=True)
        num = jnp.sum(p * vp, axis=0, keepdims=True)
        att_flat = num * pl.reciprocal(den, approx=True)              # (1, C) deferred norm
        # unpack (1, C) -> (SN, E):  att[i, h] = att_flat[0, i*E + h]
        att = lax.dot_general(sel_i * att_flat, sel_h,
                              dimension_numbers=(((1,), (1,)), ((), ())),
                              preferred_element_type=jnp.float32)     # (SN, E)
        att = jnp.dot(att, opw, preferred_element_type=jnp.float32) + opb
        x = layer_norm(x + att, ln1w, ln1b)

        # ---- feed-forward (ReLU); bf16 MXU operands, f32 accumulation ----
        h = lax.dot_general(x.astype(jnp.bfloat16), l1w_ref[l],       # (SN,E) x (E,FF)
                            dimension_numbers=(((1,), (0,)), ((), ())),
                            preferred_element_type=jnp.float32)
        h = h + l1b_ref[pl.ds(l, 1), :]
        h = jnp.maximum(h, 0.0)
        # linear2.weight kept torch-native (E, FF): contract over FF (trans-B matmul)
        # so the 2048 axis stays on lanes (no (2048, 15) lane-padded block).
        h = lax.dot_general(h.astype(jnp.bfloat16), l2w_ref[l],       # (SN,FF) x (E,FF)^T
                            dimension_numbers=(((1,), (1,)), ((), ())),
                            preferred_element_type=jnp.float32) + l2b
        x = layer_norm(x + h, ln2w, ln2b)

    # ---- final ReLU + decoder Linear(E, E) ----
    x = jnp.maximum(x, 0.0)
    o_ref[...] = jnp.dot(x, decw_ref[...],
                         preferred_element_type=jnp.float32) + decb_ref[...]


def init_params(key):
    """Deterministic synthetic parameters (weights pre-transposed for x @ W form).

    attw packs Wq.T/Wk.T/Wv.T/out_proj.weight.T; vecs packs all E-wide per-layer
    vectors; FF weights are bf16 MXU operands (accumulation stays f32)."""
    ks = jax.random.split(key, 6)
    u = lambda k, shape, s=0.1: jax.random.uniform(k, shape, jnp.float32, -s, s)
    bqkv_opb = u(ks[1], (L, 4, E))                         # bq, bk, bv, out_proj.bias
    vecs = jnp.concatenate([
        bqkv_opb,
        jnp.ones((L, 1, E), jnp.float32),                  # ln1.weight
        jnp.zeros((L, 1, E), jnp.float32),                 # ln1.bias
        jnp.ones((L, 1, E), jnp.float32),                  # ln2.weight
        jnp.zeros((L, 1, E), jnp.float32),                 # ln2.bias
        u(ks[2], (L, 1, E)),                               # linear2.bias
    ], axis=1)                                             # (L, 9, E)
    return dict(
        attw=u(ks[0], (L, 4, E, E)),                       # Wq.T, Wk.T, Wv.T, Wo.T
        vecs=vecs,
        l1w=u(ks[3], (L, E, FF)).astype(jnp.bfloat16),     # linear1.weight.T (FF on lanes)
        l1b=u(ks[4], (L, FF)),                             # linear1.bias (no size-1 sublane)
        l2w=u(ks[5], (L, E, FF)).astype(jnp.bfloat16),     # linear2.weight  (FF on lanes)
        decw=jax.random.uniform(jax.random.fold_in(key, 99), (E, E),
                                jnp.float32, -0.1, 0.1),   # init_weights: U(-0.1, 0.1)
        decb=jnp.zeros((1, E), jnp.float32),               # init_weights: zeroed
    )


def build_constants():
    """Packed mask + selection matrices (column c = i*E + h of the packed lane axis).

    maskp[j, c]  = 0 if batch(j)==batch(i(c)) and seq(j)<=seq(i(c)) else NEG
    sel_h[h', c] = 1 iff h' == h(c)   (head replicator / unpacker)
    sel_i[i', c] = 1 iff i' == i(c)   (query selector)"""
    s_idx = jnp.arange(SN) // N
    n_idx = jnp.arange(SN) % N
    allowed = (n_idx[:, None] == n_idx[None, :]) & (s_idx[:, None] <= s_idx[None, :])
    m2d = jnp.where(allowed, 0.0, NEG).astype(jnp.float32)            # (SN_j, SN_i)
    maskp = jnp.repeat(m2d, E, axis=1)                                # (SN, C)
    sel_h = jnp.tile(jnp.eye(E, dtype=jnp.float32), (1, SN))          # (E, C)
    sel_i = jnp.repeat(jnp.eye(SN, dtype=jnp.float32), E, axis=1)     # (SN, C)
    return maskp, sel_h, sel_i


@jax.jit
def trm_forward(src, params, consts):
    # src: (S, N, E) seq-first (PyTorch convention). Row-major reshape to (S*N, E)
    # is free; row r = s*N + n.
    maskp, sel_h, sel_i = consts
    x2d = src.reshape(SN, E)
    p = params

    def full(a):
        nd = a.ndim
        return pl.BlockSpec(a.shape, lambda i, _n=nd: (0,) * _n)

    out2d = pl.pallas_call(
        trm_kernel,
        out_shape=jax.ShapeDtypeStruct((SN, E), jnp.float32),
        grid=(1,),                                   # single step: fused batch, one DMA wave
        in_specs=[
            full(x2d), full(maskp), full(sel_h), full(sel_i),
            full(p["attw"]), full(p["vecs"]),
            full(p["l1w"]), full(p["l1b"]), full(p["l2w"]),
            full(p["decw"]), full(p["decb"]),
        ],
        out_specs=pl.BlockSpec((SN, E), lambda i: (0, 0)),
        compiler_params=pltpu.CompilerParams(dimension_semantics=("arbitrary",)),
        cost_estimate=pl.CostEstimate(flops=7_400_000, transcendentals=12_500,
                                      bytes_accessed=460_000),
    )(x2d, maskp, sel_h, sel_i,
      p["attw"], p["vecs"], p["l1w"], p["l1b"], p["l2w"],
      p["decw"], p["decb"])

    return out2d.reshape(S, N, E)   # free reshape back to (S, N, E)


if __name__ == "__main__":
    key = jax.random.PRNGKey(0)
    kx, kp = jax.random.split(key)
    src = jax.random.normal(kx, (S, N, E), jnp.float32)   # matches PyTorch (S, N, E) input
    params = init_params(kp)
    consts = build_constants()

    out = trm_forward(src, params, consts)
    out = jax.block_until_ready(out)

    assert out.shape == (S, N, E), out.shape
    assert bool(jnp.all(jnp.isfinite(out)))
    print("KERNEL_OK")
</pallas_src>

<mosaic_0001>
module attributes {stable_mosaic.version = 11 : i64} {
  func.func @trm_kernel(%arg0: i32, %arg1: memref<16x15xf32, #tpu.memory_space<vmem>>, %arg2: memref<16x240xf32, #tpu.memory_space<vmem>>, %arg3: memref<15x240xf32, #tpu.memory_space<vmem>>, %arg4: memref<16x240xf32, #tpu.memory_space<vmem>>, %arg5: memref<3x4x15x15xf32, #tpu.memory_space<vmem>>, %arg6: memref<3x9x15xf32, #tpu.memory_space<vmem>>, %arg7: memref<3x15x2048xbf16, #tpu.memory_space<vmem>>, %arg8: memref<3x2048xf32, #tpu.memory_space<vmem>>, %arg9: memref<3x15x2048xbf16, #tpu.memory_space<vmem>>, %arg10: memref<15x15xf32, #tpu.memory_space<vmem>>, %arg11: memref<1x15xf32, #tpu.memory_space<vmem>>, %arg12: memref<16x15xf32, #tpu.memory_space<vmem>>) attributes {dimension_semantics = [#tpu.dimension_semantics<arbitrary>], iteration_bounds = array<i64: 1>, scalar_prefetch = 0 : i64, scratch_operands = 0 : i64, tpu.core_type = #tpu.core_type<tc>, window_params = [{pipeline_mode = #tpu.pipeline_mode<synchronous>, transform_indices = @transform_0, window_bounds = array<i64: 16, 15>}, {pipeline_mode = #tpu.pipeline_mode<synchronous>, transform_indices = @transform_1, window_bounds = array<i64: 16, 240>}, {pipeline_mode = #tpu.pipeline_mode<synchronous>, transform_indices = @transform_2, window_bounds = array<i64: 15, 240>}, {pipeline_mode = #tpu.pipeline_mode<synchronous>, transform_indices = @transform_3, window_bounds = array<i64: 16, 240>}, {pipeline_mode = #tpu.pipeline_mode<synchronous>, transform_indices = @transform_4, window_bounds = array<i64: 3, 4, 15, 15>}, {pipeline_mode = #tpu.pipeline_mode<synchronous>, transform_indices = @transform_5, window_bounds = array<i64: 3, 9, 15>}, {pipeline_mode = #tpu.pipeline_mode<synchronous>, transform_indices = @transform_6, window_bounds = array<i64: 3, 15, 2048>}, {pipeline_mode = #tpu.pipeline_mode<synchronous>, transform_indices = @transform_7, window_bounds = array<i64: 3, 2048>}, {pipeline_mode = #tpu.pipeline_mode<synchronous>, transform_indices = @transform_8, window_bounds = array<i64: 3, 15, 2048>}, {pipeline_mode = #tpu.pipeline_mode<synchronous>, transform_indices = @transform_9, window_bounds = array<i64: 15, 15>}, {pipeline_mode = #tpu.pipeline_mode<synchronous>, transform_indices = @transform_10, window_bounds = array<i64: 1, 15>}, {pipeline_mode = #tpu.pipeline_mode<synchronous>, transform_indices = @transform_11, window_bounds = array<i64: 16, 15>}]} {
    %c0 = arith.constant 0 : index
    %c0_0 = arith.constant 0 : index
    %0 = vector.load %arg1[%c0, %c0_0] : memref<16x15xf32, #tpu.memory_space<vmem>>, vector<16x15xf32>
    %c0_1 = arith.constant 0 : index
    %c0_2 = arith.constant 0 : index
    %1 = vector.load %arg2[%c0_1, %c0_2] : memref<16x240xf32, #tpu.memory_space<vmem>>, vector<16x240xf32>
    %c0_3 = arith.constant 0 : index
    %c0_4 = arith.constant 0 : index
    %2 = vector.load %arg3[%c0_3, %c0_4] : memref<15x240xf32, #tpu.memory_space<vmem>>, vector<15x240xf32>
    %c0_5 = arith.constant 0 : index
    %c0_6 = arith.constant 0 : index
    %3 = vector.load %arg4[%c0_5, %c0_6] : memref<16x240xf32, #tpu.memory_space<vmem>>, vector<16x240xf32>
    %c0_7 = arith.constant 0 : index
    %c0_8 = arith.constant 0 : index
    %c0_9 = arith.constant 0 : index
    %c0_10 = arith.constant 0 : index
    %4 = vector.load %arg5[%c0_7, %c0_8, %c0_9, %c0_10] : memref<3x4x15x15xf32, #tpu.memory_space<vmem>>, vector<1x4x15x15xf32>
    %5 = vector.shape_cast %4 : vector<1x4x15x15xf32> to vector<4x15x15xf32>
    %c0_11 = arith.constant 0 : index
    %c0_12 = arith.constant 0 : index
    %c0_13 = arith.constant 0 : index
    %6 = vector.load %arg6[%c0_11, %c0_12, %c0_13] : memref<3x9x15xf32, #tpu.memory_space<vmem>>, vector<1x9x15xf32>
    %7 = vector.shape_cast %6 : vector<1x9x15xf32> to vector<9x15xf32>
    %8 = vector.extract_strided_slice %5 {offsets = [0, 0, 0], sizes = [1, 15, 15], strides = [1, 1, 1]} : vector<4x15x15xf32> to vector<1x15x15xf32>
    %9 = vector.shape_cast %8 : vector<1x15x15xf32> to vector<15x15xf32>
    %10 = vector.extract_strided_slice %5 {offsets = [1, 0, 0], sizes = [1, 15, 15], strides = [1, 1, 1]} : vector<4x15x15xf32> to vector<1x15x15xf32>
    %11 = vector.shape_cast %10 : vector<1x15x15xf32> to vector<15x15xf32>
    %12 = vector.extract_strided_slice %5 {offsets = [2, 0, 0], sizes = [1, 15, 15], strides = [1, 1, 1]} : vector<4x15x15xf32> to vector<1x15x15xf32>
    %13 = vector.shape_cast %12 : vector<1x15x15xf32> to vector<15x15xf32>
    %14 = vector.extract_strided_slice %5 {offsets = [3, 0, 0], sizes = [1, 15, 15], strides = [1, 1, 1]} : vector<4x15x15xf32> to vector<1x15x15xf32>
    %15 = vector.shape_cast %14 : vector<1x15x15xf32> to vector<15x15xf32>
    %16 = vector.extract_strided_slice %7 {offsets = [0, 0], sizes = [1, 15], strides = [1, 1]} : vector<9x15xf32> to vector<1x15xf32>
    %17 = vector.extract_strided_slice %7 {offsets = [1, 0], sizes = [1, 15], strides = [1, 1]} : vector<9x15xf32> to vector<1x15xf32>
    %18 = vector.extract_strided_slice %7 {offsets = [2, 0], sizes = [1, 15], strides = [1, 1]} : vector<9x15xf32> to vector<1x15xf32>
    %19 = vector.extract_strided_slice %7 {offsets = [3, 0], sizes = [1, 15], strides = [1, 1]} : vector<9x15xf32> to vector<1x15xf32>
    %20 = vector.extract_strided_slice %7 {offsets = [4, 0], sizes = [1, 15], strides = [1, 1]} : vector<9x15xf32> to vector<1x15xf32>
    %21 = vector.extract_strided_slice %7 {offsets = [5, 0], sizes = [1, 15], strides = [1, 1]} : vector<9x15xf32> to vector<1x15xf32>
    %22 = vector.extract_strided_slice %7 {offsets = [6, 0], sizes = [1, 15], strides = [1, 1]} : vector<9x15xf32> to vector<1x15xf32>
    %23 = vector.extract_strided_slice %7 {offsets = [7, 0], sizes = [1, 15], strides = [1, 1]} : vector<9x15xf32> to vector<1x15xf32>
    %24 = vector.extract_strided_slice %7 {offsets = [8, 0], sizes = [1, 15], strides = [1, 1]} : vector<9x15xf32> to vector<1x15xf32>
    %cst = arith.constant dense<0.000000e+00> : vector<16x15xf32>
    %25 = tpu.matmul %0, %9, %cst {dimension_numbers = #tpu.dot_dimension_numbers<[1], [0], [0], [1], [0, 0, 1, 1], [], []>} : vector<16x15xf32>, vector<15x15xf32>, vector<16x15xf32> -> vector<16x15xf32>
    %26 = vector.broadcast %16 : vector<1x15xf32> to vector<16x15xf32>
    %27 = arith.addf %25, %26 : vector<16x15xf32>
    %cst_14 = arith.constant dense<0.000000e+00> : vector<16x15xf32>
    %28 = tpu.matmul %0, %11, %cst_14 {dimension_numbers = #tpu.dot_dimension_numbers<[1], [0], [0], [1], [0, 0, 1, 1], [], []>} : vector<16x15xf32>, vector<15x15xf32>, vector<16x15xf32> -> vector<16x15xf32>
    %29 = vector.broadcast %17 : vector<1x15xf32> to vector<16x15xf32>
    %30 = arith.addf %28, %29 : vector<16x15xf32>
    %cst_15 = arith.constant dense<0.000000e+00> : vector<16x15xf32>
    %31 = tpu.matmul %0, %13, %cst_15 {dimension_numbers = #tpu.dot_dimension_numbers<[1], [0], [0], [1], [0, 0, 1, 1], [], []>} : vector<16x15xf32>, vector<15x15xf32>, vector<16x15xf32> -> vector<16x15xf32>
    %32 = vector.broadcast %18 : vector<1x15xf32> to vector<16x15xf32>
    %33 = arith.addf %31, %32 : vector<16x15xf32>
    %cst_16 = arith.constant dense<0.000000e+00> : vector<16x240xf32>
    %34 = tpu.matmul %27, %2, %cst_16 {dimension_numbers = #tpu.dot_dimension_numbers<[1], [0], [0], [1], [0, 0, 1, 1], [], []>} : vector<16x15xf32>, vector<15x240xf32>, vector<16x240xf32> -> vector<16x240xf32>
    %cst_17 = arith.constant dense<0.000000e+00> : vector<16x240xf32>
    %35 = tpu.matmul %30, %2, %cst_17 {dimension_numbers = #tpu.dot_dimension_numbers<[1], [0], [0], [1], [0, 0, 1, 1], [], []>} : vector<16x15xf32>, vector<15x240xf32>, vector<16x240xf32> -> vector<16x240xf32>
    %cst_18 = arith.constant dense<0.000000e+00> : vector<16x240xf32>
    %36 = tpu.matmul %33, %2, %cst_18 {dimension_numbers = #tpu.dot_dimension_numbers<[1], [0], [0], [1], [0, 0, 1, 1], [], []>} : vector<16x15xf32>, vector<15x240xf32>, vector<16x240xf32> -> vector<16x240xf32>
    %37 = arith.mulf %34, %3 : vector<16x240xf32>
    %cst_19 = arith.constant dense<0.000000e+00> : vector<240xf32>
    %38 = vector.multi_reduction <add>, %37, %cst_19 [0] : vector<16x240xf32> to vector<240xf32>
    %39 = vector.shape_cast %38 : vector<240xf32> to vector<1x240xf32>
    %40 = vector.broadcast %39 : vector<1x240xf32> to vector<16x240xf32>
    %41 = arith.mulf %35, %40 : vector<16x240xf32>
    %42 = arith.addf %41, %1 : vector<16x240xf32>
    %cst_20 = arith.constant dense<0xFF800000> : vector<240xf32>
    %43 = vector.multi_reduction <maximumf>, %42, %cst_20 [0] : vector<16x240xf32> to vector<240xf32>
    %44 = vector.shape_cast %43 : vector<240xf32> to vector<1x240xf32>
    %45 = vector.broadcast %44 : vector<1x240xf32> to vector<16x240xf32>
    %46 = arith.subf %42, %45 : vector<16x240xf32>
    %47 = math.exp %46 : vector<16x240xf32>
    %cst_21 = arith.constant dense<0.000000e+00> : vector<240xf32>
    %48 = vector.multi_reduction <add>, %47, %cst_21 [0] : vector<16x240xf32> to vector<240xf32>
    %49 = vector.shape_cast %48 : vector<240xf32> to vector<1x240xf32>
    %50 = arith.mulf %47, %36 : vector<16x240xf32>
    %cst_22 = arith.constant dense<0.000000e+00> : vector<240xf32>
    %51 = vector.multi_reduction <add>, %50, %cst_22 [0] : vector<16x240xf32> to vector<240xf32>
    %52 = vector.shape_cast %51 : vector<240xf32> to vector<1x240xf32>
    %53 = tpu.reciprocal %49 {approx = true} : vector<1x240xf32> -> vector<1x240xf32>
    %54 = arith.mulf %52, %53 : vector<1x240xf32>
    %55 = vector.broadcast %54 : vector<1x240xf32> to vector<16x240xf32>
    %56 = arith.mulf %3, %55 : vector<16x240xf32>
    %cst_23 = arith.constant dense<0.000000e+00> : vector<16x15xf32>
    %57 = tpu.matmul %56, %2, %cst_23 {dimension_numbers = #tpu.dot_dimension_numbers<[1], [1], [0], [0], [0, 0, 1, 0], [], []>} : vector<16x240xf32>, vector<15x240xf32>, vector<16x15xf32> -> vector<16x15xf32>
    %cst_24 = arith.constant dense<0.000000e+00> : vector<16x15xf32>
    %58 = tpu.matmul %57, %15, %cst_24 {dimension_numbers = #tpu.dot_dimension_numbers<[1], [0], [0], [1], [0, 0, 1, 1], [], []>} : vector<16x15xf32>, vector<15x15xf32>, vector<16x15xf32> -> vector<16x15xf32>
    %59 = vector.broadcast %19 : vector<1x15xf32> to vector<16x15xf32>
    %60 = arith.addf %58, %59 : vector<16x15xf32>
    %61 = arith.addf %0, %60 : vector<16x15xf32>
    %cst_25 = arith.constant dense<0.000000e+00> : vector<16xf32>
    %62 = vector.multi_reduction <add>, %61, %cst_25 [1] : vector<16x15xf32> to vector<16xf32>
    %63 = vector.shape_cast %62 : vector<16xf32> to vector<16x1xf32>
    %cst_26 = arith.constant 1.500000e+01 : f32
    %64 = vector.broadcast %cst_26 : f32 to vector<16x1xf32>
    %65 = arith.divf %63, %64 : vector<16x1xf32>
    %66 = vector.broadcast %65 : vector<16x1xf32> to vector<16x15xf32>
    %67 = arith.subf %61, %66 : vector<16x15xf32>
    %68 = arith.mulf %67, %67 : vector<16x15xf32>
    %cst_27 = arith.constant dense<0.000000e+00> : vector<16xf32>
    %69 = vector.multi_reduction <add>, %68, %cst_27 [1] : vector<16x15xf32> to vector<16xf32>
    %70 = vector.shape_cast %69 : vector<16xf32> to vector<16x1xf32>
    %cst_28 = arith.constant 1.500000e+01 : f32
    %71 = vector.broadcast %cst_28 : f32 to vector<16x1xf32>
    %72 = arith.divf %70, %71 : vector<16x1xf32>
    %cst_29 = arith.constant 9.99999974E-6 : f32
    %73 = vector.broadcast %cst_29 : f32 to vector<16x1xf32>
    %74 = arith.addf %72, %73 : vector<16x1xf32>
    %75 = math.rsqrt %74 : vector<16x1xf32>
    %76 = vector.broadcast %75 : vector<16x1xf32> to vector<16x15xf32>
    %77 = arith.mulf %67, %76 : vector<16x15xf32>
    %78 = vector.broadcast %20 : vector<1x15xf32> to vector<16x15xf32>
    %79 = arith.mulf %77, %78 : vector<16x15xf32>
    %80 = vector.broadcast %21 : vector<1x15xf32> to vector<16x15xf32>
    %81 = arith.addf %79, %80 : vector<16x15xf32>
    %82 = arith.truncf %81 : vector<16x15xf32> to vector<16x15xbf16>
    %c0_30 = arith.constant 0 : index
    %c0_31 = arith.constant 0 : index
    %c0_32 = arith.constant 0 : index
    %83 = vector.load %arg7[%c0_30, %c0_31, %c0_32] : memref<3x15x2048xbf16, #tpu.memory_space<vmem>>, vector<1x15x2048xbf16>
    %84 = vector.shape_cast %83 : vector<1x15x2048xbf16> to vector<15x2048xbf16>
    %cst_33 = arith.constant dense<0.000000e+00> : vector<16x2048xf32>
    %85 = tpu.matmul %82, %84, %cst_33 {dimension_numbers = #tpu.dot_dimension_numbers<[1], [0], [0], [1], [0, 0, 1, 1], [], []>} : vector<16x15xbf16>, vector<15x2048xbf16>, vector<16x2048xf32> -> vector<16x2048xf32>
    %c0_34 = arith.constant 0 : index
    %c0_35 = arith.constant 0 : index
    %86 = vector.load %arg8[%c0_34, %c0_35] : memref<3x2048xf32, #tpu.memory_space<vmem>>, vector<1x2048xf32>
    %87 = vector.broadcast %86 : vector<1x2048xf32> to vector<16x2048xf32>
    %88 = arith.addf %85, %87 : vector<16x2048xf32>
    %cst_36 = arith.constant 0.000000e+00 : f32
    %89 = vector.broadcast %cst_36 : f32 to vector<16x2048xf32>
    %90 = arith.maximumf %88, %89 : vector<16x2048xf32>
    %91 = arith.truncf %90 : vector<16x2048xf32> to vector<16x2048xbf16>
    %c0_37 = arith.constant 0 : index
    %c0_38 = arith.constant 0 : index
    %c0_39 = arith.constant 0 : index
    %92 = vector.load %arg9[%c0_37, %c0_38, %c0_39] : memref<3x15x2048xbf16, #tpu.memory_space<vmem>>, vector<1x15x2048xbf16>
    %93 = vector.shape_cast %92 : vector<1x15x2048xbf16> to vector<15x2048xbf16>
    %cst_40 = arith.constant dense<0.000000e+00> : vector<16x15xf32>
    %94 = tpu.matmul %91, %93, %cst_40 {dimension_numbers = #tpu.dot_dimension_numbers<[1], [1], [0], [0], [0, 0, 1, 0], [], []>} : vector<16x2048xbf16>, vector<15x2048xbf16>, vector<16x15xf32> -> vector<16x15xf32>
    %95 = vector.broadcast %24 : vector<1x15xf32> to vector<16x15xf32>
    %96 = arith.addf %94, %95 : vector<16x15xf32>
    %97 = arith.addf %81, %96 : vector<16x15xf32>
    %cst_41 = arith.constant dense<0.000000e+00> : vector<16xf32>
    %98 = vector.multi_reduction <add>, %97, %cst_41 [1] : vector<16x15xf32> to vector<16xf32>
    %99 = vector.shape_cast %98 : vector<16xf32> to vector<16x1xf32>
    %cst_42 = arith.constant 1.500000e+01 : f32
    %100 = vector.broadcast %cst_42 : f32 to vector<16x1xf32>
    %101 = arith.divf %99, %100 : vector<16x1xf32>
    %102 = vector.broadcast %101 : vector<16x1xf32> to vector<16x15xf32>
    %103 = arith.subf %97, %102 : vector<16x15xf32>
    %104 = arith.mulf %103, %103 : vector<16x15xf32>
    %cst_43 = arith.constant dense<0.000000e+00> : vector<16xf32>
    %105 = vector.multi_reduction <add>, %104, %cst_43 [1] : vector<16x15xf32> to vector<16xf32>
    %106 = vector.shape_cast %105 : vector<16xf32> to vector<16x1xf32>
    %cst_44 = arith.constant 1.500000e+01 : f32
    %107 = vector.broadcast %cst_44 : f32 to vector<16x1xf32>
    %108 = arith.divf %106, %107 : vector<16x1xf32>
    %cst_45 = arith.constant 9.99999974E-6 : f32
    %109 = vector.broadcast %cst_45 : f32 to vector<16x1xf32>
    %110 = arith.addf %108, %109 : vector<16x1xf32>
    %111 = math.rsqrt %110 : vector<16x1xf32>
    %112 = vector.broadcast %111 : vector<16x1xf32> to vector<16x15xf32>
    %113 = arith.mulf %103, %112 : vector<16x15xf32>
    %114 = vector.broadcast %22 : vector<1x15xf32> to vector<16x15xf32>
    %115 = arith.mulf %113, %114 : vector<16x15xf32>
    %116 = vector.broadcast %23 : vector<1x15xf32> to vector<16x15xf32>
    %117 = arith.addf %115, %116 : vector<16x15xf32>
    %c1 = arith.constant 1 : index
    %c0_46 = arith.constant 0 : index
    %c0_47 = arith.constant 0 : index
    %c0_48 = arith.constant 0 : index
    %118 = vector.load %arg5[%c1, %c0_46, %c0_47, %c0_48] : memref<3x4x15x15xf32, #tpu.memory_space<vmem>>, vector<1x4x15x15xf32>
    %119 = vector.shape_cast %118 : vector<1x4x15x15xf32> to vector<4x15x15xf32>
    %c1_49 = arith.constant 1 : index
    %c0_50 = arith.constant 0 : index
    %c0_51 = arith.constant 0 : index
    %120 = vector.load %arg6[%c1_49, %c0_50, %c0_51] : memref<3x9x15xf32, #tpu.memory_space<vmem>>, vector<1x9x15xf32>
    %121 = vector.shape_cast %120 : vector<1x9x15xf32> to vector<9x15xf32>
    %122 = vector.extract_strided_slice %119 {offsets = [0, 0, 0], sizes = [1, 15, 15], strides = [1, 1, 1]} : vector<4x15x15xf32> to vector<1x15x15xf32>
    %123 = vector.shape_cast %122 : vector<1x15x15xf32> to vector<15x15xf32>
    %124 = vector.extract_strided_slice %119 {offsets = [1, 0, 0], sizes = [1, 15, 15], strides = [1, 1, 1]} : vector<4x15x15xf32> to vector<1x15x15xf32>
    %125 = vector.shape_cast %124 : vector<1x15x15xf32> to vector<15x15xf32>
    %126 = vector.extract_strided_slice %119 {offsets = [2, 0, 0], sizes = [1, 15, 15], strides = [1, 1, 1]} : vector<4x15x15xf32> to vector<1x15x15xf32>
    %127 = vector.shape_cast %126 : vector<1x15x15xf32> to vector<15x15xf32>
    %128 = vector.extract_strided_slice %119 {offsets = [3, 0, 0], sizes = [1, 15, 15], strides = [1, 1, 1]} : vector<4x15x15xf32> to vector<1x15x15xf32>
    %129 = vector.shape_cast %128 : vector<1x15x15xf32> to vector<15x15xf32>
    %130 = vector.extract_strided_slice %121 {offsets = [0, 0], sizes = [1, 15], strides = [1, 1]} : vector<9x15xf32> to vector<1x15xf32>
    %131 = vector.extract_strided_slice %121 {offsets = [1, 0], sizes = [1, 15], strides = [1, 1]} : vector<9x15xf32> to vector<1x15xf32>
    %132 = vector.extract_strided_slice %121 {offsets = [2, 0], sizes = [1, 15], strides = [1, 1]} : vector<9x15xf32> to vector<1x15xf32>
    %133 = vector.extract_strided_slice %121 {offsets = [3, 0], sizes = [1, 15], strides = [1, 1]} : vector<9x15xf32> to vector<1x15xf32>
    %134 = vector.extract_strided_slice %121 {offsets = [4, 0], sizes = [1, 15], strides = [1, 1]} : vector<9x15xf32> to vector<1x15xf32>
    %135 = vector.extract_strided_slice %121 {offsets = [5, 0], sizes = [1, 15], strides = [1, 1]} : vector<9x15xf32> to vector<1x15xf32>
    %136 = vector.extract_strided_slice %121 {offsets = [6, 0], sizes = [1, 15], strides = [1, 1]} : vector<9x15xf32> to vector<1x15xf32>
    %137 = vector.extract_strided_slice %121 {offsets = [7, 0], sizes = [1, 15], strides = [1, 1]} : vector<9x15xf32> to vector<1x15xf32>
    %138 = vector.extract_strided_slice %121 {offsets = [8, 0], sizes = [1, 15], strides = [1, 1]} : vector<9x15xf32> to vector<1x15xf32>
    %cst_52 = arith.constant dense<0.000000e+00> : vector<16x15xf32>
    %139 = tpu.matmul %117, %123, %cst_52 {dimension_numbers = #tpu.dot_dimension_numbers<[1], [0], [0], [1], [0, 0, 1, 1], [], []>} : vector<16x15xf32>, vector<15x15xf32>, vector<16x15xf32> -> vector<16x15xf32>
    %140 = vector.broadcast %130 : vector<1x15xf32> to vector<16x15xf32>
    %141 = arith.addf %139, %140 : vector<16x15xf32>
    %cst_53 = arith.constant dense<0.000000e+00> : vector<16x15xf32>
    %142 = tpu.matmul %117, %125, %cst_53 {dimension_numbers = #tpu.dot_dimension_numbers<[1], [0], [0], [1], [0, 0, 1, 1], [], []>} : vector<16x15xf32>, vector<15x15xf32>, vector<16x15xf32> -> vector<16x15xf32>
    %143 = vector.broadcast %131 : vector<1x15xf32> to vector<16x15xf32>
    %144 = arith.addf %142, %143 : vector<16x15xf32>
    %cst_54 = arith.constant dense<0.000000e+00> : vector<16x15xf32>
    %145 = tpu.matmul %117, %127, %cst_54 {dimension_numbers = #tpu.dot_dimension_numbers<[1], [0], [0], [1], [0, 0, 1, 1], [], []>} : vector<16x15xf32>, vector<15x15xf32>, vector<16x15xf32> -> vector<16x15xf32>
    %146 = vector.broadcast %132 : vector<1x15xf32> to vector<16x15xf32>
    %147 = arith.addf %145, %146 : vector<16x15xf32>
    %cst_55 = arith.constant dense<0.000000e+00> : vector<16x240xf32>
    %148 = tpu.matmul %141, %2, %cst_55 {dimension_numbers = #tpu.dot_dimension_numbers<[1], [0], [0], [1], [0, 0, 1, 1], [], []>} : vector<16x15xf32>, vector<15x240xf32>, vector<16x240xf32> -> vector<16x240xf32>
    %cst_56 = arith.constant dense<0.000000e+00> : vector<16x240xf32>
    %149 = tpu.matmul %144, %2, %cst_56 {dimension_numbers = #tpu.dot_dimension_numbers<[1], [0], [0], [1], [0, 0, 1, 1], [], []>} : vector<16x15xf32>, vector<15x240xf32>, vector<16x240xf32> -> vector<16x240xf32>
    %cst_57 = arith.constant dense<0.000000e+00> : vector<16x240xf32>
    %150 = tpu.matmul %147, %2, %cst_57 {dimension_numbers = #tpu.dot_dimension_numbers<[1], [0], [0], [1], [0, 0, 1, 1], [], []>} : vector<16x15xf32>, vector<15x240xf32>, vector<16x240xf32> -> vector<16x240xf32>
    %151 = arith.mulf %148, %3 : vector<16x240xf32>
    %cst_58 = arith.constant dense<0.000000e+00> : vector<240xf32>
    %152 = vector.multi_reduction <add>, %151, %cst_58 [0] : vector<16x240xf32> to vector<240xf32>
    %153 = vector.shape_cast %152 : vector<240xf32> to vector<1x240xf32>
    %154 = vector.broadcast %153 : vector<1x240xf32> to vector<16x240xf32>
    %155 = arith.mulf %149, %154 : vector<16x240xf32>
    %156 = arith.addf %155, %1 : vector<16x240xf32>
    %cst_59 = arith.constant dense<0xFF800000> : vector<240xf32>
    %157 = vector.multi_reduction <maximumf>, %156, %cst_59 [0] : vector<16x240xf32> to vector<240xf32>
    %158 = vector.shape_cast %157 : vector<240xf32> to vector<1x240xf32>
    %159 = vector.broadcast %158 : vector<1x240xf32> to vector<16x240xf32>
    %160 = arith.subf %156, %159 : vector<16x240xf32>
    %161 = math.exp %160 : vector<16x240xf32>
    %cst_60 = arith.constant dense<0.000000e+00> : vector<240xf32>
    %162 = vector.multi_reduction <add>, %161, %cst_60 [0] : vector<16x240xf32> to vector<240xf32>
    %163 = vector.shape_cast %162 : vector<240xf32> to vector<1x240xf32>
    %164 = arith.mulf %161, %150 : vector<16x240xf32>
    %cst_61 = arith.constant dense<0.000000e+00> : vector<240xf32>
    %165 = vector.multi_reduction <add>, %164, %cst_61 [0] : vector<16x240xf32> to vector<240xf32>
    %166 = vector.shape_cast %165 : vector<240xf32> to vector<1x240xf32>
    %167 = tpu.reciprocal %163 {approx = true} : vector<1x240xf32> -> vector<1x240xf32>
    %168 = arith.mulf %166, %167 : vector<1x240xf32>
    %169 = vector.broadcast %168 : vector<1x240xf32> to vector<16x240xf32>
    %170 = arith.mulf %3, %169 : vector<16x240xf32>
    %cst_62 = arith.constant dense<0.000000e+00> : vector<16x15xf32>
    %171 = tpu.matmul %170, %2, %cst_62 {dimension_numbers = #tpu.dot_dimension_numbers<[1], [1], [0], [0], [0, 0, 1, 0], [], []>} : vector<16x240xf32>, vector<15x240xf32>, vector<16x15xf32> -> vector<16x15xf32>
    %cst_63 = arith.constant dense<0.000000e+00> : vector<16x15xf32>
    %172 = tpu.matmul %171, %129, %cst_63 {dimension_numbers = #tpu.dot_dimension_numbers<[1], [0], [0], [1], [0, 0, 1, 1], [], []>} : vector<16x15xf32>, vector<15x15xf32>, vector<16x15xf32> -> vector<16x15xf32>
    %173 = vector.broadcast %133 : vector<1x15xf32> to vector<16x15xf32>
    %174 = arith.addf %172, %173 : vector<16x15xf32>
    %175 = arith.addf %117, %174 : vector<16x15xf32>
    %cst_64 = arith.constant dense<0.000000e+00> : vector<16xf32>
    %176 = vector.multi_reduction <add>, %175, %cst_64 [1] : vector<16x15xf32> to vector<16xf32>
    %177 = vector.shape_cast %176 : vector<16xf32> to vector<16x1xf32>
    %cst_65 = arith.constant 1.500000e+01 : f32
    %178 = vector.broadcast %cst_65 : f32 to vector<16x1xf32>
    %179 = arith.divf %177, %178 : vector<16x1xf32>
    %180 = vector.broadcast %179 : vector<16x1xf32> to vector<16x15xf32>
    %181 = arith.subf %175, %180 : vector<16x15xf32>
    %182 = arith.mulf %181, %181 : vector<16x15xf32>
    %cst_66 = arith.constant dense<0.000000e+00> : vector<16xf32>
    %183 = vector.multi_reduction <add>, %182, %cst_66 [1] : vector<16x15xf32> to vector<16xf32>
    %184 = vector.shape_cast %183 : vector<16xf32> to vector<16x1xf32>
    %cst_67 = arith.constant 1.500000e+01 : f32
    %185 = vector.broadcast %cst_67 : f32 to vector<16x1xf32>
    %186 = arith.divf %184, %185 : vector<16x1xf32>
    %cst_68 = arith.constant 9.99999974E-6 : f32
    %187 = vector.broadcast %cst_68 : f32 to vector<16x1xf32>
    %188 = arith.addf %186, %187 : vector<16x1xf32>
    %189 = math.rsqrt %188 : vector<16x1xf32>
    %190 = vector.broadcast %189 : vector<16x1xf32> to vector<16x15xf32>
    %191 = arith.mulf %181, %190 : vector<16x15xf32>
    %192 = vector.broadcast %134 : vector<1x15xf32> to vector<16x15xf32>
    %193 = arith.mulf %191, %192 : vector<16x15xf32>
    %194 = vector.broadcast %135 : vector<1x15xf32> to vector<16x15xf32>
    %195 = arith.addf %193, %194 : vector<16x15xf32>
    %196 = arith.truncf %195 : vector<16x15xf32> to vector<16x15xbf16>
    %c1_69 = arith.constant 1 : index
    %c0_70 = arith.constant 0 : index
    %c0_71 = arith.constant 0 : index
    %197 = vector.load %arg7[%c1_69, %c0_70, %c0_71] : memref<3x15x2048xbf16, #tpu.memory_space<vmem>>, vector<1x15x2048xbf16>
    %198 = vector.shape_cast %197 : vector<1x15x2048xbf16> to vector<15x2048xbf16>
    %cst_72 = arith.constant dense<0.000000e+00> : vector<16x2048xf32>
    %199 = tpu.matmul %196, %198, %cst_72 {dimension_numbers = #tpu.dot_dimension_numbers<[1], [0], [0], [1], [0, 0, 1, 1], [], []>} : vector<16x15xbf16>, vector<15x2048xbf16>, vector<16x2048xf32> -> vector<16x2048xf32>
    %c1_73 = arith.constant 1 : index
    %c0_74 = arith.constant 0 : index
    %200 = vector.load %arg8[%c1_73, %c0_74] : memref<3x2048xf32, #tpu.memory_space<vmem>>, vector<1x2048xf32>
    %201 = vector.broadcast %200 : vector<1x2048xf32> to vector<16x2048xf32>
    %202 = arith.addf %199, %201 : vector<16x2048xf32>
    %cst_75 = arith.constant 0.000000e+00 : f32
    %203 = vector.broadcast %cst_75 : f32 to vector<16x2048xf32>
    %204 = arith.maximumf %202, %203 : vector<16x2048xf32>
    %205 = arith.truncf %204 : vector<16x2048xf32> to vector<16x2048xbf16>
    %c1_76 = arith.constant 1 : index
    %c0_77 = arith.constant 0 : index
    %c0_78 = arith.constant 0 : index
    %206 = vector.load %arg9[%c1_76, %c0_77, %c0_78] : memref<3x15x2048xbf16, #tpu.memory_space<vmem>>, vector<1x15x2048xbf16>
    %207 = vector.shape_cast %206 : vector<1x15x2048xbf16> to vector<15x2048xbf16>
    %cst_79 = arith.constant dense<0.000000e+00> : vector<16x15xf32>
    %208 = tpu.matmul %205, %207, %cst_79 {dimension_numbers = #tpu.dot_dimension_numbers<[1], [1], [0], [0], [0, 0, 1, 0], [], []>} : vector<16x2048xbf16>, vector<15x2048xbf16>, vector<16x15xf32> -> vector<16x15xf32>
    %209 = vector.broadcast %138 : vector<1x15xf32> to vector<16x15xf32>
    %210 = arith.addf %208, %209 : vector<16x15xf32>
    %211 = arith.addf %195, %210 : vector<16x15xf32>
    %cst_80 = arith.constant dense<0.000000e+00> : vector<16xf32>
    %212 = vector.multi_reduction <add>, %211, %cst_80 [1] : vector<16x15xf32> to vector<16xf32>
    %213 = vector.shape_cast %212 : vector<16xf32> to vector<16x1xf32>
    %cst_81 = arith.constant 1.500000e+01 : f32
    %214 = vector.broadcast %cst_81 : f32 to vector<16x1xf32>
    %215 = arith.divf %213, %214 : vector<16x1xf32>
    %216 = vector.broadcast %215 : vector<16x1xf32> to vector<16x15xf32>
    %217 = arith.subf %211, %216 : vector<16x15xf32>
    %218 = arith.mulf %217, %217 : vector<16x15xf32>
    %cst_82 = arith.constant dense<0.000000e+00> : vector<16xf32>
    %219 = vector.multi_reduction <add>, %218, %cst_82 [1] : vector<16x15xf32> to vector<16xf32>
    %220 = vector.shape_cast %219 : vector<16xf32> to vector<16x1xf32>
    %cst_83 = arith.constant 1.500000e+01 : f32
    %221 = vector.broadcast %cst_83 : f32 to vector<16x1xf32>
    %222 = arith.divf %220, %221 : vector<16x1xf32>
    %cst_84 = arith.constant 9.99999974E-6 : f32
    %223 = vector.broadcast %cst_84 : f32 to vector<16x1xf32>
    %224 = arith.addf %222, %223 : vector<16x1xf32>
    %225 = math.rsqrt %224 : vector<16x1xf32>
    %226 = vector.broadcast %225 : vector<16x1xf32> to vector<16x15xf32>
    %227 = arith.mulf %217, %226 : vector<16x15xf32>
    %228 = vector.broadcast %136 : vector<1x15xf32> to vector<16x15xf32>
    %229 = arith.mulf %227, %228 : vector<16x15xf32>
    %230 = vector.broadcast %137 : vector<1x15xf32> to vector<16x15xf32>
    %231 = arith.addf %229, %230 : vector<16x15xf32>
    %c2 = arith.constant 2 : index
    %c0_85 = arith.constant 0 : index
    %c0_86 = arith.constant 0 : index
    %c0_87 = arith.constant 0 : index
    %232 = vector.load %arg5[%c2, %c0_85, %c0_86, %c0_87] : memref<3x4x15x15xf32, #tpu.memory_space<vmem>>, vector<1x4x15x15xf32>
    %233 = vector.shape_cast %232 : vector<1x4x15x15xf32> to vector<4x15x15xf32>
    %c2_88 = arith.constant 2 : index
    %c0_89 = arith.constant 0 : index
    %c0_90 = arith.constant 0 : index
    %234 = vector.load %arg6[%c2_88, %c0_89, %c0_90] : memref<3x9x15xf32, #tpu.memory_space<vmem>>, vector<1x9x15xf32>
    %235 = vector.shape_cast %234 : vector<1x9x15xf32> to vector<9x15xf32>
    %236 = vector.extract_strided_slice %233 {offsets = [0, 0, 0], sizes = [1, 15, 15], strides = [1, 1, 1]} : vector<4x15x15xf32> to vector<1x15x15xf32>
    %237 = vector.shape_cast %236 : vector<1x15x15xf32> to vector<15x15xf32>
    %238 = vector.extract_strided_slice %233 {offsets = [1, 0, 0], sizes = [1, 15, 15], strides = [1, 1, 1]} : vector<4x15x15xf32> to vector<1x15x15xf32>
    %239 = vector.shape_cast %238 : vector<1x15x15xf32> to vector<15x15xf32>
    %240 = vector.extract_strided_slice %233 {offsets = [2, 0, 0], sizes = [1, 15, 15], strides = [1, 1, 1]} : vector<4x15x15xf32> to vector<1x15x15xf32>
    %241 = vector.shape_cast %240 : vector<1x15x15xf32> to vector<15x15xf32>
    %242 = vector.extract_strided_slice %233 {offsets = [3, 0, 0], sizes = [1, 15, 15], strides = [1, 1, 1]} : vector<4x15x15xf32> to vector<1x15x15xf32>
    %243 = vector.shape_cast %242 : vector<1x15x15xf32> to vector<15x15xf32>
    %244 = vector.extract_strided_slice %235 {offsets = [0, 0], sizes = [1, 15], strides = [1, 1]} : vector<9x15xf32> to vector<1x15xf32>
    %245 = vector.extract_strided_slice %235 {offsets = [1, 0], sizes = [1, 15], strides = [1, 1]} : vector<9x15xf32> to vector<1x15xf32>
    %246 = vector.extract_strided_slice %235 {offsets = [2, 0], sizes = [1, 15], strides = [1, 1]} : vector<9x15xf32> to vector<1x15xf32>
    %247 = vector.extract_strided_slice %235 {offsets = [3, 0], sizes = [1, 15], strides = [1, 1]} : vector<9x15xf32> to vector<1x15xf32>
    %248 = vector.extract_strided_slice %235 {offsets = [4, 0], sizes = [1, 15], strides = [1, 1]} : vector<9x15xf32> to vector<1x15xf32>
    %249 = vector.extract_strided_slice %235 {offsets = [5, 0], sizes = [1, 15], strides = [1, 1]} : vector<9x15xf32> to vector<1x15xf32>
    %250 = vector.extract_strided_slice %235 {offsets = [6, 0], sizes = [1, 15], strides = [1, 1]} : vector<9x15xf32> to vector<1x15xf32>
    %251 = vector.extract_strided_slice %235 {offsets = [7, 0], sizes = [1, 15], strides = [1, 1]} : vector<9x15xf32> to vector<1x15xf32>
    %252 = vector.extract_strided_slice %235 {offsets = [8, 0], sizes = [1, 15], strides = [1, 1]} : vector<9x15xf32> to vector<1x15xf32>
    %cst_91 = arith.constant dense<0.000000e+00> : vector<16x15xf32>
    %253 = tpu.matmul %231, %237, %cst_91 {dimension_numbers = #tpu.dot_dimension_numbers<[1], [0], [0], [1], [0, 0, 1, 1], [], []>} : vector<16x15xf32>, vector<15x15xf32>, vector<16x15xf32> -> vector<16x15xf32>
    %254 = vector.broadcast %244 : vector<1x15xf32> to vector<16x15xf32>
    %255 = arith.addf %253, %254 : vector<16x15xf32>
    %cst_92 = arith.constant dense<0.000000e+00> : vector<16x15xf32>
    %256 = tpu.matmul %231, %239, %cst_92 {dimension_numbers = #tpu.dot_dimension_numbers<[1], [0], [0], [1], [0, 0, 1, 1], [], []>} : vector<16x15xf32>, vector<15x15xf32>, vector<16x15xf32> -> vector<16x15xf32>
    %257 = vector.broadcast %245 : vector<1x15xf32> to vector<16x15xf32>
    %258 = arith.addf %256, %257 : vector<16x15xf32>
    %cst_93 = arith.constant dense<0.000000e+00> : vector<16x15xf32>
    %259 = tpu.matmul %231, %241, %cst_93 {dimension_numbers = #tpu.dot_dimension_numbers<[1], [0], [0], [1], [0, 0, 1, 1], [], []>} : vector<16x15xf32>, vector<15x15xf32>, vector<16x15xf32> -> vector<16x15xf32>
    %260 = vector.broadcast %246 : vector<1x15xf32> to vector<16x15xf32>
    %261 = arith.addf %259, %260 : vector<16x15xf32>
    %cst_94 = arith.constant dense<0.000000e+00> : vector<16x240xf32>
    %262 = tpu.matmul %255, %2, %cst_94 {dimension_numbers = #tpu.dot_dimension_numbers<[1], [0], [0], [1], [0, 0, 1, 1], [], []>} : vector<16x15xf32>, vector<15x240xf32>, vector<16x240xf32> -> vector<16x240xf32>
    %cst_95 = arith.constant dense<0.000000e+00> : vector<16x240xf32>
    %263 = tpu.matmul %258, %2, %cst_95 {dimension_numbers = #tpu.dot_dimension_numbers<[1], [0], [0], [1], [0, 0, 1, 1], [], []>} : vector<16x15xf32>, vector<15x240xf32>, vector<16x240xf32> -> vector<16x240xf32>
    %cst_96 = arith.constant dense<0.000000e+00> : vector<16x240xf32>
    %264 = tpu.matmul %261, %2, %cst_96 {dimension_numbers = #tpu.dot_dimension_numbers<[1], [0], [0], [1], [0, 0, 1, 1], [], []>} : vector<16x15xf32>, vector<15x240xf32>, vector<16x240xf32> -> vector<16x240xf32>
    %265 = arith.mulf %262, %3 : vector<16x240xf32>
    %cst_97 = arith.constant dense<0.000000e+00> : vector<240xf32>
    %266 = vector.multi_reduction <add>, %265, %cst_97 [0] : vector<16x240xf32> to vector<240xf32>
    %267 = vector.shape_cast %266 : vector<240xf32> to vector<1x240xf32>
    %268 = vector.broadcast %267 : vector<1x240xf32> to vector<16x240xf32>
    %269 = arith.mulf %263, %268 : vector<16x240xf32>
    %270 = arith.addf %269, %1 : vector<16x240xf32>
    %cst_98 = arith.constant dense<0xFF800000> : vector<240xf32>
    %271 = vector.multi_reduction <maximumf>, %270, %cst_98 [0] : vector<16x240xf32> to vector<240xf32>
    %272 = vector.shape_cast %271 : vector<240xf32> to vector<1x240xf32>
    %273 = vector.broadcast %272 : vector<1x240xf32> to vector<16x240xf32>
    %274 = arith.subf %270, %273 : vector<16x240xf32>
    %275 = math.exp %274 : vector<16x240xf32>
    %cst_99 = arith.constant dense<0.000000e+00> : vector<240xf32>
    %276 = vector.multi_reduction <add>, %275, %cst_99 [0] : vector<16x240xf32> to vector<240xf32>
    %277 = vector.shape_cast %276 : vector<240xf32> to vector<1x240xf32>
    %278 = arith.mulf %275, %264 : vector<16x240xf32>
    %cst_100 = arith.constant dense<0.000000e+00> : vector<240xf32>
    %279 = vector.multi_reduction <add>, %278, %cst_100 [0] : vector<16x240xf32> to vector<240xf32>
    %280 = vector.shape_cast %279 : vector<240xf32> to vector<1x240xf32>
    %281 = tpu.reciprocal %277 {approx = true} : vector<1x240xf32> -> vector<1x240xf32>
    %282 = arith.mulf %280, %281 : vector<1x240xf32>
    %283 = vector.broadcast %282 : vector<1x240xf32> to vector<16x240xf32>
    %284 = arith.mulf %3, %283 : vector<16x240xf32>
    %cst_101 = arith.constant dense<0.000000e+00> : vector<16x15xf32>
    %285 = tpu.matmul %284, %2, %cst_101 {dimension_numbers = #tpu.dot_dimension_numbers<[1], [1], [0], [0], [0, 0, 1, 0], [], []>} : vector<16x240xf32>, vector<15x240xf32>, vector<16x15xf32> -> vector<16x15xf32>
    %cst_102 = arith.constant dense<0.000000e+00> : vector<16x15xf32>
    %286 = tpu.matmul %285, %243, %cst_102 {dimension_numbers = #tpu.dot_dimension_numbers<[1], [0], [0], [1], [0, 0, 1, 1], [], []>} : vector<16x15xf32>, vector<15x15xf32>, vector<16x15xf32> -> vector<16x15xf32>
    %287 = vector.broadcast %247 : vector<1x15xf32> to vector<16x15xf32>
    %288 = arith.addf %286, %287 : vector<16x15xf32>
    %289 = arith.addf %231, %288 : vector<16x15xf32>
    %cst_103 = arith.constant dense<0.000000e+00> : vector<16xf32>
    %290 = vector.multi_reduction <add>, %289, %cst_103 [1] : vector<16x15xf32> to vector<16xf32>
    %291 = vector.shape_cast %290 : vector<16xf32> to vector<16x1xf32>
    %cst_104 = arith.constant 1.500000e+01 : f32
    %292 = vector.broadcast %cst_104 : f32 to vector<16x1xf32>
    %293 = arith.divf %291, %292 : vector<16x1xf32>
    %294 = vector.broadcast %293 : vector<16x1xf32> to vector<16x15xf32>
    %295 = arith.subf %289, %294 : vector<16x15xf32>
    %296 = arith.mulf %295, %295 : vector<16x15xf32>
    %cst_105 = arith.constant dense<0.000000e+00> : vector<16xf32>
    %297 = vector.multi_reduction <add>, %296, %cst_105 [1] : vector<16x15xf32> to vector<16xf32>
    %298 = vector.shape_cast %297 : vector<16xf32> to vector<16x1xf32>
    %cst_106 = arith.constant 1.500000e+01 : f32
    %299 = vector.broadcast %cst_106 : f32 to vector<16x1xf32>
    %300 = arith.divf %298, %299 : vector<16x1xf32>
    %cst_107 = arith.constant 9.99999974E-6 : f32
    %301 = vector.broadcast %cst_107 : f32 to vector<16x1xf32>
    %302 = arith.addf %300, %301 : vector<16x1xf32>
    %303 = math.rsqrt %302 : vector<16x1xf32>
    %304 = vector.broadcast %303 : vector<16x1xf32> to vector<16x15xf32>
    %305 = arith.mulf %295, %304 : vector<16x15xf32>
    %306 = vector.broadcast %248 : vector<1x15xf32> to vector<16x15xf32>
    %307 = arith.mulf %305, %306 : vector<16x15xf32>
    %308 = vector.broadcast %249 : vector<1x15xf32> to vector<16x15xf32>
    %309 = arith.addf %307, %308 : vector<16x15xf32>
    %310 = arith.truncf %309 : vector<16x15xf32> to vector<16x15xbf16>
    %c2_108 = arith.constant 2 : index
    %c0_109 = arith.constant 0 : index
    %c0_110 = arith.constant 0 : index
    %311 = vector.load %arg7[%c2_108, %c0_109, %c0_110] : memref<3x15x2048xbf16, #tpu.memory_space<vmem>>, vector<1x15x2048xbf16>
    %312 = vector.shape_cast %311 : vector<1x15x2048xbf16> to vector<15x2048xbf16>
    %cst_111 = arith.constant dense<0.000000e+00> : vector<16x2048xf32>
    %313 = tpu.matmul %310, %312, %cst_111 {dimension_numbers = #tpu.dot_dimension_numbers<[1], [0], [0], [1], [0, 0, 1, 1], [], []>} : vector<16x15xbf16>, vector<15x2048xbf16>, vector<16x2048xf32> -> vector<16x2048xf32>
    %c2_112 = arith.constant 2 : index
    %c0_113 = arith.constant 0 : index
    %314 = vector.load %arg8[%c2_112, %c0_113] : memref<3x2048xf32, #tpu.memory_space<vmem>>, vector<1x2048xf32>
    %315 = vector.broadcast %314 : vector<1x2048xf32> to vector<16x2048xf32>
    %316 = arith.addf %313, %315 : vector<16x2048xf32>
    %cst_114 = arith.constant 0.000000e+00 : f32
    %317 = vector.broadcast %cst_114 : f32 to vector<16x2048xf32>
    %318 = arith.maximumf %316, %317 : vector<16x2048xf32>
    %319 = arith.truncf %318 : vector<16x2048xf32> to vector<16x2048xbf16>
    %c2_115 = arith.constant 2 : index
    %c0_116 = arith.constant 0 : index
    %c0_117 = arith.constant 0 : index
    %320 = vector.load %arg9[%c2_115, %c0_116, %c0_117] : memref<3x15x2048xbf16, #tpu.memory_space<vmem>>, vector<1x15x2048xbf16>
    %321 = vector.shape_cast %320 : vector<1x15x2048xbf16> to vector<15x2048xbf16>
    %cst_118 = arith.constant dense<0.000000e+00> : vector<16x15xf32>
    %322 = tpu.matmul %319, %321, %cst_118 {dimension_numbers = #tpu.dot_dimension_numbers<[1], [1], [0], [0], [0, 0, 1, 0], [], []>} : vector<16x2048xbf16>, vector<15x2048xbf16>, vector<16x15xf32> -> vector<16x15xf32>
    %323 = vector.broadcast %252 : vector<1x15xf32> to vector<16x15xf32>
    %324 = arith.addf %322, %323 : vector<16x15xf32>
    %325 = arith.addf %309, %324 : vector<16x15xf32>
    %cst_119 = arith.constant dense<0.000000e+00> : vector<16xf32>
    %326 = vector.multi_reduction <add>, %325, %cst_119 [1] : vector<16x15xf32> to vector<16xf32>
    %327 = vector.shape_cast %326 : vector<16xf32> to vector<16x1xf32>
    %cst_120 = arith.constant 1.500000e+01 : f32
    %328 = vector.broadcast %cst_120 : f32 to vector<16x1xf32>
    %329 = arith.divf %327, %328 : vector<16x1xf32>
    %330 = vector.broadcast %329 : vector<16x1xf32> to vector<16x15xf32>
    %331 = arith.subf %325, %330 : vector<16x15xf32>
    %332 = arith.mulf %331, %331 : vector<16x15xf32>
    %cst_121 = arith.constant dense<0.000000e+00> : vector<16xf32>
    %333 = vector.multi_reduction <add>, %332, %cst_121 [1] : vector<16x15xf32> to vector<16xf32>
    %334 = vector.shape_cast %333 : vector<16xf32> to vector<16x1xf32>
    %cst_122 = arith.constant 1.500000e+01 : f32
    %335 = vector.broadcast %cst_122 : f32 to vector<16x1xf32>
    %336 = arith.divf %334, %335 : vector<16x1xf32>
    %cst_123 = arith.constant 9.99999974E-6 : f32
    %337 = vector.broadcast %cst_123 : f32 to vector<16x1xf32>
    %338 = arith.addf %336, %337 : vector<16x1xf32>
    %339 = math.rsqrt %338 : vector<16x1xf32>
    %340 = vector.broadcast %339 : vector<16x1xf32> to vector<16x15xf32>
    %341 = arith.mulf %331, %340 : vector<16x15xf32>
    %342 = vector.broadcast %250 : vector<1x15xf32> to vector<16x15xf32>
    %343 = arith.mulf %341, %342 : vector<16x15xf32>
    %344 = vector.broadcast %251 : vector<1x15xf32> to vector<16x15xf32>
    %345 = arith.addf %343, %344 : vector<16x15xf32>
    %cst_124 = arith.constant 0.000000e+00 : f32
    %346 = vector.broadcast %cst_124 : f32 to vector<16x15xf32>
    %347 = arith.maximumf %345, %346 : vector<16x15xf32>
    %c0_125 = arith.constant 0 : index
    %c0_126 = arith.constant 0 : index
    %348 = vector.load %arg10[%c0_125, %c0_126] : memref<15x15xf32, #tpu.memory_space<vmem>>, vector<15x15xf32>
    %cst_127 = arith.constant dense<0.000000e+00> : vector<16x15xf32>
    %349 = tpu.matmul %347, %348, %cst_127 {dimension_numbers = #tpu.dot_dimension_numbers<[1], [0], [0], [1], [0, 0, 1, 1], [], []>} : vector<16x15xf32>, vector<15x15xf32>, vector<16x15xf32> -> vector<16x15xf32>
    %c0_128 = arith.constant 0 : index
    %c0_129 = arith.constant 0 : index
    %350 = vector.load %arg11[%c0_128, %c0_129] : memref<1x15xf32, #tpu.memory_space<vmem>>, vector<1x15xf32>
    %351 = vector.broadcast %350 : vector<1x15xf32> to vector<16x15xf32>
    %352 = arith.addf %349, %351 : vector<16x15xf32>
    %c0_130 = arith.constant 0 : index
    %c0_131 = arith.constant 0 : index
    %353 = vector.load %arg12[%c0_130, %c0_131] : memref<16x15xf32, #tpu.memory_space<vmem>>, vector<16x15xf32>
    tpu.vector_store %arg12[%c0_130, %c0_131], %352 {strides = array<i32>} : memref<16x15xf32, #tpu.memory_space<vmem>>, vector<16x15xf32>,
    return
  }
  func.func @transform_0(%arg0: i32) -> (i32, i32) {
    %c0_i32 = arith.constant 0 : i32
    %c0_i32_0 = arith.constant 0 : i32
    %c0_i32_1 = arith.constant 0 : i32
    return %c0_i32, %c0_i32_0 : i32, i32
  }
  func.func @transform_1(%arg0: i32) -> (i32, i32) {
    %c0_i32 = arith.constant 0 : i32
    %c0_i32_0 = arith.constant 0 : i32
    %c0_i32_1 = arith.constant 0 : i32
    return %c0_i32, %c0_i32_0 : i32, i32
  }
  func.func @transform_2(%arg0: i32) -> (i32, i32) {
    %c0_i32 = arith.constant 0 : i32
    %c0_i32_0 = arith.constant 0 : i32
    %c0_i32_1 = arith.constant 0 : i32
    return %c0_i32, %c0_i32_0 : i32, i32
  }
  func.func @transform_3(%arg0: i32) -> (i32, i32) {
    %c0_i32 = arith.constant 0 : i32
    %c0_i32_0 = arith.constant 0 : i32
    %c0_i32_1 = arith.constant 0 : i32
    return %c0_i32, %c0_i32_0 : i32, i32
  }
  func.func @transform_4(%arg0: i32) -> (i32, i32, i32, i32) {
    %c0_i32 = arith.constant 0 : i32
    %c0_i32_0 = arith.constant 0 : i32
    %c0_i32_1 = arith.constant 0 : i32
    %c0_i32_2 = arith.constant 0 : i32
    %c0_i32_3 = arith.constant 0 : i32
    return %c0_i32, %c0_i32_0, %c0_i32_1, %c0_i32_2 : i32, i32, i32, i32
  }
  func.func @transform_5(%arg0: i32) -> (i32, i32, i32) {
    %c0_i32 = arith.constant 0 : i32
    %c0_i32_0 = arith.constant 0 : i32
    %c0_i32_1 = arith.constant 0 : i32
    %c0_i32_2 = arith.constant 0 : i32
    return %c0_i32, %c0_i32_0, %c0_i32_1 : i32, i32, i32
  }
  func.func @transform_6(%arg0: i32) -> (i32, i32, i32) {
    %c0_i32 = arith.constant 0 : i32
    %c0_i32_0 = arith.constant 0 : i32
    %c0_i32_1 = arith.constant 0 : i32
    %c0_i32_2 = arith.constant 0 : i32
    return %c0_i32, %c0_i32_0, %c0_i32_1 : i32, i32, i32
  }
  func.func @transform_7(%arg0: i32) -> (i32, i32) {
    %c0_i32 = arith.constant 0 : i32
    %c0_i32_0 = arith.constant 0 : i32
    %c0_i32_1 = arith.constant 0 : i32
    return %c0_i32, %c0_i32_0 : i32, i32
  }
  func.func @transform_8(%arg0: i32) -> (i32, i32, i32) {
    %c0_i32 = arith.constant 0 : i32
    %c0_i32_0 = arith.constant 0 : i32
    %c0_i32_1 = arith.constant 0 : i32
    %c0_i32_2 = arith.constant 0 : i32
    return %c0_i32, %c0_i32_0, %c0_i32_1 : i32, i32, i32
  }
  func.func @transform_9(%arg0: i32) -> (i32, i32) {
    %c0_i32 = arith.constant 0 : i32
    %c0_i32_0 = arith.constant 0 : i32
    %c0_i32_1 = arith.constant 0 : i32
    return %c0_i32, %c0_i32_0 : i32, i32
  }
  func.func @transform_10(%arg0: i32) -> (i32, i32) {
    %c0_i32 = arith.constant 0 : i32
    %c0_i32_0 = arith.constant 0 : i32
    %c0_i32_1 = arith.constant 0 : i32
    return %c0_i32, %c0_i32_0 : i32, i32
  }
  func.func @transform_11(%arg0: i32) -> (i32, i32) {
    %c0_i32 = arith.constant 0 : i32
    %c0_i32_0 = arith.constant 0 : i32
    %c0_i32_1 = arith.constant 0 : i32
    return %c0_i32, %c0_i32_0 : i32, i32
  }
}

</mosaic_0001>

<bundles_post_ra>
// kernel: trm_forward.1
= control target key start
LH: loop header
LB: loop body
LE: loop exit
PB: predicated region body
PF: predicated region fallthrough
CT: control target
= control target key end

     0   :  { %16 = vsyncpa [#allocation3], 0  ;;  %s6176_s0 = inlined_call_operand.hbm [shape: f32[16,15], index: 0, kind: input, shape index: {}]   ;;  %s6177_s1 = inlined_call_operand.hbm [shape: f32[16,240], index: 1, kind: input, shape index: {}]   ;;  %s6178_s2 = inlined_call_operand.hbm [shape: f32[15,240], index: 2, kind: input, shape index: {}]   ;;  %s6179_s3 = inlined_call_operand.hbm [shape: f32[16,240], index: 3, kind: input, shape index: {}]   ;;  %s6180_s4 = inlined_call_operand.vmem [shape: f32[3,4,15,15], index: 4, kind: input, shape index: {}]   ;;  %s6181_s5 = inlined_call_operand.vmem [shape: f32[3,9,15], index: 5, kind: input, shape index: {}]   ;;  %s6182_s6 = inlined_call_operand.vmem [shape: bf16[3,15,2048], index: 6, kind: input, shape index: {}]   ;;  %s6183_s7 = inlined_call_operand.vmem [shape: f32[3,2048], index: 7, kind: input, shape index: {}]   ;;  %s6184_s8 = inlined_call_operand.hbm [shape: bf16[3,15,2048], index: 8, kind: input, shape index: {}]   ;;  %s6185_s9 = inlined_call_operand.hbm [shape: f32[15,15], index: 9, kind: input, shape index: {}]   ;;  %s6186_s10 = inlined_call_operand.vmem [shape: f32[1,15], index: 10, kind: input, shape index: {}]   ;;  %s6187_s11 = inlined_call_operand.hbm [shape: f32[16,15], index: 11, kind: output, shape index: {}]  }
   0x1   :  { %17 = vsyncpa [#allocation6], 0 }
   0x2   :  { %18 = vsyncpa [#allocation9], 0 }
   0x3   :  { %19 = vsyncpa [#allocation12], 0  ;;  %s38_s19 = sshll.u32 %s6177_s1, 4  ;;  %s39_s19 = int_to_ptr.hbm [resolvable:$true] %s38_s19 }
   0x4   :  { %20 = vsyncpa [#allocation4], 0  ;;  %s5136_s20 = smov [#allocation5]   ;;  %s64_s24 = sshll.u32 %s6179_s3, 4  ;;  %s65_s24 = int_to_ptr.hbm [resolvable:$true] %s64_s24 }
   0x5   :  { %s40_s21 = sshll.u32 %s5136_s20, 4  ;;  %s5137_s25 = smov 256   ;;  %s41_s21 = int_to_ptr.vmem [resolvable:$true] %s40_s21 }
   0x6   :  { %s5138_s26 = smov 16   ;;  %s5139_s27 = smov [#allocation8]  }
   0x7   :  { %46 = dma.hbm_to_vmem [thread:$0]  %s39_s19, 512, %s41_s21, [#allocation6], %s5137_s25, %s5137_s25, %s5138_s26  }
   0x8   :  { %s66_s28 = sshll.u32 %s5139_s27, 4  ;;  %s25_s12 = sshll.u32 %s6176_s0, 4  ;;  %s67_s28 = int_to_ptr.vmem [resolvable:$true] %s66_s28  ;;  %s26_s12 = int_to_ptr.hbm [resolvable:$true] %s25_s12 }
   0x9   :  { %72 = dma.hbm_to_vmem [thread:$0]  %s65_s24, 512, %s67_s28, [#allocation9], %s5137_s25, %s5137_s25, %s5138_s26  }
   0xa   :  { %s5140_s1 = smov [#allocation2]   ;;  %s51_s3 = sshll.u32 %s6178_s2, 4  ;;  %s52_s3 = int_to_ptr.hbm [resolvable:$true] %s51_s3 }
   0xb   :  { %s27_s13 = sshll.u32 %s5140_s1, 4  ;;  %s5141_s16 = smov 128   ;;  %s28_s13 = int_to_ptr.vmem [resolvable:$true] %s27_s13 }
   0xc   :  { %s5142_s17 = smov 8   ;;  %s5143_s18 = smov [#allocation7]  }
   0xd   :  { %33 = dma.hbm_to_vmem [thread:$0]  %s26_s12, 256, %s28_s13, [#allocation3], %s5141_s16, %s5141_s16, %s5142_s17  }
   0xe   :  { %s53_s19 = sshll.u32 %s5143_s18, 4  ;;  %s85_s21 = sshll.u32 %s6184_s8, 4  ;;  %s54_s19 = int_to_ptr.vmem [resolvable:$true] %s53_s19  ;;  %s86_s21 = int_to_ptr.hbm [resolvable:$true] %s85_s21 }
   0xf   :  { %59 = dma.hbm_to_vmem [thread:$0]  %s52_s3, 512, %s54_s19, [#allocation6], %s5137_s25, %s5137_s25, %s5138_s26  }
  0x10   :  { %s5144_s22 = smov [#allocation10]   ;;  %s98_s27 = sshll.u32 %s6185_s9, 4  ;;  %s99_s27 = int_to_ptr.hbm [resolvable:$true] %s98_s27 }
  0x11   :  { %s87_s23 = sshll.u32 %s5144_s22, 4  ;;  %s5145_s28 = smov 1024   ;;  %s88_s23 = int_to_ptr.vmem [resolvable:$true] %s87_s23 }
  0x12   :  { %s5146_s29 = smov 64   ;;  %s5147_s30 = smov [#allocation11]  }
  0x13   :  { %93 = dma.hbm_to_vmem [thread:$0]  %s86_s21, 6144, %s88_s23, [#allocation9], %s5145_s28, %s5145_s28, %s5146_s29  }
  0x14   :  { %s100_s12 = sshll.u32 %s5147_s30, 4  ;;  %s101_s12 = int_to_ptr.vmem [resolvable:$true] %s100_s12 }
  0x15   :  { %106 = dma.hbm_to_vmem [thread:$0]  %s99_s27, 256, %s101_s12, [#allocation12], %s5141_s16, %s5141_s16, %s5142_s17  }
  0x16   :  { %5126 = dma.done.wait [#allocation3], 256  }
  0x17   :  { %5127 = vsyncadd [#allocation3], 4294967040 }
  0x18   :  { %5128 = dma.done.wait [#allocation6], 1024  }
  0x19   :  { %5129 = vsyncadd [#allocation6], 4294966272 }
  0x1a   :  { %5130 = dma.done.wait [#allocation9], 6656  }
  0x1b   :  { %5131 = vsyncadd [#allocation9], 4294960640 }
  0x1c   :  { %5132 = dma.done.wait [#allocation12], 256  }
  0x1d   :  { %5133 = vsyncadd [#allocation12], 4294967040  ;;  %vm166_vm0 = vcmask 1046528   ;;  %v149_v0 = vld [vmem:[%s6180_s4 + $0x8] sm:$0x7f]  ;;  %v148_v1 = vld [vmem:[%s6180_s4] sm:$0xff] }
  0x1e   :  { %4158 = vmatpush.msk.msra.mxu0 %vm166_vm0, %v149_v0  ;;  %4848 = vmatpush.msk.msra.mxu1 %vm166_vm0, %v149_v0  ;;  %v5243_v2 = vld [vmem:[#allocation2] sm:$0xff]  ;;  %vm159_vm1 = vcmask 121856   ;;  %v5245_v3 = vld [vmem:[#allocation2 + $0x8] sm:$0xff]  ;;  %v151_v4 = vld [vmem:[%s6180_s4 + $0x18] sm:$0x7f]  ;;  %vm420_vm2 = vcmask 916480  }
  0x1f   :  { %v153_v5 = vld [vmem:[%s6180_s4 + $0x28] sm:$0x7f]  ;;  %v150_v6 = vld [vmem:[%s6180_s4 + $0x10] sm:$0xff]  ;;  %v152_v8 = vld [vmem:[%s6180_s4 + $0x20] sm:$0xff]  ;;  %vm780_vm4 = vcmask 1047552   ;;  %s5150_s21 = smov [#allocation13]  }
  0x20   :  { %185 = vmatpush.msra.mxu0 %v148_v1  ;;  %4849 = vmatpush.msra.mxu1 %v148_v1  ;;  %v143_v7 = vld [vmem:[#allocation7 + $0x18] sm:$0x7f]  ;;  %v141_v9 = vld [vmem:[#allocation7 + $0x8] sm:$0xff]  ;;  %v142_v10 = vld [vmem:[#allocation7 + $0x10] sm:$0x7f]  ;;  %s4142_s2 = sshll.u32 %s6187_s11, 4  ;;  %s4143_s2 = int_to_ptr.hbm [resolvable:$true] %s4142_s2 }
  0x21   :  { %4159 = vmatmul.msk.f32.vlgmr.msra.gmra.mxu0 %vm159_vm1, %v5243_v2  ;;  %4160 = vmatmul.msk.f32.vlgmr.msra.gmra.mxu1 %vm159_vm1, %v5245_v3  ;;  %v140_v11 = vld [vmem:[#allocation7] sm:$0xff]  ;;  %v5282_v12 = vld [vmem:[%s6181_s5] sm:$0xff]  ;;  %v5301_v29 = vld [vmem:[#allocation8 + $0x8] sm:$0xff] }
  0x22   :  { %4161 = vmatpush.msk.msrb.mxu1 %vm166_vm0, %v151_v4  ;;  %4164 = vmatpush.msk.msra.mxu2 %vm166_vm0, %v153_v5  ;;  %v158_v13 = vperm.slane %v5282_v12, 0  ;;  %v193_v17 = vperm.slane %v5282_v12, 1  ;;  %v220_v22 = vperm.slane %v5282_v12, 2  ;;  %v5303_v31 = vld [vmem:[#allocation8 + $0x18] sm:$0xff]  ;;  %v5309_v37 = vld [vmem:[#allocation8] sm:$0xff]  ;;  %v5311_v39 = vld [vmem:[#allocation8 + $0x10] sm:$0xff] }
  0x23   :  { %4170 = vmatpush.msk.msrb.mxu0 %vm166_vm0, %v143_v7  ;;  %4167 = vmatpush.msk.msra.mxu3 %vm166_vm0, %v142_v10  ;;  %v137_v56 = vld [vmem:[#allocation5 + $0x8] sm:$0xff]  ;;  %v139_v58 = vld [vmem:[#allocation5 + $0x18] sm:$0xff]  ;;  %v136_v4 = vld [vmem:[#allocation5] sm:$0xff] }
  0x24   :  { %212 = vmatpush.msrb.mxu1 %v150_v6  ;;  %239 = vmatpush.msra.mxu2 %v152_v8  ;;  %v138_v5 = vld [vmem:[#allocation5 + $0x10] sm:$0xff] }
  0x25   :  { %4165 = vmatmul.msk.f32.vlgmr.msra.gmra.mxu2 %vm159_vm1, %v5243_v2  ;;  %297 = vmatpush.msrb.mxu0 %v141_v9 }
  0x26   :  { %4176 = vmatpush.msk.msrb.mxu2 %vm166_vm0, %v143_v7  ;;  %4173 = vmatpush.msk.msra.mxu1 %vm166_vm0, %v142_v10 }
  0x27   :  { %4182 = vmatpush.msk.msra.mxu0 %vm166_vm0, %v143_v7  ;;  %274 = vmatpush.msra.mxu3 %v140_v11 }
  0x28   :  { %349 = vmatpush.msrb.mxu2 %v141_v9  ;;  %326 = vmatpush.msra.mxu1 %v140_v11 }
  0x29   :  { %401 = vmatpush.msra.mxu0 %v141_v9  ;;  %4162 = vmatmul.msk.f32.vlgmr.msrb.gmra.mxu1 %vm159_vm1, %v5243_v2 }
  0x2a   :  { %4179 = vmatpush.msk.msrb.mxu3 %vm166_vm0, %v142_v10  ;;  %535 = vmatpush.xpose.msrb.mxu1 %v142_v10 }
  0x2b   :  { %4185 = vmatpush.xpose.msk.msra.mxu2 %vm420_vm2, %v143_v7 }
  0x2c   :  { %378 = vmatpush.msrb.mxu3 %v140_v11 }
  0x2d   :  { %4166 = vmatmul.msk.f32.gmra.mxu2 %vm159_vm1, %v5245_v3 }
  0x2e   :  { %536 = vmatpush.xpose.msrb.mxu1 %v140_v11 }
  0x2f   :  { %4186 = vmatpush.xpose.msk.msra.mxu2 %vm420_vm2, %v141_v9 }
  0x31   :  { %4163 = vmatmul.msk.f32.gmra.mxu1 %vm159_vm1, %v5245_v3 }
  0x9e   :  { %v187_v14 = vpop.f32.mrf.mxu0  ;;  %v190_v15 = vpop.f32.mrf.mxu1 }
  0x9f   :  { %v188_v16 = vadd.f32 %v187_v14, %v158_v13  ;;  %v191_v19 = vadd.f32 %v190_v15, %v158_v13 }
  0xa1   :  { %4168 = vmatmul.msk.f32.vlgmr.msra.gmra.mxu3 %vm159_vm1, %v188_v16  ;;  %4171 = vmatmul.msk.f32.vlgmr.msrb.gmra.mxu0 %vm159_vm1, %v188_v16 }
  0xa6   :  { %v214_v18 = vpop.f32.mrf.mxu1 }
  0xa7   :  { %v215_v20 = vadd.f32 %v214_v18, %v193_v17 }
  0xa8   :  { %v241_v21 = vpop.f32.mrf.mxu2 }
  0xa9   :  { %4169 = vmatmul.msk.f32.gmra.mxu3 %vm159_vm1, %v191_v19  ;;  %4172 = vmatmul.msk.f32.gmra.mxu0 %vm159_vm1, %v191_v19  ;;  %v242_v23 = vadd.f32 %v241_v21, %v220_v22 }
  0xaa   :  { %4174 = vmatmul.msk.f32.vlgmr.msra.gmra.mxu1 %vm159_vm1, %v215_v20  ;;  %4177 = vmatmul.msk.f32.vlgmr.msrb.gmra.mxu2 %vm159_vm1, %v215_v20 }
  0xae   :  { %v217_v24 = vpop.f32.mrf.mxu1 }
  0xaf   :  { %v218_v25 = vadd.f32 %v217_v24, %v193_v17 }
  0xb0   :  { %v244_v26 = vpop.f32.mrf.mxu2 }
  0xb1   :  { %4180 = vmatmul.msk.f32.vlgmr.msrb.gmra.mxu3 %vm159_vm1, %v242_v23  ;;  %4183 = vmatmul.msk.f32.vlgmr.msra.gmra.mxu0 %vm159_vm1, %v242_v23  ;;  %v245_v27 = vadd.f32 %v244_v26, %v220_v22 }
  0xb2   :  { %4175 = vmatmul.msk.f32.gmra.mxu1 %vm159_vm1, %v218_v25  ;;  %4178 = vmatmul.msk.f32.gmra.mxu2 %vm159_vm1, %v218_v25 }
  0xb9   :  { %4181 = vmatmul.msk.f32.gmra.mxu3 %vm159_vm1, %v245_v27  ;;  %4184 = vmatmul.msk.f32.gmra.mxu0 %vm159_vm1, %v245_v27 }
 0x11e   :  { %v299_v28 = vpop.f32.mrf.mxu0 }
 0x11f   :  { %v410_v32 = vmul.f32 %v299_v28, %v5301_v29 }
 0x121   :  { %v421_v35 = vsel %vm420_vm2, %v410_v32, 0.0 }
 0x124   :  { %v276_v30 = vpop.f32.mrf.mxu3 }
 0x125   :  { %v409_v42 = vmul.f32 %v276_v30, %v5309_v37 }
 0x126   :  { %v302_v33 = vpop.f32.mrf.mxu0 }
 0x127   :  { %v412_v34 = vmul.f32 %v302_v33, %v5303_v31  ;;  %v328_v49 = vpop.f32.mrf.mxu1 }
 0x129   :  { %v422_v36 = vsel %vm420_vm2, %v412_v34, 0.0 }
 0x12a   :  { %v423_v38 = vadd.f32 %v422_v36, %v421_v35 }
 0x12c   :  { %v424_v40 = vrot.slane %v423_v38, 4  ;;  %v279_v41 = vpop.f32.mrf.mxu3 }
 0x12d   :  { %v411_v43 = vmul.f32 %v279_v41, %v5311_v39  ;;  %v351_v44 = vpop.f32.mrf.mxu2 }
 0x12e   :  { %v425_v45 = vadd.f32 %v424_v40, %v423_v38  ;;  %v403_v25 = vpop.f32.mrf.mxu0 }
 0x12f   :  { %v413_v46 = vadd.f32 %v411_v43, %v409_v42  ;;  %v331_v6 = vpop.f32.mrf.mxu1 }
 0x130   :  { %v426_v47 = vrot.slane %v425_v45, 2 }
 0x131   :  { %v414_v48 = vrot.slane %v413_v46, 4 }
 0x132   :  { %v427_v50 = vadd.f32 %v426_v47, %v425_v45 }
 0x133   :  { %v415_v51 = vadd.f32 %v414_v48, %v413_v46 }
 0x134   :  { %v428_v52 = vrot.slane %v427_v50, 1  ;;  %v380_v34 = vpop.f32.mrf.mxu3 }
 0x135   :  { %v416_v53 = vrot.slane %v415_v51, 2  ;;  %v354_v54 = vpop.f32.mrf.mxu2 }
 0x136   :  { %v429_v55 = vadd.f32 %v428_v52, %v427_v50  ;;  %v406_v41 = vpop.f32.mrf.mxu0 }
 0x137   :  { %v417_v57 = vadd.f32 %v416_v53, %v415_v51 }
 0x138   :  { %v431_v59 = vmul.f32 %v429_v55, %v351_v44  ;;  %v433_v60 = vmul.f32 %v429_v55, %v354_v54 }
 0x139   :  { %v418_v61 = vrot.slane %v417_v57, 1 }
 0x13a   :  { %v435_v62 = vadd.f32 %v431_v59, %v137_v56  ;;  %v437_v63 = vadd.f32 %v433_v60, %v139_v58 }
 0x13b   :  { %v419_v0 = vadd.f32 %v418_v61, %v417_v57  ;;  %v155_v61 = vld [vmem:[%s6180_s4 + $0x38] sm:$0x7f] }
 0x13c   :  { %v445_v1 = vsel %vm420_vm2, %v435_v62, -inf  ;;  %v446_v7 = vsel %vm420_vm2, %v437_v63, -inf  ;;  %v383_v48 = vpop.f32.mrf.mxu3  ;;  %4189 = vmatpush.msk.msra.mxu3 %vm166_vm0, %v155_v61 }
 0x13d   :  { %v430_v8 = vmul.f32 %v419_v0, %v328_v49  ;;  %v432_v9 = vmul.f32 %v419_v0, %v331_v6  ;;  %v447_v10 = vmax.f32 %v445_v1, %v446_v7 }
 0x13f   :  { %v434_v11 = vadd.f32 %v430_v8, %v136_v4  ;;  %v436_v13 = vadd.f32 %v432_v9, %v138_v5  ;;  %v448_v14 = vrot.slane %v447_v10, 4 }
 0x141   :  { %v438_v15 = vmax.f32 %v434_v11, %v436_v13  ;;  %v449_v16 = vmax.f32 %v447_v10, %v448_v14 }
 0x143   :  { %v439_v17 = vrot.slane %v438_v15, 4  ;;  %v450_v18 = vrot.slane %v449_v16, 2 }
 0x145   :  { %v440_v19 = vmax.f32 %v438_v15, %v439_v17  ;;  %v451_v20 = vmax.f32 %v449_v16, %v450_v18 }
 0x147   :  { %v441_v21 = vrot.slane %v440_v19, 2  ;;  %v452_v22 = vrot.slane %v451_v20, 1 }
 0x149   :  { %v442_v23 = vmax.f32 %v440_v19, %v441_v21  ;;  %v453_v24 = vmax.f32 %v451_v20, %v452_v22 }
 0x14b   :  { %v443_v26 = vrot.slane %v442_v23, 1  ;;  %v457_v27 = vsub.f32 %v437_v63, %v453_v24  ;;  %v455_v28 = vsub.f32 %v435_v62, %v453_v24  ;;  %v154_v62 = vld [vmem:[%s6180_s4 + $0x30] sm:$0xff] }
 0x14c   :  { %592 = vmatpush.msra.mxu3 %v154_v62  ;;  %v4203_v62 = vld [vmem:[%s6182_s6 + $0x8] sm:$0xf] }
 0x14d   :  { %v444_v30 = vmax.f32 %v442_v23, %v443_v26  ;;  %v464_v32 = vmul.f32 1.442695, %v457_v27  ;;  %v460_v33 = vmul.f32 1.442695, %v455_v28 }
 0x14f   :  { %v456_v35 = vsub.f32 %v436_v13, %v444_v30  ;;  %4869 = vpow2.f32 %v464_v32  ;;  %v454_v36 = vsub.f32 %v434_v11, %v444_v30 }
 0x150   :  { %4871 = vpow2.f32 %v460_v33 }
 0x151   :  { %v462_v38 = vmul.f32 1.442695, %v456_v35  ;;  %v458_v40 = vmul.f32 1.442695, %v454_v36 }
 0x153   :  { %4873 = vpow2.f32 %v462_v38 }
 0x154   :  { %4875 = vpow2.f32 %v458_v40 }
 0x155   :  { %v4870_v42 = vpop.eup %4869 }
 0x156   :  { %v4872_v43 = vpop.eup %4871  ;;  %v474_v44 = vsel %vm420_vm2, %v4870_v42, 0.0  ;;  %v485_v45 = vmul.f32 %v4870_v42, %v406_v41 }
 0x157   :  { %v473_v46 = vsel %vm420_vm2, %v4872_v43, 0.0  ;;  %v483_v47 = vmul.f32 %v4872_v43, %v403_v25 }
 0x158   :  { %v475_v49 = vadd.f32 %v474_v44, %v473_v46  ;;  %v494_v50 = vsel %vm420_vm2, %v485_v45, 0.0 }
 0x159   :  { %v4874_v51 = vpop.eup %4873  ;;  %v493_v52 = vsel %vm420_vm2, %v483_v47, 0.0  ;;  %v5148_v47 = vmov 15.0  }
 0x15a   :  { %v4876_v53 = vpop.eup %4875  ;;  %v476_v54 = vrot.slane %v475_v49, 4  ;;  %v495_v55 = vadd.f32 %v494_v50, %v493_v52  ;;  %v484_v56 = vmul.f32 %v4874_v51, %v383_v48 }
 0x15b   :  { %v466_v57 = vadd.f32 %v4876_v53, %v4874_v51  ;;  %v482_v58 = vmul.f32 %v4876_v53, %v380_v34 }
 0x15c   :  { %v477_v59 = vadd.f32 %v476_v54, %v475_v49  ;;  %v496_v60 = vrot.slane %v495_v55, 4 }
 0x15d   :  { %v467_v63 = vrot.slane %v466_v57, 4  ;;  %v486_v0 = vadd.f32 %v484_v56, %v482_v58 }
 0x15e   :  { %v478_v1 = vrot.slane %v477_v59, 2  ;;  %v497_v4 = vadd.f32 %v496_v60, %v495_v55 }
 0x15f   :  { %v468_v5 = vadd.f32 %v467_v63, %v466_v57  ;;  %v487_v6 = vrot.slane %v486_v0, 4  ;;  %v4761_v63 = vld [vmem:[%s6182_s6 + $0x44] sm:$0xf0] }
 0x160   :  { %v479_v7 = vadd.f32 %v478_v1, %v477_v59  ;;  %v498_v8 = vrot.slane %v497_v4, 2  ;;  %v4204_v1 = vor.u32 %v4761_v63, %v4203_v62  ;;  %v4757_v62 = vld [vmem:[%s6182_s6 + $0x2c] sm:$0xf] }
 0x161   :  { %v469_v9 = vrot.slane %v468_v5, 2  ;;  %v488_v10 = vadd.f32 %v487_v6, %v486_v0  ;;  %v4753_v6 = vld [vmem:[%s6182_s6 + $0xc] sm:$0xf] }
 0x162   :  { %v480_v11 = vrot.slane %v479_v7, 1  ;;  %v499_v13 = vadd.f32 %v498_v8, %v497_v4  ;;  %v5149_v4 = vmov 65535  }
 0x163   :  { %v489_v14 = vrot.slane %v488_v10, 2  ;;  %v470_v15 = vadd.f32 %v469_v9, %v468_v5  ;;  %v781_v5 = vsel %vm166_vm0, 4294967295, %v5149_v4  ;;  %v4756_v4 = vld [vmem:[%s6182_s6 + $0x24] sm:$0xf] }
 0x164   :  { %v481_v16 = vadd.f32 %v480_v11, %v479_v7  ;;  %v500_v19 = vrot.slane %v499_v13, 1  ;;  %v4205_v7 = vld [vmem:[%s6182_s6 + $0x48] sm:$0xf0]  ;;  %v5369_v9 = vsel %vm780_vm4, %v781_v5, 0  ;;  %v4195_v11 = vld [vmem:[%s6182_s6] sm:$0xf] }
 0x165   :  { %v471_v17 = vrot.slane %v470_v15, 1  ;;  %v490_v18 = vadd.f32 %v489_v14, %v488_v10  ;;  %v4208_v10 = vor.u32 %v4753_v6, %v4205_v7  ;;  %v790_v14 = vand.u32 %v4204_v1, %v5369_v9  ;;  %v4764_v1 = vld [vmem:[%s6182_s6 + $0x5c] sm:$0xf0]  ;;  %v4229_v5 = vld [vmem:[%s6182_s6 + $0x60] sm:$0xf0] }
 0x166   :  { %4877 = vrcp.f32 %v481_v16  ;;  %v501_v22 = vadd.f32 %v500_v19, %v499_v13  ;;  %v4760_v13 = vld [vmem:[%s6182_s6 + $0x3c] sm:$0xf0]  ;;  %v4752_v16 = vld [vmem:[%s6182_s6 + $0x4] sm:$0xf] }
 0x167   :  { %v472_v20 = vadd.f32 %v471_v17, %v470_v15  ;;  %v491_v21 = vrot.slane %v490_v18, 1  ;;  %v4196_v15 = vor.u32 %v4760_v13, %v4195_v11  ;;  %v4197_v17 = vld [vmem:[%s6182_s6 + $0x40] sm:$0xf0]  ;;  %v793_v19 = vand.u32 %v4208_v10, %v5369_v9  ;;  %866 = vmatpush.bf16.msrb.mxu2 %v790_v14 }
 0x168   :  { %v4232_v11 = vor.u32 %v4756_v4, %v4229_v5 }
 0x169   :  { %4879 = vrcp.f32 %v472_v20  ;;  %v492_v25 = vadd.f32 %v491_v21, %v490_v18  ;;  %v4200_v20 = vor.u32 %v4752_v16, %v4197_v17  ;;  %v784_v21 = vand.u32 %v4196_v15, %v5369_v9  ;;  %880 = vmatpush.bf16.msrb.mxu3 %v793_v19  ;;  %v4251_v19 = vld [vmem:[%s6182_s6 + $0x38] sm:$0xf] }
 0x16a   :  { %4881 = vrcp.f32 %v5148_v47 }
 0x16b   :  { %838 = vmatpush.bf16.msrb.mxu0 %v784_v21  ;;  %v4759_v21 = vld [vmem:[%s6182_s6 + $0x3c] sm:$0xf] }
 0x16c   :  { %v4878_v23 = vpop.eup %4877 }
 0x16d   :  { %v505_v24 = vmul.f32 %v4878_v23, %v501_v22  ;;  %v787_v22 = vand.u32 %v4200_v20, %v5369_v9  ;;  %v4767_v20 = vld [vmem:[%s6182_s6 + $0x74] sm:$0xf0] }
 0x16f   :  { %v4880_v26 = vpop.eup %4879  ;;  %v507_v27 = vmul.f32 %v505_v24, %v5301_v29  ;;  %v509_v32 = vmul.f32 %v505_v24, %v5303_v31  ;;  %852 = vmatpush.bf16.msra.mxu1 %v787_v22  ;;  %v4219_v24 = vld [vmem:[%s6182_s6 + $0x18] sm:$0xf]  ;;  %v4253_v22 = vld [vmem:[%s6182_s6 + $0x78] sm:$0xf0] }
 0x170   :  { %v504_v28 = vmul.f32 %v4880_v26, %v492_v25  ;;  %v4882_v48 = vpop.eup %4881  ;;  %v4763_v25 = vld [vmem:[%s6182_s6 + $0x54] sm:$0xf0]  ;;  %v4755_v26 = vld [vmem:[%s6182_s6 + $0x1c] sm:$0xf] }
 0x171   :  { %4187 = vmatmul.msk.f32.vlgmr.msra.gmra.mxu2 %vm420_vm2, %v507_v27  ;;  %v609_v49 = vmul.f32 15.0, %v4882_v48  ;;  %vm613_vm3 = vweird.f32 %v4882_v48 }
 0x172   :  { %v506_v30 = vmul.f32 %v504_v28, %v5309_v37  ;;  %v508_v33 = vmul.f32 %v504_v28, %v5311_v39  ;;  %v567_v37 = vperm.slane %v5282_v12, 3  ;;  %v4220_v28 = vor.u32 %v4763_v25, %v4219_v24  ;;  %v4766_v24 = vld [vmem:[%s6182_s6 + $0x6c] sm:$0xf0]  ;;  %v4758_v25 = vld [vmem:[%s6182_s6 + $0x34] sm:$0xf] }
 0x173   :  { %v610_v50 = vsub.f32 1.0, %v609_v49 }
 0x174   :  { %537 = vmatmul.f32.vlgmr.msrb.gmra.mxu1 %v506_v30  ;;  %v4221_v30 = vld [vmem:[%s6182_s6 + $0x58] sm:$0xf0] }
 0x175   :  { %v611_v51 = vmul.f32 %v4882_v48, %v610_v50 }
 0x177   :  { %v612_v52 = vadd.f32 %v4882_v48, %v611_v51 }
 0x179   :  { %4188 = vmatmul.msk.f32.gmra.mxu2 %vm420_vm2, %v509_v32  ;;  %v5341_v53 = vsel %vm613_vm3, %v4882_v48, %v612_v52  ;;  %v4211_v32 = vld [vmem:[%s6182_s6 + $0x10] sm:$0xf] }
 0x17c   :  { %540 = vmatmul.f32.gmra.mxu1 %v508_v33  ;;  %v4762_v33 = vld [vmem:[%s6182_s6 + $0x4c] sm:$0xf0] }
 0x1f1   :  { %v538_v34 = vpop.f32.mrf.mxu1 }
 0x1f4   :  { %v561_v35 = vpop.f32.mrf.mxu2 }
 0x1f5   :  { %v562_v36 = vadd.f32 %v561_v35, %v538_v34  ;;  %v4224_v34 = vor.u32 %v4755_v26, %v4221_v30  ;;  %v4212_v35 = vor.u32 %v4762_v33, %v4211_v32  ;;  %v4245_v26 = vld [vmem:[%s6182_s6 + $0x70] sm:$0xf0] }
 0x1f6   :  { %v4248_v32 = vor.u32 %v4758_v25, %v4245_v26 }
 0x1f7   :  { %4190 = vmatmul.msk.f32.vlgmr.msra.gmra.mxu3 %vm159_vm1, %v562_v36  ;;  %v4754_v36 = vld [vmem:[%s6182_s6 + $0x14] sm:$0xf] }
 0x1f9   :  { %v541_v38 = vpop.f32.mrf.mxu1 }
 0x1fc   :  { %v564_v29 = vpop.f32.mrf.mxu2 }
 0x1fd   :  { %v565_v40 = vadd.f32 %v564_v29, %v541_v38  ;;  %v4213_v38 = vld [vmem:[%s6182_s6 + $0x50] sm:$0xf0] }
 0x1ff   :  { %4191 = vmatmul.msk.f32.gmra.mxu3 %vm159_vm1, %v565_v40 }
 0x27a   :  { %v594_v41 = vpop.f32.mrf.mxu3 }
 0x27b   :  { %v595_v42 = vadd.f32 %v594_v41, %v567_v37  ;;  %v4216_v41 = vor.u32 %v4754_v36, %v4213_v38  ;;  %v823_v36 = vand.u32 %v4248_v32, %v5369_v9  ;;  %v4283_v38 = vld [vmem:[#allocation10 + $0x8] sm:$0xf] }
 0x27c   :  { %v4315_v32 = vld [vmem:[#allocation10 + $0x28] sm:$0xf] }
 0x27d   :  { %v600_v31 = vadd.f32 %v595_v42, %v5243_v2 }
 0x27f   :  { %v602_v43 = vsel %vm159_vm1, %v600_v31, 0.0 }
 0x280   :  { %603 = vadd.xlane.f32.xlu0 %v602_v43  ;;  %v796_v43 = vand.u32 %v4212_v35, %v5369_v9 }
 0x282   :  { %v597_v39 = vpop.f32.mrf.mxu3  ;;  %894 = vmatpush.bf16.msra.mxu0 %v796_v43  ;;  %v4277_v43 = vld [vmem:[#allocation10 + $0x40] sm:$0xf0] }
 0x283   :  { %v598_v44 = vadd.f32 %v597_v39, %v567_v37  ;;  %v802_v37 = vand.u32 %v4220_v28, %v5369_v9  ;;  %v799_v39 = vand.u32 %v4216_v41, %v5369_v9  ;;  %v4256_v28 = vor.u32 %v4759_v21, %v4253_v22  ;;  %v4776_v41 = vld [vmem:[#allocation10 + $0x3c] sm:$0xf0] }
 0x285   :  { %v601_v45 = vadd.f32 %v598_v44, %v5245_v3  ;;  %922 = vmatpush.bf16.msra.mxu2 %v802_v37  ;;  %908 = vmatpush.bf16.msrb.mxu1 %v799_v39  ;;  %v4275_v37 = vld [vmem:[#allocation10] sm:$0xf] }
 0x287   :  { %v605_v46 = vsel %vm159_vm1, %v601_v45, 0.0 }
 0x288   :  { %606 = vadd.xlane.f32.xlu0 %v605_v46 }
 0x2f3   :  { %v604_v2 = vpop.xlane.xlu0 %603 }
 0x2f4   :  { %v615_v54 = vmul.f32 %v5341_v53, %v604_v2 }
 0x2f6   :  { %v5344_v55 = vsub.f32 %v600_v31, %v615_v54  ;;  %v805_v31 = vand.u32 %v4224_v34, %v5369_v9  ;;  %v653_v54 = vperm.slane %v5282_v12, 4  ;;  %v829_v34 = vand.u32 %v4256_v28, %v5369_v9 }
 0x2f8   :  { %v619_v3 = vmul.f32 %v5344_v55, %v5344_v55  ;;  %936 = vmatpush.bf16.msra.mxu3 %v805_v31  ;;  %v4768_v31 = vld [vmem:[#allocation10 + $0x4] sm:$0xf] }
 0x2f9   :  { %v4280_v39 = vor.u32 %v4768_v31, %v4277_v43 }
 0x2fa   :  { %v621_v56 = vsel %vm159_vm1, %v619_v3, 0.0 }
 0x2fb   :  { %622 = vadd.xlane.f32.xlu1 %v621_v56  ;;  %v607_v57 = vpop.xlane.xlu0 %606 }
 0x2fc   :  { %v616_v58 = vmul.f32 %v5341_v53, %v607_v57  ;;  %v656_v57 = vperm.slane %v5282_v12, 5  ;;  %v4227_v12 = vld [vmem:[%s6182_s6 + $0x20] sm:$0xf] }
 0x2fd   :  { %v4228_v10 = vor.u32 %v4764_v1, %v4227_v12 }
 0x2fe   :  { %v5350_v59 = vsub.f32 %v601_v45, %v616_v58  ;;  %v4235_v58 = vld [vmem:[%s6182_s6 + $0x28] sm:$0xf] }
 0x2ff   :  { %v808_v17 = vand.u32 %v4228_v10, %v5369_v9 }
 0x300   :  { %v620_v60 = vmul.f32 %v5350_v59, %v5350_v59 }
 0x302   :  { %v624_v61 = vsel %vm159_vm1, %v620_v60, 0.0  ;;  %v4765_v60 = vld [vmem:[%s6182_s6 + $0x64] sm:$0xf0] }
 0x303   :  { %625 = vadd.xlane.f32.xlu1 %v624_v61  ;;  %v4236_v7 = vor.u32 %v4765_v60, %v4235_v58  ;;  %v5501_v60 = vld [vmem:[%s6183_s7] ss:$4 sm:$0xff] }
 0x304   :  { %v682_v12 = vperm.slane %v5501_v60, 1  ;;  %v685_v43 = vperm.slane %v5501_v60, 4 }
 0x305   :  { %v814_v15 = vand.u32 %v4236_v7, %v5369_v9  ;;  %v4307_v7 = vld [vmem:[#allocation10 + $0x20] sm:$0xf] }
 0x36e   :  { %v623_v0 = vpop.xlane.xlu1 %622 }
 0x36f   :  { %v627_v8 = vmul.f32 %v623_v0, %v5341_v53 }
 0x371   :  { %v629_v18 = vadd.f32 1e-05, %v627_v8 }
 0x373   :  { %4883 = vrsqrt.f32 %v629_v18  ;;  %vm637_vm6 = vweird.f32 %v629_v18 }
 0x376   :  { %v626_v23 = vpop.xlane.xlu1 %625 }
 0x377   :  { %v628_v27 = vmul.f32 %v626_v23, %v5341_v53  ;;  %v4243_v23 = vld [vmem:[%s6182_s6 + $0x30] sm:$0xf] }
 0x378   :  { %v4244_v30 = vor.u32 %v4766_v24, %v4243_v23 }
 0x379   :  { %v4884_v29 = vpop.eup %4883  ;;  %v630_v40 = vadd.f32 1e-05, %v628_v27  ;;  %v4252_v27 = vor.u32 %v4767_v20, %v4251_v19 }
 0x37a   :  { %v632_v42 = vmul.f32 %v4884_v29, %v629_v18  ;;  %vm638_vm5 = vweird.f32 %v4884_v29  ;;  %v811_v18 = vand.u32 %v4232_v11, %v5369_v9  ;;  %v820_v35 = vand.u32 %v4244_v30, %v5369_v9  ;;  %v4780_v11 = vld [vmem:[#allocation10 + $0x5c] sm:$0xf0] }
 0x37b   :  { %4885 = vrsqrt.f32 %v630_v40  ;;  %vm639_vm7 = vmor %vm637_vm6, %vm638_vm5  ;;  %vm647_vm9 = vweird.f32 %v630_v40  ;;  %v826_v33 = vand.u32 %v4252_v27, %v5369_v9  ;;  %v4308_v22 = vor.u32 %v4780_v11, %v4307_v7 }
 0x37c   :  { %v633_v44 = vmul.f32 %v4884_v29, %v632_v42  ;;  %v4276_v42 = vor.u32 %v4776_v41, %v4275_v37 }
 0x37e   :  { %v634_v45 = vmul.f32 0.5, %v633_v44  ;;  %v4769_v44 = vld [vmem:[#allocation10 + $0xc] sm:$0xf] }
 0x380   :  { %v635_v46 = vsub.f32 1.5, %v634_v45  ;;  %v4285_v45 = vld [vmem:[#allocation10 + $0x48] sm:$0xf0] }
 0x381   :  { %v4886_v47 = vpop.eup %4885 }
 0x382   :  { %v636_v48 = vmul.f32 %v4884_v29, %v635_v46  ;;  %v642_v49 = vmul.f32 %v4886_v47, %v630_v40  ;;  %vm648_vm8 = vweird.f32 %v4886_v47  ;;  %v4288_v46 = vor.u32 %v4769_v44, %v4285_v45 }
 0x383   :  { %vm649_vm10 = vmor %vm647_vm9, %vm648_vm8 }
 0x384   :  { %v643_v50 = vmul.f32 %v4886_v47, %v642_v49  ;;  %v640_v51 = vsel %vm639_vm7, %v4884_v29, %v636_v48  ;;  %v4777_v29 = vld [vmem:[#allocation10 + $0x44] sm:$0xf0]  ;;  %v4779_v48 = vld [vmem:[#allocation10 + $0x54] sm:$0xf0] }
 0x385   :  { %v651_v3 = vmul.f32 %v640_v51, %v5344_v55  ;;  %v4237_v55 = vld [vmem:[%s6182_s6 + $0x68] sm:$0xf0]  ;;  %v4284_v40 = vor.u32 %v4777_v29, %v4283_v38  ;;  %v4778_v51 = vld [vmem:[#allocation10 + $0x4c] sm:$0xf0]  ;;  %v4781_v38 = vld [vmem:[#allocation10 + $0x64] sm:$0xf0] }
 0x386   :  { %v644_v52 = vmul.f32 0.5, %v643_v50  ;;  %v4240_v8 = vor.u32 %v4757_v62, %v4237_v55  ;;  %v4291_v50 = vld [vmem:[#allocation10 + $0x10] sm:$0xf]  ;;  %v681_v55 = vperm.slane %v5501_v60, 0  ;;  %v4773_v29 = vld [vmem:[#allocation10 + $0x2c] sm:$0xf]  ;;  %v4316_v44 = vor.u32 %v4781_v38, %v4315_v32 }
 0x387   :  { %v654_v63 = vmul.f32 %v653_v54, %v651_v3 }
 0x388   :  { %v645_v2 = vsub.f32 1.5, %v644_v52  ;;  %v817_v16 = vand.u32 %v4240_v8, %v5369_v9  ;;  %v4770_v52 = vld [vmem:[#allocation10 + $0x14] sm:$0xf] }
 0x389   :  { %v5444_v13 = vadd.f32 %v656_v57, %v654_v63 }
 0x38a   :  { %v646_v56 = vmul.f32 %v4886_v47, %v645_v2  ;;  %v4292_v2 = vor.u32 %v4778_v51, %v4291_v50 }
 0x38c   :  { %v650_v61 = vsel %vm649_vm10, %v4886_v47, %v646_v56  ;;  %v4299_v47 = vld [vmem:[#allocation10 + $0x18] sm:$0xf]  ;;  %v4771_v56 = vld [vmem:[#allocation10 + $0x1c] sm:$0xf] }
 0x38d   :  { %v652_v0 = vmul.f32 %v650_v61, %v5350_v59  ;;  %v4300_v49 = vor.u32 %v4779_v48, %v4299_v47 }
 0x38f   :  { %v655_v6 = vmul.f32 %v653_v54, %v652_v0  ;;  %v4293_v54 = vld [vmem:[#allocation10 + $0x50] sm:$0xf0] }
 0x390   :  { %v4296_v3 = vor.u32 %v4770_v52, %v4293_v54  ;;  %v4323_v54 = vld [vmem:[#allocation10 + $0x30] sm:$0xf] }
 0x391   :  { %v5446_v59 = vadd.f32 %v656_v57, %v655_v6  ;;  %v4301_v57 = vld [vmem:[#allocation10 + $0x58] sm:$0xf0] }
 0x392   :  { %v4304_v58 = vor.u32 %v4771_v56, %v4301_v57  ;;  %v4782_v57 = vld [vmem:[#allocation10 + $0x6c] sm:$0xf0] }
 0x393   :  { %v659_v14 = vpack.c.bf16 %v5446_v59, %v5444_v13 }
 0x395   :  { %4257 = vmatmul.msk.bf16.vlgmr.msrb.gmra.mxu0 %vm159_vm1, %v659_v14  ;;  %4258 = vmatmul.msk.bf16.vlgmr.msra.gmra.mxu1 %vm159_vm1, %v659_v14 }
 0x396   :  { %4259 = vmatmul.msk.bf16.vlgmr.msrb.gmra.mxu2 %vm159_vm1, %v659_v14  ;;  %4260 = vmatmul.msk.bf16.vlgmr.msrb.gmra.mxu3 %vm159_vm1, %v659_v14 }
 0x397   :  { %978 = vmatpush.bf16.msrb.mxu2 %v814_v15  ;;  %992 = vmatpush.bf16.msrb.mxu3 %v817_v16  ;;  %v4309_v15 = vld [vmem:[#allocation10 + $0x60] sm:$0xf0]  ;;  %v683_v16 = vperm.slane %v5501_v60, 2 }
 0x398   :  { %950 = vmatpush.bf16.msrb.mxu0 %v808_v17  ;;  %964 = vmatpush.bf16.msra.mxu1 %v811_v18  ;;  %v684_v17 = vperm.slane %v5501_v60, 3 }
 0x3a5   :  { %4261 = vmatmul.msk.bf16.vlgmr.msra.gmra.mxu0 %vm159_vm1, %v659_v14  ;;  %4262 = vmatmul.msk.bf16.vlgmr.msrb.gmra.mxu1 %vm159_vm1, %v659_v14 }
 0x3a6   :  { %4263 = vmatmul.msk.bf16.vlgmr.msra.gmra.mxu2 %vm159_vm1, %v659_v14  ;;  %4264 = vmatmul.msk.bf16.vlgmr.msra.gmra.mxu3 %vm159_vm1, %v659_v14 }
 0x3a7   :  { %1034 = vmatpush.bf16.msra.mxu2 %v826_v33  ;;  %1048 = vmatpush.bf16.msra.mxu3 %v829_v34 }
 0x3a8   :  { %1006 = vmatpush.bf16.msra.mxu0 %v820_v35  ;;  %1020 = vmatpush.bf16.msrb.mxu1 %v823_v36 }
 0x3b5   :  { %4265 = vmatmul.msk.bf16.vlgmr.msrb.gmra.mxu0 %vm159_vm1, %v659_v14  ;;  %4266 = vmatmul.msk.bf16.vlgmr.msra.gmra.mxu1 %vm159_vm1, %v659_v14 }
 0x3b6   :  { %4267 = vmatmul.msk.bf16.vlgmr.msrb.gmra.mxu2 %vm159_vm1, %v659_v14  ;;  %4268 = vmatmul.msk.bf16.vlgmr.msrb.gmra.mxu3 %vm159_vm1, %v659_v14 }
 0x3b7   :  { %1235 = vmatpush.bf16.xpose.msrb.mxu2 %v4284_v40  ;;  %1207 = vmatpush.bf16.xpose.msrb.mxu0 %v4276_v42  ;;  %v4317_v40 = vld [vmem:[#allocation10 + $0x68] sm:$0xf0] }
 0x3b8   :  { %1221 = vmatpush.bf16.xpose.msra.mxu1 %v4280_v39  ;;  %1249 = vmatpush.bf16.xpose.msrb.mxu3 %v4288_v46  ;;  %v686_v39 = vperm.slane %v5501_v60, 5  ;;  %v4320_v45 = vor.u32 %v4773_v29, %v4317_v40 }
 0x3c5   :  { %4269 = vmatmul.msk.bf16.vlgmr.msra.gmra.mxu0 %vm159_vm1, %v659_v14  ;;  %4270 = vmatmul.msk.bf16.vlgmr.msrb.gmra.mxu1 %vm159_vm1, %v659_v14 }
 0x3c6   :  { %4271 = vmatmul.msk.bf16.vlgmr.msra.gmra.mxu2 %vm159_vm1, %v659_v14  ;;  %4272 = vmatmul.msk.bf16.vlgmr.msra.gmra.mxu3 %vm159_vm1, %v659_v14  ;;  %v4772_v14 = vld [vmem:[#allocation10 + $0x24] sm:$0xf] }
 0x3c7   :  { %1291 = vmatpush.bf16.xpose.msra.mxu2 %v4300_v49  ;;  %1263 = vmatpush.bf16.xpose.msra.mxu0 %v4292_v2  ;;  %v4312_v23 = vor.u32 %v4772_v14, %v4309_v15  ;;  %v5514_v15 = vld [vmem:[%s6183_s7 + $0x20] ss:$4 sm:$0xff] }
 0x3c8   :  { %1277 = vmatpush.bf16.xpose.msrb.mxu1 %v4296_v3  ;;  %1305 = vmatpush.bf16.xpose.msra.mxu3 %v4304_v58  ;;  %v4774_v58 = vld [vmem:[#allocation10 + $0x34] sm:$0xf] }
 0x412   :  { %v840_v61 = vpop.f32.mrf.mxu0  ;;  %v854_v62 = vpop.f32.mrf.mxu1 }
 0x413   :  { %v841_v63 = vadd.f32 %v840_v61, %v681_v55  ;;  %v855_v0 = vadd.f32 %v854_v62, %v682_v12  ;;  %v4325_v61 = vld [vmem:[#allocation10 + $0x70] sm:$0xf0]  ;;  %v687_v62 = vperm.slane %v5501_v60, 6 }
 0x415   :  { %v1055_v18 = vmax.f32 %v841_v63, 0.0  ;;  %v1056_v19 = vmax.f32 %v855_v0, 0.0 }
 0x419   :  { %v868_v1 = vpop.f32.mrf.mxu2  ;;  %v882_v4 = vpop.f32.mrf.mxu3 }
 0x41a   :  { %v842_v5 = vpop.f32.mrf.mxu0  ;;  %v856_v6 = vpop.f32.mrf.mxu1  ;;  %v869_v26 = vadd.f32 %v868_v1, %v683_v16  ;;  %v883_v27 = vadd.f32 %v882_v4, %v684_v17  ;;  %v4324_v4 = vor.u32 %v4782_v57, %v4323_v54 }
 0x41b   :  { %v843_v8 = vadd.f32 %v842_v5, %v681_v55  ;;  %v857_v10 = vadd.f32 %v856_v6, %v682_v12  ;;  %v688_v55 = vperm.slane %v5501_v60, 7  ;;  %v4328_v5 = vor.u32 %v4774_v58, %v4325_v61  ;;  %v4331_v60 = vld [vmem:[#allocation10 + $0x38] sm:$0xf] }
 0x41c   :  { %v1057_v37 = vmax.f32 %v869_v26, 0.0  ;;  %v1058_v41 = vmax.f32 %v883_v27, 0.0  ;;  %v689_v27 = vperm.slane %v5514_v15, 0 }
 0x41d   :  { %v1071_v20 = vmax.f32 %v843_v8, 0.0  ;;  %v1072_v21 = vmax.f32 %v857_v10, 0.0 }
 0x41f   :  { %v1087_v24 = vpack.c.bf16 %v1071_v20, %v1055_v18  ;;  %v1088_v25 = vpack.c.bf16 %v1072_v21, %v1056_v19  ;;  %v4783_v20 = vld [vmem:[#allocation10 + $0x74] sm:$0xf0]  ;;  %v4775_v21 = vld [vmem:[#allocation10 + $0x3c] sm:$0xf] }
 0x421   :  { %v870_v28 = vpop.f32.mrf.mxu2  ;;  %v884_v30 = vpop.f32.mrf.mxu3  ;;  %1208 = vmatmul.bf16.vlgmr.msrb.gmra.mxu0 %v1087_v24  ;;  %1222 = vmatmul.bf16.vlgmr.msra.gmra.mxu1 %v1088_v25 }
 0x422   :  { %v871_v33 = vadd.f32 %v870_v28, %v683_v16  ;;  %v885_v34 = vadd.f32 %v884_v30, %v684_v17  ;;  %v896_v35 = vpop.f32.mrf.mxu0  ;;  %v910_v36 = vpop.f32.mrf.mxu1  ;;  %1319 = vmatpush.bf16.xpose.msrb.mxu0 %v4308_v22  ;;  %1333 = vmatpush.bf16.xpose.msra.mxu1 %v4312_v23  ;;  %v4333_v22 = vld [vmem:[#allocation10 + $0x78] sm:$0xf0]  ;;  %v690_v28 = vperm.slane %v5514_v15, 1  ;;  %v4332_v30 = vor.u32 %v4783_v20, %v4331_v60  ;;  %v5526_v60 = vld [vmem:[#allocation7] sm:$0xff] }
 0x423   :  { %v897_v48 = vadd.f32 %v896_v35, %v685_v43  ;;  %v911_v49 = vadd.f32 %v910_v36, %v686_v39  ;;  %v4336_v32 = vor.u32 %v4775_v21, %v4333_v22 }
 0x424   :  { %v1073_v42 = vmax.f32 %v871_v33, 0.0  ;;  %v1074_v31 = vmax.f32 %v885_v34, 0.0 }
 0x425   :  { %v1059_v12 = vmax.f32 %v897_v48, 0.0  ;;  %v1060_v63 = vmax.f32 %v911_v49, 0.0 }
 0x426   :  { %v1089_v46 = vpack.c.bf16 %v1073_v42, %v1057_v37  ;;  %v1090_v47 = vpack.c.bf16 %v1074_v31, %v1058_v41  ;;  %v691_v31 = vperm.slane %v5514_v15, 2 }
 0x428   :  { %1236 = vmatmul.bf16.vlgmr.msrb.gmra.mxu2 %v1089_v46  ;;  %1250 = vmatmul.bf16.vlgmr.msrb.gmra.mxu3 %v1090_v47 }
 0x429   :  { %v924_v50 = vpop.f32.mrf.mxu2  ;;  %v938_v51 = vpop.f32.mrf.mxu3  ;;  %1347 = vmatpush.bf16.xpose.msrb.mxu2 %v4316_v44  ;;  %1361 = vmatpush.bf16.xpose.msrb.mxu3 %v4320_v45 }
 0x42a   :  { %v898_v52 = vpop.f32.mrf.mxu0  ;;  %v912_v2 = vpop.f32.mrf.mxu1  ;;  %v925_v8 = vadd.f32 %v924_v50, %v687_v62  ;;  %v939_v10 = vadd.f32 %v938_v51, %v688_v55 }
 0x42b   :  { %v899_v3 = vadd.f32 %v898_v52, %v685_v43  ;;  %v913_v56 = vadd.f32 %v912_v2, %v686_v39  ;;  %v692_v43 = vperm.slane %v5514_v15, 3 }
 0x42c   :  { %v1061_v23 = vmax.f32 %v925_v8, 0.0  ;;  %v1062_v24 = vmax.f32 %v939_v10, 0.0 }
 0x42d   :  { %v1075_v0 = vmax.f32 %v899_v3, 0.0  ;;  %v1076_v1 = vmax.f32 %v913_v56, 0.0 }
 0x42f   :  { %v1091_v6 = vpack.c.bf16 %v1075_v0, %v1059_v12  ;;  %v1092_v7 = vpack.c.bf16 %v1076_v1, %v1060_v63  ;;  %v694_v12 = vperm.slane %v5514_v15, 5 }
 0x431   :  { %v926_v11 = vpop.f32.mrf.mxu2  ;;  %v940_v14 = vpop.f32.mrf.mxu3  ;;  %1264 = vmatmul.bf16.vlgmr.msra.gmra.mxu0 %v1091_v6  ;;  %1278 = vmatmul.bf16.vlgmr.msrb.gmra.mxu1 %v1092_v7  ;;  %v5522_v7 = vld [vmem:[#allocation7 + $0x10] sm:$0x7f] }
 0x432   :  { %v927_v16 = vadd.f32 %v926_v11, %v687_v62  ;;  %v941_v17 = vadd.f32 %v940_v14, %v688_v55  ;;  %v952_v18 = vpop.f32.mrf.mxu0  ;;  %v966_v19 = vpop.f32.mrf.mxu1  ;;  %1375 = vmatpush.bf16.xpose.msra.mxu0 %v4324_v4  ;;  %1389 = vmatpush.bf16.xpose.msrb.mxu1 %v4328_v5  ;;  %v693_v55 = vperm.slane %v5514_v15, 4 }
 0x433   :  { %v953_v35 = vadd.f32 %v952_v18, %v689_v27  ;;  %v967_v36 = vadd.f32 %v966_v19, %v690_v28 }
 0x434   :  { %v1077_v25 = vmax.f32 %v927_v16, 0.0  ;;  %v1078_v26 = vmax.f32 %v941_v17, 0.0  ;;  %v695_v16 = vperm.slane %v5514_v15, 6  ;;  %v696_v17 = vperm.slane %v5514_v15, 7 }
 0x435   :  { %v1063_v39 = vmax.f32 %v953_v35, 0.0  ;;  %v1064_v44 = vmax.f32 %v967_v36, 0.0 }
 0x436   :  { %v1093_v33 = vpack.c.bf16 %v1077_v25, %v1061_v23  ;;  %v1094_v34 = vpack.c.bf16 %v1078_v26, %v1062_v24 }
 0x438   :  { %1292 = vmatmul.bf16.vlgmr.msra.gmra.mxu2 %v1093_v33  ;;  %1306 = vmatmul.bf16.vlgmr.msra.gmra.mxu3 %v1094_v34 }
 0x439   :  { %v980_v38 = vpop.f32.mrf.mxu2  ;;  %v994_v29 = vpop.f32.mrf.mxu3  ;;  %1403 = vmatpush.bf16.xpose.msra.mxu2 %v4332_v30  ;;  %1417 = vmatpush.bf16.xpose.msra.mxu3 %v4336_v32 }
 0x43a   :  { %v954_v40 = vpop.f32.mrf.mxu0  ;;  %v968_v37 = vpop.f32.mrf.mxu1  ;;  %v981_v49 = vadd.f32 %v980_v38, %v691_v31  ;;  %v995_v50 = vadd.f32 %v994_v29, %v692_v43 }
 0x43b   :  { %v955_v41 = vadd.f32 %v954_v40, %v689_v27  ;;  %v969_v42 = vadd.f32 %v968_v37, %v690_v28 }
 0x43c   :  { %v1065_v57 = vmax.f32 %v981_v49, 0.0  ;;  %v1066_v58 = vmax.f32 %v995_v50, 0.0 }
 0x43d   :  { %v1079_v45 = vmax.f32 %v955_v41, 0.0  ;;  %v1080_v46 = vmax.f32 %v969_v42, 0.0  ;;  %v4865_v41 = vld [vmem:[%s6181_s5 + $0x8] ss:$0 sm:$0xff] }
 0x43f   :  { %v1095_v47 = vpack.c.bf16 %v1079_v45, %v1063_v39  ;;  %v1096_v48 = vpack.c.bf16 %v1080_v46, %v1064_v44 }
 0x441   :  { %v982_v51 = vpop.f32.mrf.mxu2  ;;  %v996_v52 = vpop.f32.mrf.mxu3  ;;  %1320 = vmatmul.bf16.vlgmr.msrb.gmra.mxu0 %v1095_v47  ;;  %1334 = vmatmul.bf16.vlgmr.msra.gmra.mxu1 %v1096_v48 }
 0x442   :  { %v983_v2 = vadd.f32 %v982_v51, %v691_v31  ;;  %v997_v54 = vadd.f32 %v996_v52, %v692_v43  ;;  %v1008_v3 = vpop.f32.mrf.mxu0  ;;  %v1022_v56 = vpop.f32.mrf.mxu1 }
 0x443   :  { %v1009_v1 = vadd.f32 %v1008_v3, %v693_v55  ;;  %v1023_v4 = vadd.f32 %v1022_v56, %v694_v12 }
 0x444   :  { %v1081_v61 = vmax.f32 %v983_v2, 0.0  ;;  %v1082_v62 = vmax.f32 %v997_v54, 0.0 }
 0x445   :  { %v1067_v18 = vmax.f32 %v1009_v1, 0.0  ;;  %v1068_v19 = vmax.f32 %v1023_v4, 0.0 }
 0x446   :  { %v1097_v63 = vpack.c.bf16 %v1081_v61, %v1065_v57  ;;  %v1098_v0 = vpack.c.bf16 %v1082_v62, %v1066_v58 }
 0x448   :  { %1348 = vmatmul.bf16.vlgmr.msrb.gmra.mxu2 %v1097_v63  ;;  %1362 = vmatmul.bf16.vlgmr.msrb.gmra.mxu3 %v1098_v0 }
 0x449   :  { %v1036_v5 = vpop.f32.mrf.mxu2  ;;  %v1050_v6 = vpop.f32.mrf.mxu3  ;;  %4356 = vmatpush.msk.msrb.mxu3 %vm166_vm0, %v5522_v7 }
 0x44a   :  { %v1010_v8 = vpop.f32.mrf.mxu0  ;;  %v1024_v10 = vpop.f32.mrf.mxu1  ;;  %v1037_v24 = vadd.f32 %v1036_v5, %v695_v16  ;;  %v1051_v25 = vadd.f32 %v1050_v6, %v696_v17 }
 0x44b   :  { %v1011_v11 = vadd.f32 %v1010_v8, %v693_v55  ;;  %v1025_v14 = vadd.f32 %v1024_v10, %v694_v12  ;;  %1596 = vmatpush.msrb.mxu3 %v5526_v60 }
 0x44c   :  { %v1069_v32 = vmax.f32 %v1037_v24, 0.0  ;;  %v1070_v33 = vmax.f32 %v1051_v25, 0.0 }
 0x44d   :  { %v1083_v20 = vmax.f32 %v1011_v11, 0.0  ;;  %v1084_v21 = vmax.f32 %v1025_v14, 0.0 }
 0x44f   :  { %v1099_v22 = vpack.c.bf16 %v1083_v20, %v1067_v18  ;;  %v1100_v23 = vpack.c.bf16 %v1084_v21, %v1068_v19 }
 0x451   :  { %v1038_v26 = vpop.f32.mrf.mxu2  ;;  %v1052_v27 = vpop.f32.mrf.mxu3  ;;  %1376 = vmatmul.bf16.vlgmr.msra.gmra.mxu0 %v1099_v22  ;;  %1390 = vmatmul.bf16.vlgmr.msrb.gmra.mxu1 %v1100_v23 }
 0x452   :  { %v1039_v28 = vadd.f32 %v1038_v26, %v695_v16  ;;  %v1053_v30 = vadd.f32 %v1052_v27, %v696_v17 }
 0x454   :  { %v1085_v34 = vmax.f32 %v1039_v28, 0.0  ;;  %v1086_v35 = vmax.f32 %v1053_v30, 0.0 }
 0x456   :  { %v1101_v36 = vpack.c.bf16 %v1085_v34, %v1069_v32  ;;  %v1102_v15 = vpack.c.bf16 %v1086_v35, %v1070_v33 }
 0x458   :  { %1404 = vmatmul.bf16.vlgmr.msra.gmra.mxu2 %v1101_v36  ;;  %1418 = vmatmul.bf16.vlgmr.msra.gmra.mxu3 %v1102_v15 }
 0x459   :  { %4368 = vmatpush.msk.msra.mxu3 %vm166_vm0, %v5522_v7 }
 0x45b   :  { %1700 = vmatpush.msra.mxu3 %v5526_v60 }
 0x49e   :  { %v1209_v38 = vpop.f32.mrf.mxu0  ;;  %v1223_v29 = vpop.f32.mrf.mxu1 }
 0x49f   :  { %v1210_v43 = vadd.f32 %v4865_v41, %v1209_v38 }
 0x4a1   :  { %v1224_v45 = vadd.f32 %v1223_v29, %v1210_v43 }
 0x4a6   :  { %v1211_v40 = vpop.f32.mrf.mxu0  ;;  %v1225_v37 = vpop.f32.mrf.mxu1 }
 0x4a7   :  { %v1212_v49 = vadd.f32 %v4865_v41, %v1211_v40 }
 0x4a9   :  { %v1226_v52 = vadd.f32 %v1225_v37, %v1212_v49 }
 0x4ab   :  { %v1237_v42 = vpop.f32.mrf.mxu2  ;;  %v1251_v31 = vpop.f32.mrf.mxu3 }
 0x4ac   :  { %v1238_v46 = vadd.f32 %v1237_v42, %v1224_v45 }
 0x4ae   :  { %v1265_v39 = vpop.f32.mrf.mxu0  ;;  %v1279_v44 = vpop.f32.mrf.mxu1  ;;  %v1252_v50 = vadd.f32 %v1251_v31, %v1238_v46 }
 0x4b0   :  { %v1266_v54 = vadd.f32 %v1265_v39, %v1252_v50 }
 0x4b2   :  { %v1280_v58 = vadd.f32 %v1279_v44, %v1266_v54 }
 0x4b3   :  { %v1239_v47 = vpop.f32.mrf.mxu2  ;;  %v1253_v48 = vpop.f32.mrf.mxu3 }
 0x4b4   :  { %v1240_v3 = vadd.f32 %v1239_v47, %v1226_v52 }
 0x4b6   :  { %v1267_v51 = vpop.f32.mrf.mxu0  ;;  %v1281_v2 = vpop.f32.mrf.mxu1  ;;  %v1254_v61 = vadd.f32 %v1253_v48, %v1240_v3  ;;  %v4340_v3 = vld [vmem:[%s6180_s4 + $0x58] sm:$0x7f] }
 0x4b7   :  { %4350 = vmatpush.msk.msra.mxu1 %vm166_vm0, %v4340_v3 }
 0x4b8   :  { %v1268_v12 = vadd.f32 %v1267_v51, %v1254_v61  ;;  %v4341_v61 = vld [vmem:[%s6180_s4 + $0x60] sm:$0xff] }
 0x4ba   :  { %v1282_v5 = vadd.f32 %v1281_v2, %v1268_v12 }
 0x4bb   :  { %v1293_v56 = vpop.f32.mrf.mxu2  ;;  %v1307_v57 = vpop.f32.mrf.mxu3 }
 0x4bc   :  { %v1294_v55 = vadd.f32 %v1293_v56, %v1280_v58  ;;  %v4342_v56 = vld [vmem:[%s6180_s4 + $0x68] sm:$0x7f]  ;;  %v4339_v58 = vld [vmem:[%s6180_s4 + $0x50] sm:$0xff] }
 0x4bd   :  { %4353 = vmatpush.msk.msrb.mxu2 %vm166_vm0, %v4342_v56  ;;  %1540 = vmatpush.msra.mxu1 %v4339_v58 }
 0x4be   :  { %v1321_v62 = vpop.f32.mrf.mxu0  ;;  %v1335_v63 = vpop.f32.mrf.mxu1  ;;  %v1308_v4 = vadd.f32 %v1307_v57, %v1294_v55  ;;  %v4337_v57 = vld [vmem:[%s6180_s4 + $0x40] sm:$0xff]  ;;  %v4934_v55 = vld [vmem:[#allocation7 + $0x8] sm:$0xff] }
 0x4bf   :  { %1567 = vmatpush.msrb.mxu2 %v4341_v61  ;;  %4362 = vmatpush.msk.msrb.mxu1 %vm166_vm0, %v5522_v7 }
 0x4c0   :  { %v1322_v8 = vadd.f32 %v1321_v62, %v1308_v4  ;;  %v4933_v62 = vld [vmem:[#allocation7 + $0x18] sm:$0x7f] }
 0x4c1   :  { %4365 = vmatpush.msk.msra.mxu2 %vm166_vm0, %v4933_v62  ;;  %1648 = vmatpush.msrb.mxu1 %v5526_v60 }
 0x4c2   :  { %v1336_v16 = vadd.f32 %v1335_v63, %v1322_v8 }
 0x4c3   :  { %v1295_v0 = vpop.f32.mrf.mxu2  ;;  %v1309_v1 = vpop.f32.mrf.mxu3  ;;  %1671 = vmatpush.msra.mxu2 %v4934_v55 }
 0x4c4   :  { %v1296_v10 = vadd.f32 %v1295_v0, %v1282_v5 }
 0x4c6   :  { %v1323_v6 = vpop.f32.mrf.mxu0  ;;  %v1310_v17 = vadd.f32 %v1309_v1, %v1296_v10  ;;  %v1337_v18 = vpop.f32.mrf.mxu1 }
 0x4c8   :  { %v1324_v20 = vadd.f32 %v1323_v6, %v1310_v17 }
 0x4ca   :  { %v1338_v25 = vadd.f32 %v1337_v18, %v1324_v20 }
 0x4cb   :  { %v1349_v11 = vpop.f32.mrf.mxu2  ;;  %v1363_v14 = vpop.f32.mrf.mxu3 }
 0x4cc   :  { %v1350_v19 = vadd.f32 %v1349_v11, %v1336_v16 }
 0x4ce   :  { %v1377_v21 = vpop.f32.mrf.mxu0  ;;  %v1364_v22 = vadd.f32 %v1363_v14, %v1350_v19  ;;  %v1391_v28 = vpop.f32.mrf.mxu1  ;;  %v4935_v19 = vld [vmem:[%s6181_s5] sm:$0xff] }
 0x4cf   :  { %v1470_v20 = vperm.slane %v4935_v19, 6 }
 0x4d0   :  { %v1378_v26 = vadd.f32 %v1377_v21, %v1364_v22 }
 0x4d2   :  { %v1392_v30 = vadd.f32 %v1391_v28, %v1378_v26 }
 0x4d3   :  { %v1351_v23 = vpop.f32.mrf.mxu2  ;;  %v1365_v24 = vpop.f32.mrf.mxu3 }
 0x4d4   :  { %v1352_v27 = vadd.f32 %v1351_v23, %v1338_v25 }
 0x4d6   :  { %v1366_v32 = vadd.f32 %v1365_v24, %v1352_v27  ;;  %v1379_v33 = vpop.f32.mrf.mxu0  ;;  %v1393_v40 = vpop.f32.mrf.mxu1  ;;  %v1473_v24 = vperm.slane %v4935_v19, 7 }
 0x4d8   :  { %v1380_v15 = vadd.f32 %v1379_v33, %v1366_v32 }
 0x4da   :  { %v1394_v37 = vadd.f32 %v1393_v40, %v1380_v15 }
 0x4db   :  { %v1405_v34 = vpop.f32.mrf.mxu2  ;;  %v1419_v35 = vpop.f32.mrf.mxu3 }
 0x4dc   :  { %v1406_v36 = vadd.f32 %v1405_v34, %v1392_v30 }
 0x4de   :  { %v1420_v38 = vadd.f32 %v1419_v35, %v1406_v36 }
 0x4e0   :  { %v1424_v29 = vadd.f32 %v1420_v38, %v5444_v13 }
 0x4e2   :  { %v1426_v41 = vsel %vm159_vm1, %v1424_v29, 0.0 }
 0x4e3   :  { %v1407_v42 = vpop.f32.mrf.mxu2  ;;  %1427 = vadd.xlane.f32.xlu2 %v1426_v41  ;;  %v1421_v43 = vpop.f32.mrf.mxu3 }
 0x4e4   :  { %v1408_v31 = vadd.f32 %v1407_v42, %v1394_v37 }
 0x4e6   :  { %v1422_v39 = vadd.f32 %v1421_v43, %v1408_v31 }
 0x4e8   :  { %v1425_v44 = vadd.f32 %v1422_v39, %v5446_v59  ;;  %v4338_v59 = vld [vmem:[%s6180_s4 + $0x48] sm:$0x7f] }
 0x4e9   :  { %4347 = vmatpush.msk.msrb.mxu0 %vm166_vm0, %v4338_v59 }
 0x4ea   :  { %v1429_v45 = vsel %vm159_vm1, %v1425_v44, 0.0 }
 0x4eb   :  { %1430 = vadd.xlane.f32.xlu2 %v1429_v45  ;;  %1513 = vmatpush.msrb.mxu0 %v4337_v57  ;;  %v5625_v57 = vld [vmem:[#allocation8] sm:$0xff] }
 0x4ed   :  { %4359 = vmatpush.msk.msra.mxu0 %vm166_vm0, %v4933_v62 }
 0x4ef   :  { %1619 = vmatpush.msra.mxu0 %v4934_v55 }
 0x556   :  { %v1428_v46 = vpop.xlane.xlu2 %1427 }
 0x557   :  { %v1432_v47 = vmul.f32 %v1428_v46, %v5341_v53 }
 0x559   :  { %v1434_v48 = vsub.f32 %v1424_v29, %v1432_v47 }
 0x55b   :  { %v1436_v49 = vmul.f32 %v1434_v48, %v1434_v48 }
 0x55d   :  { %v1438_v13 = vsel %vm159_vm1, %v1436_v49, 0.0  ;;  %v5617_v49 = vld [vmem:[#allocation8 + $0x8] sm:$0xff] }
 0x55e   :  { %1439 = vadd.xlane.f32.xlu0 %v1438_v13  ;;  %v1431_v50 = vpop.xlane.xlu2 %1430 }
 0x55f   :  { %v1433_v51 = vmul.f32 %v1431_v50, %v5341_v53 }
 0x561   :  { %v1435_v52 = vsub.f32 %v1425_v44, %v1433_v51  ;;  %v5620_v51 = vld [vmem:[#allocation8 + $0x18] sm:$0xff] }
 0x563   :  { %v1437_v2 = vmul.f32 %v1435_v52, %v1435_v52 }
 0x565   :  { %v1441_v54 = vsel %vm159_vm1, %v1437_v2, 0.0 }
 0x566   :  { %1442 = vadd.xlane.f32.xlu1 %v1441_v54 }
 0x5d1   :  { %v1440_v12 = vpop.xlane.xlu0 %1439 }
 0x5d2   :  { %v1444_v63 = vmul.f32 %v1440_v12, %v5341_v53 }
 0x5d4   :  { %v1446_v0 = vadd.f32 1e-05, %v1444_v63 }
 0x5d6   :  { %4887 = vrsqrt.f32 %v1446_v0  ;;  %vm1454_vm12 = vweird.f32 %v1446_v0 }
 0x5d9   :  { %v1443_v1 = vpop.xlane.xlu1 %1442 }
 0x5da   :  { %v1445_v4 = vmul.f32 %v1443_v1, %v5341_v53 }
 0x5dc   :  { %v4888_v5 = vpop.eup %4887  ;;  %v1447_v6 = vadd.f32 1e-05, %v1445_v4 }
 0x5dd   :  { %v1449_v8 = vmul.f32 %v4888_v5, %v1446_v0  ;;  %vm1455_vm11 = vweird.f32 %v4888_v5 }
 0x5de   :  { %4889 = vrsqrt.f32 %v1447_v6  ;;  %vm1456_vm13 = vmor %vm1454_vm12, %vm1455_vm11  ;;  %vm1464_vm15 = vweird.f32 %v1447_v6 }
 0x5df   :  { %v1450_v10 = vmul.f32 %v4888_v5, %v1449_v8 }
 0x5e1   :  { %v1451_v11 = vmul.f32 0.5, %v1450_v10 }
 0x5e3   :  { %v1452_v14 = vsub.f32 1.5, %v1451_v11 }
 0x5e4   :  { %v4890_v16 = vpop.eup %4889 }
 0x5e5   :  { %v1453_v17 = vmul.f32 %v4888_v5, %v1452_v14  ;;  %v1459_v18 = vmul.f32 %v4890_v16, %v1447_v6  ;;  %vm1465_vm14 = vweird.f32 %v4890_v16 }
 0x5e6   :  { %vm1466_vm3 = vmor %vm1464_vm15, %vm1465_vm14 }
 0x5e7   :  { %v1457_v21 = vsel %vm1456_vm13, %v4888_v5, %v1453_v17  ;;  %v1460_v22 = vmul.f32 %v4890_v16, %v1459_v18 }
 0x5e8   :  { %v1468_v23 = vmul.f32 %v1457_v21, %v1434_v48 }
 0x5e9   :  { %v1461_v25 = vmul.f32 0.5, %v1460_v22  ;;  %v4941_v22 = vld [vmem:[#allocation5 + $0x18] sm:$0xff] }
 0x5ea   :  { %v1471_v26 = vmul.f32 %v1470_v20, %v1468_v23 }
 0x5eb   :  { %v1462_v27 = vsub.f32 1.5, %v1461_v25 }
 0x5ec   :  { %v5576_v28 = vadd.f32 %v1473_v24, %v1471_v26 }
 0x5ed   :  { %v1463_v30 = vmul.f32 %v4890_v16, %v1462_v27 }
 0x5ee   :  { %4348 = vmatmul.msk.f32.vlgmr.msrb.gmra.mxu0 %vm159_vm1, %v5576_v28  ;;  %4351 = vmatmul.msk.f32.vlgmr.msra.gmra.mxu1 %vm159_vm1, %v5576_v28 }
 0x5ef   :  { %v1467_v32 = vsel %vm1466_vm3, %v4890_v16, %v1463_v30  ;;  %4354 = vmatmul.msk.f32.vlgmr.msrb.gmra.mxu2 %vm159_vm1, %v5576_v28  ;;  %4371 = vmatpush.msk.msrb.mxu0 %vm166_vm0, %v4933_v62 }
 0x5f0   :  { %v1469_v33 = vmul.f32 %v1467_v32, %v1435_v52  ;;  %4374 = vmatpush.xpose.msk.msrb.mxu2 %vm420_vm2, %v4933_v62  ;;  %1851 = vmatpush.xpose.msra.mxu1 %v5522_v7  ;;  %v5600_v7 = vld [vmem:[%s6181_s5 + $0x10] sm:$0xff]  ;;  %v5628_v62 = vld [vmem:[#allocation8 + $0x10] sm:$0xff] }
 0x5f1   :  { %1723 = vmatpush.msrb.mxu0 %v4934_v55  ;;  %v1488_v36 = vperm.slane %v5600_v7, 0  ;;  %v1521_v15 = vperm.slane %v5600_v7, 1  ;;  %v1548_v39 = vperm.slane %v5600_v7, 2 }
 0x5f2   :  { %v1472_v34 = vmul.f32 %v1470_v20, %v1469_v33  ;;  %v4940_v20 = vld [vmem:[#allocation5 + $0x8] sm:$0xff] }
 0x5f4   :  { %v5587_v35 = vadd.f32 %v1473_v24, %v1472_v34  ;;  %4375 = vmatpush.xpose.msk.msrb.mxu2 %vm420_vm2, %v4934_v55  ;;  %1852 = vmatpush.xpose.msra.mxu1 %v5526_v60  ;;  %v4942_v34 = vld [vmem:[#allocation5 + $0x10] sm:$0xff] }
 0x5f6   :  { %4349 = vmatmul.msk.f32.gmra.mxu0 %vm159_vm1, %v5587_v35  ;;  %4352 = vmatmul.msk.f32.gmra.mxu1 %vm159_vm1, %v5587_v35 }
 0x5f7   :  { %4355 = vmatmul.msk.f32.gmra.mxu2 %vm159_vm1, %v5587_v35 }
 0x66b   :  { %v1515_v38 = vpop.f32.mrf.mxu0  ;;  %v1542_v60 = vpop.f32.mrf.mxu1 }
 0x66c   :  { %v1516_v29 = vadd.f32 %v1515_v38, %v1488_v36  ;;  %v1543_v40 = vadd.f32 %v1542_v60, %v1521_v15  ;;  %v4943_v38 = vld [vmem:[#allocation5] sm:$0xff] }
 0x66e   :  { %4357 = vmatmul.msk.f32.vlgmr.msrb.gmra.mxu3 %vm159_vm1, %v1516_v29  ;;  %4360 = vmatmul.msk.f32.vlgmr.msra.gmra.mxu0 %vm159_vm1, %v1516_v29 }
 0x66f   :  { %4363 = vmatmul.msk.f32.vlgmr.msrb.gmra.mxu1 %vm159_vm1, %v1543_v40  ;;  %4366 = vmatmul.msk.f32.vlgmr.msra.gmra.mxu2 %vm159_vm1, %v1543_v40 }
 0x672   :  { %v1569_v43 = vpop.f32.mrf.mxu2 }
 0x673   :  { %v1518_v37 = vpop.f32.mrf.mxu0  ;;  %v1545_v41 = vpop.f32.mrf.mxu1  ;;  %v1570_v44 = vadd.f32 %v1569_v43, %v1548_v39 }
 0x674   :  { %v1519_v42 = vadd.f32 %v1518_v37, %v1488_v36  ;;  %v1546_v31 = vadd.f32 %v1545_v41, %v1521_v15 }
 0x676   :  { %4358 = vmatmul.msk.f32.gmra.mxu3 %vm159_vm1, %v1519_v42  ;;  %4361 = vmatmul.msk.f32.gmra.mxu0 %vm159_vm1, %v1519_v42 }
 0x677   :  { %4364 = vmatmul.msk.f32.gmra.mxu1 %vm159_vm1, %v1546_v31  ;;  %4367 = vmatmul.msk.f32.gmra.mxu2 %vm159_vm1, %v1546_v31 }
 0x67a   :  { %v1572_v45 = vpop.f32.mrf.mxu2 }
 0x67b   :  { %v1573_v46 = vadd.f32 %v1572_v45, %v1548_v39 }
 0x67e   :  { %4369 = vmatmul.msk.f32.vlgmr.msra.gmra.mxu3 %vm159_vm1, %v1570_v44  ;;  %4372 = vmatmul.msk.f32.vlgmr.msrb.gmra.mxu0 %vm159_vm1, %v1570_v44 }
 0x686   :  { %4370 = vmatmul.msk.f32.gmra.mxu3 %vm159_vm1, %v1573_v46  ;;  %4373 = vmatmul.msk.f32.gmra.mxu0 %vm159_vm1, %v1573_v46 }
 0x6eb   :  { %v1621_v47 = vpop.f32.mrf.mxu0 }
 0x6ec   :  { %v1732_v13 = vmul.f32 %v5617_v49, %v1621_v47  ;;  %v1650_v4 = vpop.f32.mrf.mxu1 }
 0x6ee   :  { %v1742_v2 = vsel %vm420_vm2, %v1732_v13, 0.0 }
 0x6f1   :  { %v1598_v48 = vpop.f32.mrf.mxu3 }
 0x6f2   :  { %v1731_v58 = vmul.f32 %v5625_v57, %v1598_v48  ;;  %v1673_v61 = vpop.f32.mrf.mxu2 }
 0x6f3   :  { %v1624_v50 = vpop.f32.mrf.mxu0 }
 0x6f4   :  { %v1734_v52 = vmul.f32 %v5620_v51, %v1624_v50  ;;  %v1653_v25 = vpop.f32.mrf.mxu1 }
 0x6f6   :  { %v1743_v54 = vsel %vm420_vm2, %v1734_v52, 0.0 }
 0x6f7   :  { %v1744_v59 = vadd.f32 %v1743_v54, %v1742_v2 }
 0x6f9   :  { %v1745_v3 = vrot.slane %v1744_v59, 4  ;;  %v1601_v56 = vpop.f32.mrf.mxu3 }
 0x6fa   :  { %v1733_v55 = vmul.f32 %v5628_v62, %v1601_v56  ;;  %v1676_v16 = vpop.f32.mrf.mxu2 }
 0x6fb   :  { %v1746_v12 = vadd.f32 %v1745_v3, %v1744_v59  ;;  %v1725_v47 = vpop.f32.mrf.mxu0 }
 0x6fc   :  { %v1735_v63 = vadd.f32 %v1733_v55, %v1731_v58 }
 0x6fd   :  { %v1747_v0 = vrot.slane %v1746_v12, 2 }
 0x6fe   :  { %v1736_v1 = vrot.slane %v1735_v63, 4 }
 0x6ff   :  { %v1748_v5 = vadd.f32 %v1747_v0, %v1746_v12 }
 0x700   :  { %v1737_v6 = vadd.f32 %v1736_v1, %v1735_v63 }
 0x701   :  { %v1749_v8 = vrot.slane %v1748_v5, 1  ;;  %v1702_v3 = vpop.f32.mrf.mxu3 }
 0x702   :  { %v1738_v10 = vrot.slane %v1737_v6, 2 }
 0x703   :  { %v1750_v11 = vadd.f32 %v1749_v8, %v1748_v5  ;;  %v1728_v55 = vpop.f32.mrf.mxu0 }
 0x704   :  { %v1739_v14 = vadd.f32 %v1738_v10, %v1737_v6 }
 0x705   :  { %v1752_v17 = vmul.f32 %v1750_v11, %v1673_v61  ;;  %v1754_v18 = vmul.f32 %v1750_v11, %v1676_v16 }
 0x706   :  { %v1740_v19 = vrot.slane %v1739_v14, 1 }
 0x707   :  { %v1756_v21 = vadd.f32 %v4940_v20, %v1752_v17  ;;  %v1758_v23 = vadd.f32 %v4941_v22, %v1754_v18 }
 0x708   :  { %v1741_v24 = vadd.f32 %v1740_v19, %v1739_v14 }
 0x709   :  { %v1766_v26 = vsel %vm420_vm2, %v1756_v21, -inf  ;;  %v1767_v27 = vsel %vm420_vm2, %v1758_v23, -inf  ;;  %v1705_v18 = vpop.f32.mrf.mxu3 }
 0x70a   :  { %v1751_v30 = vmul.f32 %v1741_v24, %v1650_v4  ;;  %v1753_v32 = vmul.f32 %v1741_v24, %v1653_v25  ;;  %v1768_v33 = vmax.f32 %v1766_v26, %v1767_v27  ;;  %v4343_v24 = vld [vmem:[%s6180_s4 + $0x70] sm:$0xff] }
 0x70c   :  { %v1757_v36 = vadd.f32 %v4942_v34, %v1753_v32  ;;  %v1769_v15 = vrot.slane %v1768_v33, 4  ;;  %v1755_v60 = vadd.f32 %v4943_v38, %v1751_v30 }
 0x70e   :  { %v1770_v29 = vmax.f32 %v1768_v33, %v1769_v15  ;;  %v1759_v40 = vmax.f32 %v1755_v60, %v1757_v36 }
 0x710   :  { %v1771_v37 = vrot.slane %v1770_v29, 2  ;;  %v1760_v41 = vrot.slane %v1759_v40, 4 }
 0x712   :  { %v1772_v42 = vmax.f32 %v1770_v29, %v1771_v37  ;;  %v1761_v31 = vmax.f32 %v1759_v40, %v1760_v41 }
 0x714   :  { %v1773_v43 = vrot.slane %v1772_v42, 1  ;;  %v1762_v39 = vrot.slane %v1761_v31, 2 }
 0x716   :  { %v1774_v44 = vmax.f32 %v1772_v42, %v1773_v43  ;;  %v1763_v45 = vmax.f32 %v1761_v31, %v1762_v39 }
 0x718   :  { %v1778_v46 = vsub.f32 %v1758_v23, %v1774_v44  ;;  %v1776_v48 = vsub.f32 %v1756_v21, %v1774_v44  ;;  %v1764_v13 = vrot.slane %v1763_v45, 1  ;;  %v4344_v23 = vld [vmem:[%s6180_s4 + $0x78] sm:$0x7f] }
 0x719   :  { %4378 = vmatpush.msk.msrb.mxu3 %vm166_vm0, %v4344_v23 }
 0x71a   :  { %v1785_v50 = vmul.f32 1.442695, %v1778_v46  ;;  %v1781_v52 = vmul.f32 1.442695, %v1776_v48  ;;  %v1765_v2 = vmax.f32 %v1763_v45, %v1764_v13 }
 0x71b   :  { %1908 = vmatpush.msrb.mxu3 %v4343_v24  ;;  %v4411_v24 = vld [vmem:[%s6182_s6 + $0xc8] sm:$0xf0] }
 0x71c   :  { %4891 = vpow2.f32 %v1785_v50  ;;  %v1775_v54 = vsub.f32 %v1755_v60, %v1765_v2  ;;  %v1777_v59 = vsub.f32 %v1757_v36, %v1765_v2 }
 0x71d   :  { %4893 = vpow2.f32 %v1781_v52 }
 0x71e   :  { %v1779_v56 = vmul.f32 1.442695, %v1775_v54  ;;  %v1783_v58 = vmul.f32 1.442695, %v1777_v59 }
 0x720   :  { %4895 = vpow2.f32 %v1779_v56 }
 0x721   :  { %4897 = vpow2.f32 %v1783_v58 }
 0x722   :  { %v4892_v61 = vpop.eup %4891 }
 0x723   :  { %v4894_v12 = vpop.eup %4893  ;;  %v1795_v63 = vsel %vm420_vm2, %v4892_v61, 0.0  ;;  %v1806_v0 = vmul.f32 %v4892_v61, %v1728_v55 }
 0x724   :  { %v1794_v1 = vsel %vm420_vm2, %v4894_v12, 0.0  ;;  %v1804_v4 = vmul.f32 %v4894_v12, %v1725_v47 }
 0x725   :  { %v1796_v5 = vadd.f32 %v1795_v63, %v1794_v1  ;;  %v1815_v6 = vsel %vm420_vm2, %v1806_v0, 0.0 }
 0x726   :  { %v4896_v8 = vpop.eup %4895  ;;  %v1814_v10 = vsel %vm420_vm2, %v1804_v4, 0.0 }
 0x727   :  { %v4898_v11 = vpop.eup %4897  ;;  %v1797_v14 = vrot.slane %v1796_v5, 4  ;;  %v1803_v16 = vmul.f32 %v4896_v8, %v1702_v3  ;;  %v1816_v17 = vadd.f32 %v1815_v6, %v1814_v10 }
 0x728   :  { %v1787_v19 = vadd.f32 %v4898_v11, %v4896_v8  ;;  %v1805_v20 = vmul.f32 %v4898_v11, %v1705_v18 }
 0x729   :  { %v1798_v21 = vadd.f32 %v1797_v14, %v1796_v5  ;;  %v1817_v22 = vrot.slane %v1816_v17, 4 }
 0x72a   :  { %v1788_v25 = vrot.slane %v1787_v19, 4  ;;  %v1807_v26 = vadd.f32 %v1805_v20, %v1803_v16  ;;  %v4793_v20 = vld [vmem:[%s6182_s6 + $0xc4] sm:$0xf0] }
 0x72b   :  { %v1799_v27 = vrot.slane %v1798_v21, 2  ;;  %v1818_v30 = vadd.f32 %v1817_v22, %v1816_v17 }
 0x72c   :  { %v1789_v32 = vadd.f32 %v1788_v25, %v1787_v19  ;;  %v1808_v33 = vrot.slane %v1807_v26, 4  ;;  %v4409_v19 = vld [vmem:[%s6182_s6 + $0x88] sm:$0xf]  ;;  %v4401_v25 = vld [vmem:[%s6182_s6 + $0x80] sm:$0xf] }
 0x72d   :  { %v1800_v34 = vadd.f32 %v1799_v27, %v1798_v21  ;;  %v1819_v36 = vrot.slane %v1818_v30, 2  ;;  %v4785_v21 = vld [vmem:[%s6182_s6 + $0x8c] sm:$0xf]  ;;  %v4410_v23 = vor.u32 %v4793_v20, %v4409_v19  ;;  %v4796_v20 = vld [vmem:[%s6182_s6 + $0xdc] sm:$0xf0] }
 0x72e   :  { %v1790_v15 = vrot.slane %v1789_v32, 2  ;;  %v1809_v38 = vadd.f32 %v1808_v33, %v1807_v26  ;;  %v4792_v26 = vld [vmem:[%s6182_s6 + $0xbc] sm:$0xf0]  ;;  %v4784_v33 = vld [vmem:[%s6182_s6 + $0x84] sm:$0xf] }
 0x72f   :  { %v1801_v60 = vrot.slane %v1800_v34, 1  ;;  %v1820_v29 = vadd.f32 %v1819_v36, %v1818_v30  ;;  %v4414_v30 = vor.u32 %v4785_v21, %v4411_v24  ;;  %v2098_v36 = vand.u32 %v4410_v23, %v5369_v9  ;;  %v4788_v21 = vld [vmem:[%s6182_s6 + $0xa4] sm:$0xf] }
 0x730   :  { %v1791_v40 = vadd.f32 %v1790_v15, %v1789_v32  ;;  %v1810_v37 = vrot.slane %v1809_v38, 2  ;;  %v4402_v32 = vor.u32 %v4792_v26, %v4401_v25 }
 0x731   :  { %v1802_v41 = vadd.f32 %v1801_v60, %v1800_v34  ;;  %v1821_v43 = vrot.slane %v1820_v29, 1  ;;  %v4403_v34 = vld [vmem:[%s6182_s6 + $0xc0] sm:$0xf0]  ;;  %v2101_v60 = vand.u32 %v4414_v30, %v5369_v9  ;;  %2174 = vmatpush.bf16.msra.mxu2 %v2098_v36 }
 0x732   :  { %v1792_v42 = vrot.slane %v1791_v40, 1  ;;  %v1811_v31 = vadd.f32 %v1810_v37, %v1809_v38  ;;  %v4406_v15 = vor.u32 %v4784_v33, %v4403_v34 }
 0x733   :  { %4899 = vrcp.f32 %v1802_v41  ;;  %v1822_v45 = vadd.f32 %v1821_v43, %v1820_v29  ;;  %v2092_v29 = vand.u32 %v4402_v32, %v5369_v9  ;;  %2188 = vmatpush.bf16.msra.mxu3 %v2101_v60  ;;  %v4425_v41 = vld [vmem:[%s6182_s6 + $0x98] sm:$0xf] }
 0x734   :  { %v1793_v39 = vadd.f32 %v1792_v42, %v1791_v40  ;;  %v1812_v44 = vrot.slane %v1811_v31, 1  ;;  %v2095_v40 = vand.u32 %v4406_v15, %v5369_v9  ;;  %v4795_v42 = vld [vmem:[%s6182_s6 + $0xd4] sm:$0xf0] }
 0x735   :  { %2146 = vmatpush.bf16.msra.mxu0 %v2092_v29  ;;  %v4799_v60 = vld [vmem:[%s6182_s6 + $0xf4] sm:$0xf0]  ;;  %v4791_v29 = vld [vmem:[%s6182_s6 + $0xbc] sm:$0xf] }
 0x736   :  { %4901 = vrcp.f32 %v1793_v39  ;;  %v1813_v48 = vadd.f32 %v1812_v44, %v1811_v31  ;;  %2160 = vmatpush.bf16.msrb.mxu1 %v2095_v40  ;;  %v4787_v31 = vld [vmem:[%s6182_s6 + $0x9c] sm:$0xf]  ;;  %v4426_v39 = vor.u32 %v4795_v42, %v4425_v41  ;;  %v4798_v41 = vld [vmem:[%s6182_s6 + $0xec] sm:$0xf0]  ;;  %v4790_v42 = vld [vmem:[%s6182_s6 + $0xb4] sm:$0xf] }
 0x737   :  { %v4427_v44 = vld [vmem:[%s6182_s6 + $0xd8] sm:$0xf0] }
 0x738   :  { %v4459_v40 = vld [vmem:[%s6182_s6 + $0xf8] sm:$0xf0] }
 0x739   :  { %v4900_v46 = vpop.eup %4899 }
 0x73a   :  { %v1826_v47 = vmul.f32 %v4900_v46, %v1822_v45  ;;  %v4417_v45 = vld [vmem:[%s6182_s6 + $0x90] sm:$0xf] }
 0x73b   :  { %v4794_v46 = vld [vmem:[%s6182_s6 + $0xcc] sm:$0xf0] }
 0x73c   :  { %v4902_v13 = vpop.eup %4901  ;;  %v1828_v50 = vmul.f32 %v5617_v49, %v1826_v47  ;;  %v1830_v54 = vmul.f32 %v5620_v51, %v1826_v47  ;;  %v4430_v47 = vor.u32 %v4787_v31, %v4427_v44  ;;  %v4451_v31 = vld [vmem:[%s6182_s6 + $0xf0] sm:$0xf0] }
 0x73d   :  { %v1825_v52 = vmul.f32 %v4902_v13, %v1813_v48  ;;  %v4418_v48 = vor.u32 %v4794_v46, %v4417_v45  ;;  %v4786_v13 = vld [vmem:[%s6182_s6 + $0x94] sm:$0xf]  ;;  %v4454_v45 = vor.u32 %v4790_v42, %v4451_v31 }
 0x73e   :  { %4376 = vmatmul.msk.f32.vlgmr.msrb.gmra.mxu2 %vm420_vm2, %v1828_v50  ;;  %v4419_v50 = vld [vmem:[%s6182_s6 + $0xd0] sm:$0xf0] }
 0x73f   :  { %v1827_v2 = vmul.f32 %v5625_v57, %v1825_v52  ;;  %v1829_v59 = vmul.f32 %v5628_v62, %v1825_v52  ;;  %v1883_v57 = vperm.slane %v5600_v7, 3 }
 0x741   :  { %1853 = vmatmul.f32.vlgmr.msra.gmra.mxu1 %v1827_v2 }
 0x746   :  { %4377 = vmatmul.msk.f32.gmra.mxu2 %vm420_vm2, %v1830_v54  ;;  %v2110_v54 = vand.u32 %v4426_v39, %v5369_v9  ;;  %v4462_v39 = vor.u32 %v4791_v29, %v4459_v40 }
 0x748   :  { %2230 = vmatpush.bf16.msrb.mxu2 %v2110_v54  ;;  %v4481_v54 = vld [vmem:[#allocation10 + $0x80] sm:$0xf] }
 0x749   :  { %1856 = vmatmul.f32.gmra.mxu1 %v1829_v59  ;;  %v4422_v59 = vor.u32 %v4786_v13, %v4419_v50  ;;  %v2131_v13 = vand.u32 %v4454_v45, %v5369_v9  ;;  %v4489_v50 = vld [vmem:[#allocation10 + $0x88] sm:$0xf] }
 0x74a   :  { %v4521_v45 = vld [vmem:[#allocation10 + $0xa8] sm:$0xf] }
 0x7be   :  { %v1854_v3 = vpop.f32.mrf.mxu1 }
 0x7c1   :  { %v1877_v56 = vpop.f32.mrf.mxu2 }
 0x7c2   :  { %v1878_v58 = vadd.f32 %v1877_v56, %v1854_v3  ;;  %v2113_v56 = vand.u32 %v4430_v47, %v5369_v9  ;;  %v2137_v47 = vand.u32 %v4462_v39, %v5369_v9 }
 0x7c4   :  { %4379 = vmatmul.msk.f32.vlgmr.msrb.gmra.mxu3 %vm159_vm1, %v1878_v58  ;;  %v2104_v58 = vand.u32 %v4418_v48, %v5369_v9 }
 0x7c5   :  { %2244 = vmatpush.bf16.msrb.mxu3 %v2113_v56  ;;  %v4800_v56 = vld [vmem:[#allocation10 + $0x84] sm:$0xf] }
 0x7c6   :  { %v1857_v61 = vpop.f32.mrf.mxu1  ;;  %2202 = vmatpush.bf16.msrb.mxu0 %v2104_v58  ;;  %v4483_v58 = vld [vmem:[#allocation10 + $0xc0] sm:$0xf0] }
 0x7c9   :  { %v1880_v49 = vpop.f32.mrf.mxu2 }
 0x7ca   :  { %v1881_v55 = vadd.f32 %v1880_v49, %v1857_v61  ;;  %v2107_v61 = vand.u32 %v4422_v59, %v5369_v9  ;;  %v4808_v59 = vld [vmem:[#allocation10 + $0xbc] sm:$0xf0] }
 0x7cc   :  { %4380 = vmatmul.msk.f32.gmra.mxu3 %vm159_vm1, %v1881_v55  ;;  %2216 = vmatpush.bf16.msra.mxu1 %v2107_v61  ;;  %v4486_v61 = vor.u32 %v4800_v56, %v4483_v58 }
 0x847   :  { %v1910_v12 = vpop.f32.mrf.mxu3 }
 0x848   :  { %v1911_v63 = vadd.f32 %v1910_v12, %v1883_v57 }
 0x84a   :  { %v1916_v51 = vadd.f32 %v1911_v63, %v5576_v28 }
 0x84c   :  { %v1918_v0 = vsel %vm159_vm1, %v1916_v51, 0.0 }
 0x84d   :  { %1919 = vadd.xlane.f32.xlu2 %v1918_v0 }
 0x84f   :  { %v1913_v62 = vpop.f32.mrf.mxu3 }
 0x850   :  { %v1914_v1 = vadd.f32 %v1913_v62, %v1883_v57 }
 0x852   :  { %v1917_v4 = vadd.f32 %v1914_v1, %v5587_v35 }
 0x854   :  { %v1921_v5 = vsel %vm159_vm1, %v1917_v4, 0.0 }
 0x855   :  { %1922 = vadd.xlane.f32.xlu0 %v1921_v5  ;;  %v1962_v5 = vperm.slane %v5600_v7, 4 }
 0x8c0   :  { %v1920_v6 = vpop.xlane.xlu2 %1919 }
 0x8c1   :  { %v1924_v8 = vmul.f32 %v1920_v6, %v5341_v53 }
 0x8c3   :  { %v5658_v10 = vsub.f32 %v1916_v51, %v1924_v8 }
 0x8c5   :  { %v1928_v11 = vmul.f32 %v5658_v10, %v5658_v10 }
 0x8c7   :  { %v1930_v28 = vsel %vm159_vm1, %v1928_v11, 0.0  ;;  %v1965_v11 = vperm.slane %v5600_v7, 5  ;;  %v4433_v7 = vld [vmem:[%s6182_s6 + $0xa0] sm:$0xf] }
 0x8c8   :  { %1931 = vadd.xlane.f32.xlu1 %v1930_v28  ;;  %v1923_v14 = vpop.xlane.xlu0 %1922  ;;  %v4441_v28 = vld [vmem:[%s6182_s6 + $0xa8] sm:$0xf]  ;;  %v4434_v26 = vor.u32 %v4796_v20, %v4433_v7 }
 0x8c9   :  { %v1925_v16 = vmul.f32 %v1923_v14, %v5341_v53  ;;  %v4797_v14 = vld [vmem:[%s6182_s6 + $0xe4] sm:$0xf0] }
 0x8ca   :  { %v4442_v24 = vor.u32 %v4797_v14, %v4441_v28  ;;  %v2116_v36 = vand.u32 %v4434_v26, %v5369_v9  ;;  %v5812_v14 = vld [vmem:[%s6183_s7 + $0x1] ss:$4 sm:$0xff] }
 0x8cb   :  { %v5664_v17 = vsub.f32 %v1917_v4, %v1925_v16  ;;  %v1993_v7 = vperm.slane %v5812_v14, 1  ;;  %v1996_v58 = vperm.slane %v5812_v14, 4 }
 0x8cc   :  { %v2122_v33 = vand.u32 %v4442_v24, %v5369_v9  ;;  %v4513_v24 = vld [vmem:[#allocation10 + $0xa0] sm:$0xf] }
 0x8cd   :  { %v1929_v35 = vmul.f32 %v5664_v17, %v5664_v17 }
 0x8cf   :  { %v1933_v18 = vsel %vm159_vm1, %v1929_v35, 0.0  ;;  %v4789_v35 = vld [vmem:[%s6182_s6 + $0xac] sm:$0xf] }
 0x8d0   :  { %1934 = vadd.xlane.f32.xlu2 %v1933_v18 }
 0x93b   :  { %v1932_v22 = vpop.xlane.xlu1 %1931 }
 0x93c   :  { %v1936_v27 = vmul.f32 %v1932_v22, %v5341_v53  ;;  %v4435_v22 = vld [vmem:[%s6182_s6 + $0xe0] sm:$0xf0] }
 0x93e   :  { %v1938_v38 = vadd.f32 1e-05, %v1936_v27  ;;  %v4438_v27 = vor.u32 %v4788_v21, %v4435_v22 }
 0x940   :  { %4903 = vrsqrt.f32 %v1938_v38  ;;  %vm1946_vm5 = vweird.f32 %v1938_v38  ;;  %v2119_v15 = vand.u32 %v4438_v27, %v5369_v9  ;;  %v4812_v27 = vld [vmem:[#allocation10 + $0xdc] sm:$0xf0] }
 0x941   :  { %v4514_v40 = vor.u32 %v4812_v27, %v4513_v24 }
 0x943   :  { %v1935_v37 = vpop.xlane.xlu2 %1934 }
 0x944   :  { %v1937_v43 = vmul.f32 %v1935_v37, %v5341_v53  ;;  %v4449_v37 = vld [vmem:[%s6182_s6 + $0xb0] sm:$0xf] }
 0x945   :  { %v4450_v44 = vor.u32 %v4798_v41, %v4449_v37 }
 0x946   :  { %v4904_v52 = vpop.eup %4903  ;;  %v1939_v2 = vadd.f32 1e-05, %v1937_v43 }
 0x947   :  { %v1941_v3 = vmul.f32 %v4904_v52, %v1938_v38  ;;  %vm1947_vm4 = vweird.f32 %v4904_v52  ;;  %v4457_v38 = vld [vmem:[%s6182_s6 + $0xb8] sm:$0xf]  ;;  %v2128_v48 = vand.u32 %v4450_v44, %v5369_v9 }
 0x948   :  { %4905 = vrsqrt.f32 %v1939_v2  ;;  %vm1948_vm6 = vmor %vm1946_vm5, %vm1947_vm4  ;;  %vm1956_vm8 = vweird.f32 %v1939_v2  ;;  %v4458_v43 = vor.u32 %v4799_v60, %v4457_v38 }
 0x949   :  { %v1942_v49 = vmul.f32 %v4904_v52, %v1941_v3  ;;  %v4482_v3 = vor.u32 %v4808_v59, %v4481_v54 }
 0x94a   :  { %v2134_v46 = vand.u32 %v4458_v43, %v5369_v9 }
 0x94b   :  { %v1943_v55 = vmul.f32 0.5, %v1942_v49  ;;  %v4801_v49 = vld [vmem:[#allocation10 + $0x8c] sm:$0xf] }
 0x94d   :  { %v1944_v57 = vsub.f32 1.5, %v1943_v55  ;;  %v4491_v55 = vld [vmem:[#allocation10 + $0xc8] sm:$0xf0] }
 0x94e   :  { %v4906_v12 = vpop.eup %4905 }
 0x94f   :  { %v1945_v63 = vmul.f32 %v4904_v52, %v1944_v57  ;;  %v1951_v51 = vmul.f32 %v4906_v12, %v1939_v2  ;;  %vm1957_vm7 = vweird.f32 %v4906_v12  ;;  %v4494_v57 = vor.u32 %v4801_v49, %v4491_v55 }
 0x950   :  { %vm1958_vm9 = vmor %vm1956_vm8, %vm1957_vm7 }
 0x951   :  { %v1952_v0 = vmul.f32 %v4906_v12, %v1951_v51  ;;  %v1949_v62 = vsel %vm1948_vm6, %v4904_v52, %v1945_v63  ;;  %v4809_v52 = vld [vmem:[#allocation10 + $0xc4] sm:$0xf0]  ;;  %v4811_v63 = vld [vmem:[#allocation10 + $0xd4] sm:$0xf0] }
 0x952   :  { %v1960_v6 = vmul.f32 %v1949_v62, %v5658_v10  ;;  %v4443_v10 = vld [vmem:[%s6182_s6 + $0xe8] sm:$0xf0]  ;;  %v4490_v2 = vor.u32 %v4809_v52, %v4489_v50  ;;  %v4810_v62 = vld [vmem:[#allocation10 + $0xcc] sm:$0xf0]  ;;  %v4813_v50 = vld [vmem:[#allocation10 + $0xe4] sm:$0xf0] }
 0x953   :  { %v1953_v1 = vmul.f32 0.5, %v1952_v0  ;;  %v4446_v25 = vor.u32 %v4789_v35, %v4443_v10  ;;  %v4497_v0 = vld [vmem:[#allocation10 + $0x90] sm:$0xf]  ;;  %v1992_v10 = vperm.slane %v5812_v14, 0  ;;  %v4805_v52 = vld [vmem:[#allocation10 + $0xac] sm:$0xf]  ;;  %v4522_v49 = vor.u32 %v4813_v50, %v4521_v45 }
 0x954   :  { %v1963_v18 = vmul.f32 %v1962_v5, %v1960_v6 }
 0x955   :  { %v1954_v4 = vsub.f32 1.5, %v1953_v1  ;;  %v2125_v34 = vand.u32 %v4446_v25, %v5369_v9  ;;  %v4802_v1 = vld [vmem:[#allocation10 + $0x94] sm:$0xf] }
 0x956   :  { %v5755_v30 = vadd.f32 %v1965_v11, %v1963_v18 }
 0x957   :  { %v1955_v8 = vmul.f32 %v4906_v12, %v1954_v4  ;;  %v4498_v4 = vor.u32 %v4810_v62, %v4497_v0 }
 0x959   :  { %v1959_v16 = vsel %vm1958_vm9, %v4906_v12, %v1955_v8  ;;  %v4505_v12 = vld [vmem:[#allocation10 + $0x98] sm:$0xf]  ;;  %v4803_v8 = vld [vmem:[#allocation10 + $0x9c] sm:$0xf] }
 0x95a   :  { %v1961_v19 = vmul.f32 %v1959_v16, %v5664_v17  ;;  %v4506_v51 = vor.u32 %v4811_v63, %v4505_v12 }
 0x95c   :  { %v1964_v23 = vmul.f32 %v1962_v5, %v1961_v19  ;;  %v4499_v5 = vld [vmem:[#allocation10 + $0xd0] sm:$0xf0] }
 0x95d   :  { %v4502_v6 = vor.u32 %v4802_v1, %v4499_v5  ;;  %v4529_v5 = vld [vmem:[#allocation10 + $0xb0] sm:$0xf] }
 0x95e   :  { %v5757_v17 = vadd.f32 %v1965_v11, %v1964_v23  ;;  %v4507_v11 = vld [vmem:[#allocation10 + $0xd8] sm:$0xf0] }
 0x95f   :  { %v4510_v28 = vor.u32 %v4803_v8, %v4507_v11  ;;  %v4814_v11 = vld [vmem:[#allocation10 + $0xec] sm:$0xf0] }
 0x960   :  { %v1968_v32 = vpack.c.bf16 %v5757_v17, %v5755_v30 }
 0x962   :  { %4463 = vmatmul.msk.bf16.vlgmr.msra.gmra.mxu0 %vm159_vm1, %v1968_v32  ;;  %4464 = vmatmul.msk.bf16.vlgmr.msrb.gmra.mxu1 %vm159_vm1, %v1968_v32 }
 0x963   :  { %4465 = vmatmul.msk.bf16.vlgmr.msra.gmra.mxu2 %vm159_vm1, %v1968_v32  ;;  %4466 = vmatmul.msk.bf16.vlgmr.msra.gmra.mxu3 %vm159_vm1, %v1968_v32 }
 0x964   :  { %2286 = vmatpush.bf16.msra.mxu2 %v2122_v33  ;;  %2300 = vmatpush.bf16.msra.mxu3 %v2125_v34  ;;  %v4515_v33 = vld [vmem:[#allocation10 + $0xe0] sm:$0xf0]  ;;  %v1994_v34 = vperm.slane %v5812_v14, 2 }
 0x965   :  { %2258 = vmatpush.bf16.msra.mxu0 %v2116_v36  ;;  %2272 = vmatpush.bf16.msrb.mxu1 %v2119_v15  ;;  %v1995_v36 = vperm.slane %v5812_v14, 3 }
 0x972   :  { %4467 = vmatmul.msk.bf16.vlgmr.msrb.gmra.mxu0 %vm159_vm1, %v1968_v32  ;;  %4468 = vmatmul.msk.bf16.vlgmr.msra.gmra.mxu1 %vm159_vm1, %v1968_v32 }
 0x973   :  { %4469 = vmatmul.msk.bf16.vlgmr.msrb.gmra.mxu2 %vm159_vm1, %v1968_v32  ;;  %4470 = vmatmul.msk.bf16.vlgmr.msrb.gmra.mxu3 %vm159_vm1, %v1968_v32 }
 0x974   :  { %2342 = vmatpush.bf16.msrb.mxu2 %v2134_v46  ;;  %2356 = vmatpush.bf16.msrb.mxu3 %v2137_v47 }
 0x975   :  { %2314 = vmatpush.bf16.msrb.mxu0 %v2128_v48  ;;  %2328 = vmatpush.bf16.msra.mxu1 %v2131_v13 }
 0x982   :  { %4471 = vmatmul.msk.bf16.vlgmr.msra.gmra.mxu0 %vm159_vm1, %v1968_v32  ;;  %4472 = vmatmul.msk.bf16.vlgmr.msrb.gmra.mxu1 %vm159_vm1, %v1968_v32 }
 0x983   :  { %4473 = vmatmul.msk.bf16.vlgmr.msra.gmra.mxu2 %vm159_vm1, %v1968_v32  ;;  %4474 = vmatmul.msk.bf16.vlgmr.msra.gmra.mxu3 %vm159_vm1, %v1968_v32 }
 0x984   :  { %2544 = vmatpush.bf16.xpose.msra.mxu2 %v4490_v2  ;;  %2516 = vmatpush.bf16.xpose.msra.mxu0 %v4482_v3  ;;  %v4523_v2 = vld [vmem:[#allocation10 + $0xe8] sm:$0xf0] }
 0x985   :  { %2530 = vmatpush.bf16.xpose.msrb.mxu1 %v4486_v61  ;;  %2558 = vmatpush.bf16.xpose.msra.mxu3 %v4494_v57  ;;  %v1997_v61 = vperm.slane %v5812_v14, 5  ;;  %v4526_v55 = vor.u32 %v4805_v52, %v4523_v2 }
 0x992   :  { %4475 = vmatmul.msk.bf16.vlgmr.msrb.gmra.mxu0 %vm159_vm1, %v1968_v32  ;;  %4476 = vmatmul.msk.bf16.vlgmr.msra.gmra.mxu1 %vm159_vm1, %v1968_v32 }
 0x993   :  { %4477 = vmatmul.msk.bf16.vlgmr.msrb.gmra.mxu2 %vm159_vm1, %v1968_v32  ;;  %4478 = vmatmul.msk.bf16.vlgmr.msrb.gmra.mxu3 %vm159_vm1, %v1968_v32  ;;  %v4804_v32 = vld [vmem:[#allocation10 + $0xa4] sm:$0xf] }
 0x994   :  { %2600 = vmatpush.bf16.xpose.msrb.mxu2 %v4506_v51  ;;  %2572 = vmatpush.bf16.xpose.msrb.mxu0 %v4498_v4  ;;  %v4518_v37 = vor.u32 %v4804_v32, %v4515_v33  ;;  %v5825_v33 = vld [vmem:[%s6183_s7 + $0x21] ss:$4 sm:$0xff] }
 0x995   :  { %2586 = vmatpush.bf16.xpose.msra.mxu1 %v4502_v6  ;;  %2614 = vmatpush.bf16.xpose.msrb.mxu3 %v4510_v28  ;;  %v4806_v28 = vld [vmem:[#allocation10 + $0xb4] sm:$0xf] }
 0x9df   :  { %v2148_v16 = vpop.f32.mrf.mxu0  ;;  %v2162_v35 = vpop.f32.mrf.mxu1 }
 0x9e0   :  { %v2149_v18 = vadd.f32 %v2148_v16, %v1992_v10  ;;  %v2163_v19 = vadd.f32 %v2162_v35, %v1993_v7  ;;  %v4531_v16 = vld [vmem:[#allocation10 + $0xf0] sm:$0xf0]  ;;  %v1998_v35 = vperm.slane %v5812_v14, 6 }
 0x9e2   :  { %v2363_v15 = vmax.f32 %v2149_v18, 0.0  ;;  %v2364_v38 = vmax.f32 %v2163_v19, 0.0 }
 0x9e6   :  { %v2176_v20 = vpop.f32.mrf.mxu2  ;;  %v2190_v21 = vpop.f32.mrf.mxu3 }
 0x9e7   :  { %v2150_v22 = vpop.f32.mrf.mxu0  ;;  %v2164_v23 = vpop.f32.mrf.mxu1  ;;  %v2177_v31 = vadd.f32 %v2176_v20, %v1994_v34  ;;  %v2191_v43 = vadd.f32 %v2190_v21, %v1995_v36  ;;  %v4530_v21 = vor.u32 %v4814_v11, %v4529_v5 }
 0x9e8   :  { %v2151_v25 = vadd.f32 %v2150_v22, %v1992_v10  ;;  %v2165_v26 = vadd.f32 %v2164_v23, %v1993_v7  ;;  %v1999_v10 = vperm.slane %v5812_v14, 7  ;;  %v4534_v22 = vor.u32 %v4806_v28, %v4531_v16  ;;  %v4537_v14 = vld [vmem:[#allocation10 + $0xb8] sm:$0xf] }
 0x9e9   :  { %v2365_v54 = vmax.f32 %v2177_v31, 0.0  ;;  %v2366_v59 = vmax.f32 %v2191_v43, 0.0  ;;  %v2000_v43 = vperm.slane %v5825_v33, 0 }
 0x9ea   :  { %v2379_v60 = vmax.f32 %v2151_v25, 0.0  ;;  %v2380_v29 = vmax.f32 %v2165_v26, 0.0 }
 0x9ec   :  { %v2395_v41 = vpack.c.bf16 %v2379_v60, %v2363_v15  ;;  %v2396_v42 = vpack.c.bf16 %v2380_v29, %v2364_v38  ;;  %v4815_v60 = vld [vmem:[#allocation10 + $0xf4] sm:$0xf0]  ;;  %v4807_v29 = vld [vmem:[#allocation10 + $0xbc] sm:$0xf] }
 0x9ee   :  { %v2178_v39 = vpop.f32.mrf.mxu2  ;;  %v2192_v44 = vpop.f32.mrf.mxu3  ;;  %2517 = vmatmul.bf16.vlgmr.msra.gmra.mxu0 %v2395_v41  ;;  %2531 = vmatmul.bf16.vlgmr.msrb.gmra.mxu1 %v2396_v42 }
 0x9ef   :  { %v2179_v46 = vadd.f32 %v2178_v39, %v1994_v34  ;;  %v2193_v47 = vadd.f32 %v2192_v44, %v1995_v36  ;;  %v2204_v48 = vpop.f32.mrf.mxu0  ;;  %v2218_v13 = vpop.f32.mrf.mxu1  ;;  %2628 = vmatpush.bf16.xpose.msra.mxu0 %v4514_v40  ;;  %2642 = vmatpush.bf16.xpose.msrb.mxu1 %v4518_v37  ;;  %v4539_v40 = vld [vmem:[#allocation10 + $0xf8] sm:$0xf0]  ;;  %v2001_v39 = vperm.slane %v5825_v33, 1  ;;  %v4538_v44 = vor.u32 %v4815_v60, %v4537_v14  ;;  %v5837_v14 = vld [vmem:[#allocation7] sm:$0xff] }
 0x9f0   :  { %v2205_v63 = vadd.f32 %v2204_v48, %v1996_v58  ;;  %v2219_v51 = vadd.f32 %v2218_v13, %v1997_v61  ;;  %v4542_v45 = vor.u32 %v4807_v29, %v4539_v40 }
 0x9f1   :  { %v2381_v3 = vmax.f32 %v2179_v46, 0.0  ;;  %v2382_v56 = vmax.f32 %v2193_v47, 0.0 }
 0x9f2   :  { %v2367_v7 = vmax.f32 %v2205_v63, 0.0  ;;  %v2368_v18 = vmax.f32 %v2219_v51, 0.0 }
 0x9f3   :  { %v2397_v57 = vpack.c.bf16 %v2381_v3, %v2365_v54  ;;  %v2398_v12 = vpack.c.bf16 %v2382_v56, %v2366_v59  ;;  %v2002_v56 = vperm.slane %v5825_v33, 2 }
 0x9f5   :  { %2545 = vmatmul.bf16.vlgmr.msra.gmra.mxu2 %v2397_v57  ;;  %2559 = vmatmul.bf16.vlgmr.msra.gmra.mxu3 %v2398_v12 }
 0x9f6   :  { %v2232_v0 = vpop.f32.mrf.mxu2  ;;  %v2246_v62 = vpop.f32.mrf.mxu3  ;;  %2656 = vmatpush.bf16.xpose.msra.mxu2 %v4522_v49  ;;  %2670 = vmatpush.bf16.xpose.msra.mxu3 %v4526_v55 }
 0x9f7   :  { %v2206_v1 = vpop.f32.mrf.mxu0  ;;  %v2220_v4 = vpop.f32.mrf.mxu1  ;;  %v2233_v25 = vadd.f32 %v2232_v0, %v1998_v35  ;;  %v2247_v26 = vadd.f32 %v2246_v62, %v1999_v10 }
 0x9f8   :  { %v2207_v6 = vadd.f32 %v2206_v1, %v1996_v58  ;;  %v2221_v8 = vadd.f32 %v2220_v4, %v1997_v61  ;;  %v2003_v58 = vperm.slane %v5825_v33, 3 }
 0x9f9   :  { %v2369_v37 = vmax.f32 %v2233_v25, 0.0  ;;  %v2370_v41 = vmax.f32 %v2247_v26, 0.0 }
 0x9fa   :  { %v2383_v19 = vmax.f32 %v2207_v6, 0.0  ;;  %v2384_v20 = vmax.f32 %v2221_v8, 0.0 }
 0x9fc   :  { %v2399_v23 = vpack.c.bf16 %v2383_v19, %v2367_v7  ;;  %v2400_v24 = vpack.c.bf16 %v2384_v20, %v2368_v18  ;;  %v2005_v7 = vperm.slane %v5825_v33, 5 }
 0x9fe   :  { %v2234_v27 = vpop.f32.mrf.mxu2  ;;  %v2248_v32 = vpop.f32.mrf.mxu3  ;;  %2573 = vmatmul.bf16.vlgmr.msrb.gmra.mxu0 %v2399_v23  ;;  %2587 = vmatmul.bf16.vlgmr.msra.gmra.mxu1 %v2400_v24  ;;  %v5833_v24 = vld [vmem:[#allocation7 + $0x10] sm:$0x7f] }
 0x9ff   :  { %v2235_v34 = vadd.f32 %v2234_v27, %v1998_v35  ;;  %v2249_v36 = vadd.f32 %v2248_v32, %v1999_v10  ;;  %v2260_v15 = vpop.f32.mrf.mxu0  ;;  %v2274_v38 = vpop.f32.mrf.mxu1  ;;  %2684 = vmatpush.bf16.xpose.msrb.mxu0 %v4530_v21  ;;  %2698 = vmatpush.bf16.xpose.msra.mxu1 %v4534_v22  ;;  %v2004_v10 = vperm.slane %v5825_v33, 4 }
 0xa00   :  { %v2261_v48 = vadd.f32 %v2260_v15, %v2000_v43  ;;  %v2275_v13 = vadd.f32 %v2274_v38, %v2001_v39 }
 0xa01   :  { %v2385_v42 = vmax.f32 %v2235_v34, 0.0  ;;  %v2386_v31 = vmax.f32 %v2249_v36, 0.0  ;;  %v2006_v34 = vperm.slane %v5825_v33, 6  ;;  %v2007_v36 = vperm.slane %v5825_v33, 7 }
 0xa02   :  { %v2371_v61 = vmax.f32 %v2261_v48, 0.0  ;;  %v2372_v49 = vmax.f32 %v2275_v13, 0.0 }
 0xa03   :  { %v2401_v46 = vpack.c.bf16 %v2385_v42, %v2369_v37  ;;  %v2402_v47 = vpack.c.bf16 %v2386_v31, %v2370_v41 }
 0xa05   :  { %2601 = vmatmul.bf16.vlgmr.msrb.gmra.mxu2 %v2401_v46  ;;  %2615 = vmatmul.bf16.vlgmr.msrb.gmra.mxu3 %v2402_v47 }
 0xa06   :  { %v2288_v50 = vpop.f32.mrf.mxu2  ;;  %v2302_v52 = vpop.f32.mrf.mxu3  ;;  %2712 = vmatpush.bf16.xpose.msrb.mxu2 %v4538_v44  ;;  %2726 = vmatpush.bf16.xpose.msrb.mxu3 %v4542_v45 }
 0xa07   :  { %v2262_v2 = vpop.f32.mrf.mxu0  ;;  %v2276_v54 = vpop.f32.mrf.mxu1  ;;  %v2289_v51 = vadd.f32 %v2288_v50, %v2002_v56  ;;  %v2303_v0 = vadd.f32 %v2302_v52, %v2003_v58 }
 0xa08   :  { %v2263_v59 = vadd.f32 %v2262_v2, %v2000_v43  ;;  %v2277_v3 = vadd.f32 %v2276_v54, %v2001_v39 }
 0xa09   :  { %v2373_v11 = vmax.f32 %v2289_v51, 0.0  ;;  %v2374_v28 = vmax.f32 %v2303_v0, 0.0 }
 0xa0a   :  { %v2387_v55 = vmax.f32 %v2263_v59, 0.0  ;;  %v2388_v57 = vmax.f32 %v2277_v3, 0.0  ;;  %v4866_v59 = vld [vmem:[%s6181_s5 + $0x18] ss:$0 sm:$0xff] }
 0xa0c   :  { %v2403_v12 = vpack.c.bf16 %v2387_v55, %v2371_v61  ;;  %v2404_v63 = vpack.c.bf16 %v2388_v57, %v2372_v49 }
 0xa0e   :  { %v2290_v62 = vpop.f32.mrf.mxu2  ;;  %v2304_v1 = vpop.f32.mrf.mxu3  ;;  %2629 = vmatmul.bf16.vlgmr.msra.gmra.mxu0 %v2403_v12  ;;  %2643 = vmatmul.bf16.vlgmr.msrb.gmra.mxu1 %v2404_v63 }
 0xa0f   :  { %v2291_v4 = vadd.f32 %v2290_v62, %v2002_v56  ;;  %v2305_v5 = vadd.f32 %v2304_v1, %v2003_v58  ;;  %v2316_v6 = vpop.f32.mrf.mxu0  ;;  %v2330_v8 = vpop.f32.mrf.mxu1 }
 0xa10   :  { %v2317_v20 = vadd.f32 %v2316_v6, %v2004_v10  ;;  %v2331_v21 = vadd.f32 %v2330_v8, %v2005_v7 }
 0xa11   :  { %v2389_v16 = vmax.f32 %v2291_v4, 0.0  ;;  %v2390_v35 = vmax.f32 %v2305_v5, 0.0 }
 0xa12   :  { %v2375_v15 = vmax.f32 %v2317_v20, 0.0  ;;  %v2376_v38 = vmax.f32 %v2331_v21, 0.0 }
 0xa13   :  { %v2405_v18 = vpack.c.bf16 %v2389_v16, %v2373_v11  ;;  %v2406_v19 = vpack.c.bf16 %v2390_v35, %v2374_v28 }
 0xa15   :  { %2657 = vmatmul.bf16.vlgmr.msra.gmra.mxu2 %v2405_v18  ;;  %2671 = vmatmul.bf16.vlgmr.msra.gmra.mxu3 %v2406_v19 }
 0xa16   :  { %v2344_v22 = vpop.f32.mrf.mxu2  ;;  %v2358_v23 = vpop.f32.mrf.mxu3  ;;  %4562 = vmatpush.msk.msra.mxu3 %vm166_vm0, %v5833_v24 }
 0xa17   :  { %v2318_v25 = vpop.f32.mrf.mxu0  ;;  %v2332_v26 = vpop.f32.mrf.mxu1  ;;  %v2345_v41 = vadd.f32 %v2344_v22, %v2006_v34  ;;  %v2359_v42 = vadd.f32 %v2358_v23, %v2007_v36 }
 0xa18   :  { %v2319_v27 = vadd.f32 %v2318_v25, %v2004_v10  ;;  %v2333_v32 = vadd.f32 %v2332_v26, %v2005_v7  ;;  %2905 = vmatpush.msra.mxu3 %v5837_v14 }
 0xa19   :  { %v2377_v45 = vmax.f32 %v2345_v41, 0.0  ;;  %v2378_v46 = vmax.f32 %v2359_v42, 0.0 }
 0xa1a   :  { %v2391_v60 = vmax.f32 %v2319_v27, 0.0  ;;  %v2392_v29 = vmax.f32 %v2333_v32, 0.0 }
 0xa1c   :  { %v2407_v40 = vpack.c.bf16 %v2391_v60, %v2375_v15  ;;  %v2408_v37 = vpack.c.bf16 %v2392_v29, %v2376_v38 }
 0xa1e   :  { %v2346_v31 = vpop.f32.mrf.mxu2  ;;  %v2360_v43 = vpop.f32.mrf.mxu3  ;;  %2685 = vmatmul.bf16.vlgmr.msrb.gmra.mxu0 %v2407_v40  ;;  %2699 = vmatmul.bf16.vlgmr.msra.gmra.mxu1 %v2408_v37 }
 0xa1f   :  { %v2347_v39 = vadd.f32 %v2346_v31, %v2006_v34  ;;  %v2361_v44 = vadd.f32 %v2360_v43, %v2007_v36 }
 0xa21   :  { %v2393_v47 = vmax.f32 %v2347_v39, 0.0  ;;  %v2394_v48 = vmax.f32 %v2361_v44, 0.0 }
 0xa23   :  { %v2409_v13 = vpack.c.bf16 %v2393_v47, %v2377_v45  ;;  %v2410_v33 = vpack.c.bf16 %v2394_v48, %v2378_v46 }
 0xa25   :  { %2713 = vmatmul.bf16.vlgmr.msrb.gmra.mxu2 %v2409_v13  ;;  %2727 = vmatmul.bf16.vlgmr.msrb.gmra.mxu3 %v2410_v33 }
 0xa26   :  { %4574 = vmatpush.msk.msrb.mxu3 %vm166_vm0, %v5833_v24 }
 0xa28   :  { %3009 = vmatpush.msrb.mxu3 %v5837_v14 }
 0xa6b   :  { %v2518_v50 = vpop.f32.mrf.mxu0  ;;  %v2532_v52 = vpop.f32.mrf.mxu1 }
 0xa6c   :  { %v2519_v58 = vadd.f32 %v4866_v59, %v2518_v50 }
 0xa6e   :  { %v2533_v55 = vadd.f32 %v2532_v52, %v2519_v58 }
 0xa73   :  { %v2520_v2 = vpop.f32.mrf.mxu0  ;;  %v2534_v54 = vpop.f32.mrf.mxu1 }
 0xa74   :  { %v2521_v51 = vadd.f32 %v4866_v59, %v2520_v2 }
 0xa76   :  { %v2535_v1 = vadd.f32 %v2534_v54, %v2521_v51 }
 0xa78   :  { %v2546_v3 = vpop.f32.mrf.mxu2  ;;  %v2560_v56 = vpop.f32.mrf.mxu3 }
 0xa79   :  { %v2547_v57 = vadd.f32 %v2546_v3, %v2533_v55 }
 0xa7b   :  { %v2574_v61 = vpop.f32.mrf.mxu0  ;;  %v2588_v49 = vpop.f32.mrf.mxu1  ;;  %v2561_v0 = vadd.f32 %v2560_v56, %v2547_v57 }
 0xa7d   :  { %v2575_v5 = vadd.f32 %v2574_v61, %v2561_v0 }
 0xa7f   :  { %v2589_v28 = vadd.f32 %v2588_v49, %v2575_v5 }
 0xa80   :  { %v2548_v12 = vpop.f32.mrf.mxu2  ;;  %v2562_v63 = vpop.f32.mrf.mxu3 }
 0xa81   :  { %v2549_v6 = vadd.f32 %v2548_v12, %v2535_v1 }
 0xa83   :  { %v2576_v62 = vpop.f32.mrf.mxu0  ;;  %v2590_v4 = vpop.f32.mrf.mxu1  ;;  %v2563_v16 = vadd.f32 %v2562_v63, %v2549_v6  ;;  %v4546_v6 = vld [vmem:[%s6180_s4 + $0x98] sm:$0x7f] }
 0xa84   :  { %4556 = vmatpush.msk.msrb.mxu1 %vm166_vm0, %v4546_v6 }
 0xa85   :  { %v2577_v7 = vadd.f32 %v2576_v62, %v2563_v16  ;;  %v4547_v16 = vld [vmem:[%s6180_s4 + $0xa0] sm:$0xff] }
 0xa87   :  { %v2591_v22 = vadd.f32 %v2590_v4, %v2577_v7 }
 0xa88   :  { %v2602_v8 = vpop.f32.mrf.mxu2  ;;  %v2616_v11 = vpop.f32.mrf.mxu3 }
 0xa89   :  { %v2603_v10 = vadd.f32 %v2602_v8, %v2589_v28  ;;  %v4548_v8 = vld [vmem:[%s6180_s4 + $0xa8] sm:$0x7f]  ;;  %v4545_v28 = vld [vmem:[%s6180_s4 + $0x90] sm:$0xff] }
 0xa8a   :  { %4559 = vmatpush.msk.msra.mxu2 %vm166_vm0, %v4548_v8  ;;  %2849 = vmatpush.msrb.mxu1 %v4545_v28 }
 0xa8b   :  { %v2630_v35 = vpop.f32.mrf.mxu0  ;;  %v2644_v18 = vpop.f32.mrf.mxu1  ;;  %v2617_v21 = vadd.f32 %v2616_v11, %v2603_v10  ;;  %v4543_v11 = vld [vmem:[%s6180_s4 + $0x80] sm:$0xff]  ;;  %v4947_v10 = vld [vmem:[#allocation7 + $0x8] sm:$0xff] }
 0xa8c   :  { %2876 = vmatpush.msra.mxu2 %v4547_v16  ;;  %4568 = vmatpush.msk.msra.mxu1 %vm166_vm0, %v5833_v24 }
 0xa8d   :  { %v2631_v25 = vadd.f32 %v2630_v35, %v2617_v21  ;;  %v4946_v35 = vld [vmem:[#allocation7 + $0x18] sm:$0x7f] }
 0xa8e   :  { %4571 = vmatpush.msk.msrb.mxu2 %vm166_vm0, %v4946_v35  ;;  %2957 = vmatpush.msra.mxu1 %v5837_v14 }
 0xa8f   :  { %v2645_v34 = vadd.f32 %v2644_v18, %v2631_v25 }
 0xa90   :  { %v2604_v19 = vpop.f32.mrf.mxu2  ;;  %v2618_v20 = vpop.f32.mrf.mxu3  ;;  %2980 = vmatpush.msrb.mxu2 %v4947_v10 }
 0xa91   :  { %v2605_v26 = vadd.f32 %v2604_v19, %v2591_v22 }
 0xa93   :  { %v2632_v23 = vpop.f32.mrf.mxu0  ;;  %v2619_v36 = vadd.f32 %v2618_v20, %v2605_v26  ;;  %v2646_v15 = vpop.f32.mrf.mxu1 }
 0xa95   :  { %v2633_v60 = vadd.f32 %v2632_v23, %v2619_v36 }
 0xa97   :  { %v2647_v42 = vadd.f32 %v2646_v15, %v2633_v60 }
 0xa98   :  { %v2658_v27 = vpop.f32.mrf.mxu2  ;;  %v2672_v32 = vpop.f32.mrf.mxu3 }
 0xa99   :  { %v2659_v38 = vadd.f32 %v2658_v27, %v2645_v34 }
 0xa9b   :  { %v2686_v29 = vpop.f32.mrf.mxu0  ;;  %v2673_v40 = vadd.f32 %v2672_v32, %v2659_v38  ;;  %v2700_v39 = vpop.f32.mrf.mxu1  ;;  %v4948_v38 = vld [vmem:[%s6181_s5 + $0x10] sm:$0xff] }
 0xa9c   :  { %v2779_v60 = vperm.slane %v4948_v38, 6 }
 0xa9d   :  { %v2687_v31 = vadd.f32 %v2686_v29, %v2673_v40 }
 0xa9f   :  { %v2701_v44 = vadd.f32 %v2700_v39, %v2687_v31 }
 0xaa0   :  { %v2660_v37 = vpop.f32.mrf.mxu2  ;;  %v2674_v41 = vpop.f32.mrf.mxu3 }
 0xaa1   :  { %v2661_v43 = vadd.f32 %v2660_v37, %v2647_v42  ;;  %v2782_v37 = vperm.slane %v4948_v38, 7 }
 0xaa3   :  { %v2675_v45 = vadd.f32 %v2674_v41, %v2661_v43  ;;  %v2688_v46 = vpop.f32.mrf.mxu0  ;;  %v2702_v2 = vpop.f32.mrf.mxu1 }
 0xaa5   :  { %v2689_v33 = vadd.f32 %v2688_v46, %v2675_v45 }
 0xaa7   :  { %v2703_v54 = vadd.f32 %v2702_v2, %v2689_v33 }
 0xaa8   :  { %v2714_v47 = vpop.f32.mrf.mxu2  ;;  %v2728_v48 = vpop.f32.mrf.mxu3 }
 0xaa9   :  { %v2715_v13 = vadd.f32 %v2714_v47, %v2701_v44 }
 0xaab   :  { %v2729_v50 = vadd.f32 %v2728_v48, %v2715_v13 }
 0xaad   :  { %v2733_v52 = vadd.f32 %v2729_v50, %v5755_v30 }
 0xaaf   :  { %v2735_v59 = vsel %vm159_vm1, %v2733_v52, 0.0 }
 0xab0   :  { %v2716_v3 = vpop.f32.mrf.mxu2  ;;  %2736 = vadd.xlane.f32.xlu0 %v2735_v59  ;;  %v2730_v58 = vpop.f32.mrf.mxu3 }
 0xab1   :  { %v2717_v56 = vadd.f32 %v2716_v3, %v2703_v54 }
 0xab3   :  { %v2731_v61 = vadd.f32 %v2730_v58, %v2717_v56 }
 0xab5   :  { %v2734_v49 = vadd.f32 %v2731_v61, %v5757_v17  ;;  %v4544_v17 = vld [vmem:[%s6180_s4 + $0x88] sm:$0x7f] }
 0xab6   :  { %4553 = vmatpush.msk.msra.mxu0 %vm166_vm0, %v4544_v17 }
 0xab7   :  { %v2738_v55 = vsel %vm159_vm1, %v2734_v49, 0.0 }
 0xab8   :  { %2739 = vadd.xlane.f32.xlu1 %v2738_v55  ;;  %2822 = vmatpush.msra.mxu0 %v4543_v11  ;;  %v5936_v11 = vld [vmem:[#allocation8] sm:$0xff] }
 0xaba   :  { %4565 = vmatpush.msk.msrb.mxu0 %vm166_vm0, %v4946_v35 }
 0xabc   :  { %2928 = vmatpush.msrb.mxu0 %v4947_v10 }
 0xb23   :  { %v2737_v57 = vpop.xlane.xlu0 %2736 }
 0xb24   :  { %v2741_v12 = vmul.f32 %v2737_v57, %v5341_v53 }
 0xb26   :  { %v2743_v63 = vsub.f32 %v2733_v52, %v2741_v12 }
 0xb28   :  { %v2745_v51 = vmul.f32 %v2743_v63, %v2743_v63 }
 0xb2a   :  { %v2747_v30 = vsel %vm159_vm1, %v2745_v51, 0.0  ;;  %v5928_v51 = vld [vmem:[#allocation8 + $0x8] sm:$0xff] }
 0xb2b   :  { %v2740_v0 = vpop.xlane.xlu1 %2739  ;;  %2748 = vadd.xlane.f32.xlu2 %v2747_v30 }
 0xb2c   :  { %v2742_v62 = vmul.f32 %v2740_v0, %v5341_v53 }
 0xb2e   :  { %v2744_v1 = vsub.f32 %v2734_v49, %v2742_v62  ;;  %v5931_v62 = vld [vmem:[#allocation8 + $0x18] sm:$0xff] }
 0xb30   :  { %v2746_v4 = vmul.f32 %v2744_v1, %v2744_v1 }
 0xb32   :  { %v2750_v5 = vsel %vm159_vm1, %v2746_v4, 0.0 }
 0xb33   :  { %2751 = vadd.xlane.f32.xlu0 %v2750_v5 }
 0xb9e   :  { %v2749_v7 = vpop.xlane.xlu2 %2748 }
 0xb9f   :  { %v2753_v18 = vmul.f32 %v2749_v7, %v5341_v53 }
 0xba1   :  { %v2755_v19 = vadd.f32 1e-05, %v2753_v18 }
 0xba3   :  { %4907 = vrsqrt.f32 %v2755_v19  ;;  %vm2763_vm11 = vweird.f32 %v2755_v19 }
 0xba6   :  { %v2752_v20 = vpop.xlane.xlu0 %2751 }
 0xba7   :  { %v2754_v21 = vmul.f32 %v2752_v20, %v5341_v53 }
 0xba9   :  { %v4908_v22 = vpop.eup %4907  ;;  %v2756_v23 = vadd.f32 1e-05, %v2754_v21 }
 0xbaa   :  { %v2758_v25 = vmul.f32 %v4908_v22, %v2755_v19  ;;  %vm2764_vm10 = vweird.f32 %v4908_v22 }
 0xbab   :  { %4909 = vrsqrt.f32 %v2756_v23  ;;  %vm2765_vm12 = vmor %vm2763_vm11, %vm2764_vm10  ;;  %vm2773_vm14 = vweird.f32 %v2756_v23 }
 0xbac   :  { %v2759_v26 = vmul.f32 %v4908_v22, %v2758_v25 }
 0xbae   :  { %v2760_v27 = vmul.f32 0.5, %v2759_v26 }
 0xbb0   :  { %v2761_v32 = vsub.f32 1.5, %v2760_v27 }
 0xbb1   :  { %v4910_v34 = vpop.eup %4909 }
 0xbb2   :  { %v2762_v36 = vmul.f32 %v4908_v22, %v2761_v32  ;;  %v2768_v15 = vmul.f32 %v4910_v34, %v2756_v23  ;;  %vm2774_vm13 = vweird.f32 %v4910_v34 }
 0xbb3   :  { %vm2775_vm15 = vmor %vm2773_vm14, %vm2774_vm13 }
 0xbb4   :  { %v2766_v29 = vsel %vm2765_vm12, %v4908_v22, %v2762_v36  ;;  %v2769_v40 = vmul.f32 %v4910_v34, %v2768_v15 }
 0xbb5   :  { %v2777_v41 = vmul.f32 %v2766_v29, %v2743_v63 }
 0xbb6   :  { %v2770_v42 = vmul.f32 0.5, %v2769_v40  ;;  %v4954_v40 = vld [vmem:[#allocation5 + $0x18] sm:$0xff] }
 0xbb7   :  { %v2780_v31 = vmul.f32 %v2779_v60, %v2777_v41 }
 0xbb8   :  { %v2771_v43 = vsub.f32 1.5, %v2770_v42 }
 0xbb9   :  { %v5887_v39 = vadd.f32 %v2782_v37, %v2780_v31 }
 0xbba   :  { %v2772_v44 = vmul.f32 %v4910_v34, %v2771_v43 }
 0xbbb   :  { %4554 = vmatmul.msk.f32.vlgmr.msra.gmra.mxu0 %vm159_vm1, %v5887_v39  ;;  %4557 = vmatmul.msk.f32.vlgmr.msrb.gmra.mxu1 %vm159_vm1, %v5887_v39 }
 0xbbc   :  { %v2776_v45 = vsel %vm2775_vm15, %v4910_v34, %v2772_v44  ;;  %4560 = vmatmul.msk.f32.vlgmr.msra.gmra.mxu2 %vm159_vm1, %v5887_v39  ;;  %4577 = vmatpush.msk.msra.mxu0 %vm166_vm0, %v4946_v35 }
 0xbbd   :  { %v2778_v46 = vmul.f32 %v2776_v45, %v2744_v1  ;;  %4580 = vmatpush.xpose.msk.msra.mxu2 %vm420_vm2, %v4946_v35  ;;  %3160 = vmatpush.xpose.msrb.mxu1 %v5833_v24  ;;  %v5911_v24 = vld [vmem:[%s6181_s5 + $0x20] sm:$0xff] }
 0xbbe   :  { %3032 = vmatpush.msra.mxu0 %v4947_v10  ;;  %v2797_v13 = vperm.slane %v5911_v24, 0  ;;  %v2830_v33 = vperm.slane %v5911_v24, 1  ;;  %v2857_v61 = vperm.slane %v5911_v24, 2  ;;  %v5939_v35 = vld [vmem:[#allocation8 + $0x10] sm:$0xff] }
 0xbbf   :  { %v2781_v47 = vmul.f32 %v2779_v60, %v2778_v46  ;;  %v4953_v60 = vld [vmem:[#allocation5 + $0x8] sm:$0xff] }
 0xbc1   :  { %v5898_v48 = vadd.f32 %v2782_v37, %v2781_v47  ;;  %4581 = vmatpush.xpose.msk.msra.mxu2 %vm420_vm2, %v4947_v10  ;;  %3161 = vmatpush.xpose.msrb.mxu1 %v5837_v14  ;;  %v4955_v47 = vld [vmem:[#allocation5 + $0x10] sm:$0xff] }
 0xbc3   :  { %4555 = vmatmul.msk.f32.gmra.mxu0 %vm159_vm1, %v5898_v48  ;;  %4558 = vmatmul.msk.f32.gmra.mxu1 %vm159_vm1, %v5898_v48 }
 0xbc4   :  { %4561 = vmatmul.msk.f32.gmra.mxu2 %vm159_vm1, %v5898_v48 }
 0xc38   :  { %v2824_v50 = vpop.f32.mrf.mxu0  ;;  %v2851_v14 = vpop.f32.mrf.mxu1 }
 0xc39   :  { %v2825_v52 = vadd.f32 %v2824_v50, %v2797_v13  ;;  %v2852_v2 = vadd.f32 %v2851_v14, %v2830_v33  ;;  %v4956_v50 = vld [vmem:[#allocation5] sm:$0xff] }
 0xc3b   :  { %4563 = vmatmul.msk.f32.vlgmr.msra.gmra.mxu3 %vm159_vm1, %v2825_v52  ;;  %4566 = vmatmul.msk.f32.vlgmr.msrb.gmra.mxu0 %vm159_vm1, %v2825_v52 }
 0xc3c   :  { %4569 = vmatmul.msk.f32.vlgmr.msra.gmra.mxu1 %vm159_vm1, %v2852_v2  ;;  %4572 = vmatmul.msk.f32.vlgmr.msrb.gmra.mxu2 %vm159_vm1, %v2852_v2 }
 0xc3f   :  { %v2878_v58 = vpop.f32.mrf.mxu2 }
 0xc40   :  { %v2827_v54 = vpop.f32.mrf.mxu0  ;;  %v2854_v59 = vpop.f32.mrf.mxu1  ;;  %v2879_v49 = vadd.f32 %v2878_v58, %v2857_v61 }
 0xc41   :  { %v2828_v3 = vadd.f32 %v2827_v54, %v2797_v13  ;;  %v2855_v56 = vadd.f32 %v2854_v59, %v2830_v33 }
 0xc43   :  { %4564 = vmatmul.msk.f32.gmra.mxu3 %vm159_vm1, %v2828_v3  ;;  %4567 = vmatmul.msk.f32.gmra.mxu0 %vm159_vm1, %v2828_v3 }
 0xc44   :  { %4570 = vmatmul.msk.f32.gmra.mxu1 %vm159_vm1, %v2855_v56  ;;  %4573 = vmatmul.msk.f32.gmra.mxu2 %vm159_vm1, %v2855_v56 }
 0xc47   :  { %v2881_v55 = vpop.f32.mrf.mxu2 }
 0xc48   :  { %v2882_v57 = vadd.f32 %v2881_v55, %v2857_v61 }
 0xc4b   :  { %4575 = vmatmul.msk.f32.vlgmr.msrb.gmra.mxu3 %vm159_vm1, %v2879_v49  ;;  %4578 = vmatmul.msk.f32.vlgmr.msra.gmra.mxu0 %vm159_vm1, %v2879_v49 }
 0xc53   :  { %4576 = vmatmul.msk.f32.gmra.mxu3 %vm159_vm1, %v2882_v57  ;;  %4579 = vmatmul.msk.f32.gmra.mxu0 %vm159_vm1, %v2882_v57 }
 0xcb8   :  { %v2930_v12 = vpop.f32.mrf.mxu0 }
 0xcb9   :  { %v3041_v30 = vmul.f32 %v5928_v51, %v2930_v12  ;;  %v2959_v21 = vpop.f32.mrf.mxu1 }
 0xcbb   :  { %v3051_v4 = vsel %vm420_vm2, %v3041_v30, 0.0 }
 0xcbe   :  { %v2907_v63 = vpop.f32.mrf.mxu3 }
 0xcbf   :  { %v3040_v28 = vmul.f32 %v5936_v11, %v2907_v63  ;;  %v2982_v16 = vpop.f32.mrf.mxu2 }
 0xcc0   :  { %v2933_v0 = vpop.f32.mrf.mxu0 }
 0xcc1   :  { %v3043_v1 = vmul.f32 %v5931_v62, %v2933_v0  ;;  %v2962_v42 = vpop.f32.mrf.mxu1 }
 0xcc3   :  { %v3052_v5 = vsel %vm420_vm2, %v3043_v1, 0.0 }
 0xcc4   :  { %v3053_v17 = vadd.f32 %v3052_v5, %v3051_v4 }
 0xcc6   :  { %v3054_v6 = vrot.slane %v3053_v17, 4  ;;  %v2910_v8 = vpop.f32.mrf.mxu3 }
 0xcc7   :  { %v3042_v10 = vmul.f32 %v5939_v35, %v2910_v8  ;;  %v2985_v34 = vpop.f32.mrf.mxu2 }
 0xcc8   :  { %v3055_v7 = vadd.f32 %v3054_v6, %v3053_v17  ;;  %v3034_v12 = vpop.f32.mrf.mxu0 }
 0xcc9   :  { %v3044_v18 = vadd.f32 %v3042_v10, %v3040_v28 }
 0xcca   :  { %v3056_v19 = vrot.slane %v3055_v7, 2 }
 0xccb   :  { %v3045_v20 = vrot.slane %v3044_v18, 4 }
 0xccc   :  { %v3057_v22 = vadd.f32 %v3056_v19, %v3055_v7 }
 0xccd   :  { %v3046_v23 = vadd.f32 %v3045_v20, %v3044_v18 }
 0xcce   :  { %v3058_v25 = vrot.slane %v3057_v22, 1  ;;  %v3011_v6 = vpop.f32.mrf.mxu3 }
 0xccf   :  { %v3047_v26 = vrot.slane %v3046_v23, 2 }
 0xcd0   :  { %v3059_v27 = vadd.f32 %v3058_v25, %v3057_v22  ;;  %v3037_v10 = vpop.f32.mrf.mxu0 }
 0xcd1   :  { %v3048_v32 = vadd.f32 %v3047_v26, %v3046_v23 }
 0xcd2   :  { %v3061_v36 = vmul.f32 %v3059_v27, %v2982_v16  ;;  %v3063_v15 = vmul.f32 %v3059_v27, %v2985_v34 }
 0xcd3   :  { %v3049_v38 = vrot.slane %v3048_v32, 1 }
 0xcd4   :  { %v3065_v29 = vadd.f32 %v4953_v60, %v3061_v36  ;;  %v3067_v37 = vadd.f32 %v4954_v40, %v3063_v15 }
 0xcd5   :  { %v3050_v41 = vadd.f32 %v3049_v38, %v3048_v32 }
 0xcd6   :  { %v3075_v31 = vsel %vm420_vm2, %v3065_v29, -inf  ;;  %v3076_v43 = vsel %vm420_vm2, %v3067_v37, -inf  ;;  %v3014_v15 = vpop.f32.mrf.mxu3 }
 0xcd7   :  { %v3060_v44 = vmul.f32 %v3050_v41, %v2959_v21  ;;  %v3062_v45 = vmul.f32 %v3050_v41, %v2962_v42  ;;  %v3077_v46 = vmax.f32 %v3075_v31, %v3076_v43  ;;  %v4549_v41 = vld [vmem:[%s6180_s4 + $0xb0] sm:$0xff] }
 0xcd9   :  { %v3066_v13 = vadd.f32 %v4955_v47, %v3062_v45  ;;  %v3078_v33 = vrot.slane %v3077_v46, 4  ;;  %v3064_v14 = vadd.f32 %v4956_v50, %v3060_v44 }
 0xcdb   :  { %v3079_v52 = vmax.f32 %v3077_v46, %v3078_v33  ;;  %v3068_v2 = vmax.f32 %v3064_v14, %v3066_v13 }
 0xcdd   :  { %v3080_v54 = vrot.slane %v3079_v52, 2  ;;  %v3069_v59 = vrot.slane %v3068_v2, 4 }
 0xcdf   :  { %v3081_v3 = vmax.f32 %v3079_v52, %v3080_v54  ;;  %v3070_v56 = vmax.f32 %v3068_v2, %v3069_v59 }
 0xce1   :  { %v3082_v58 = vrot.slane %v3081_v3, 1  ;;  %v3071_v61 = vrot.slane %v3070_v56, 2 }
 0xce3   :  { %v3083_v49 = vmax.f32 %v3081_v3, %v3082_v58  ;;  %v3072_v55 = vmax.f32 %v3070_v56, %v3071_v61 }
 0xce5   :  { %v3087_v57 = vsub.f32 %v3067_v37, %v3083_v49  ;;  %v3085_v63 = vsub.f32 %v3065_v29, %v3083_v49  ;;  %v3073_v30 = vrot.slane %v3072_v55, 1  ;;  %v4550_v37 = vld [vmem:[%s6180_s4 + $0xb8] sm:$0x7f]  ;;  %s4140_s4 = sshll.u32 %s5150_s21, 4  ;;  %s4141_s4 = int_to_ptr.vmem [resolvable:$true] %s4140_s4 }
 0xce6   :  { %4584 = vmatpush.msk.msra.mxu3 %vm166_vm0, %v4550_v37 }
 0xce7   :  { %v3094_v0 = vmul.f32 1.442695, %v3087_v57  ;;  %v3090_v1 = vmul.f32 1.442695, %v3085_v63  ;;  %v3074_v4 = vmax.f32 %v3072_v55, %v3073_v30 }
 0xce8   :  { %3217 = vmatpush.msra.mxu3 %v4549_v41  ;;  %v4617_v41 = vld [vmem:[%s6182_s6 + $0x148] sm:$0xf0] }
 0xce9   :  { %4911 = vpow2.f32 %v3094_v0  ;;  %v3084_v5 = vsub.f32 %v3064_v14, %v3074_v4  ;;  %v3086_v17 = vsub.f32 %v3066_v13, %v3074_v4 }
 0xcea   :  { %4913 = vpow2.f32 %v3090_v1 }
 0xceb   :  { %v3088_v8 = vmul.f32 1.442695, %v3084_v5  ;;  %v3092_v28 = vmul.f32 1.442695, %v3086_v17 }
 0xced   :  { %4915 = vpow2.f32 %v3088_v8 }
 0xcee   :  { %4917 = vpow2.f32 %v3092_v28 }
 0xcef   :  { %v4912_v16 = vpop.eup %4911 }
 0xcf0   :  { %v4914_v7 = vpop.eup %4913  ;;  %v3104_v18 = vsel %vm420_vm2, %v4912_v16, 0.0  ;;  %v3115_v19 = vmul.f32 %v4912_v16, %v3037_v10 }
 0xcf1   :  { %v3103_v20 = vsel %vm420_vm2, %v4914_v7, 0.0  ;;  %v3113_v21 = vmul.f32 %v4914_v7, %v3034_v12 }
 0xcf2   :  { %v3105_v22 = vadd.f32 %v3104_v18, %v3103_v20  ;;  %v3124_v23 = vsel %vm420_vm2, %v3115_v19, 0.0 }
 0xcf3   :  { %v4916_v25 = vpop.eup %4915  ;;  %v3123_v26 = vsel %vm420_vm2, %v3113_v21, 0.0 }
 0xcf4   :  { %v4918_v27 = vpop.eup %4917  ;;  %v3106_v32 = vrot.slane %v3105_v22, 4  ;;  %v3112_v34 = vmul.f32 %v4916_v25, %v3011_v6  ;;  %v3125_v36 = vadd.f32 %v3124_v23, %v3123_v26 }
 0xcf5   :  { %v3096_v38 = vadd.f32 %v4918_v27, %v4916_v25  ;;  %v3114_v60 = vmul.f32 %v4918_v27, %v3014_v15 }
 0xcf6   :  { %v3107_v29 = vadd.f32 %v3106_v32, %v3105_v22  ;;  %v3126_v40 = vrot.slane %v3125_v36, 4 }
 0xcf7   :  { %v3097_v42 = vrot.slane %v3096_v38, 4  ;;  %v3116_v31 = vadd.f32 %v3114_v60, %v3112_v34  ;;  %v4825_v60 = vld [vmem:[%s6182_s6 + $0x144] sm:$0xf0] }
 0xcf8   :  { %v3108_v43 = vrot.slane %v3107_v29, 2  ;;  %v3127_v44 = vadd.f32 %v3126_v40, %v3125_v36 }
 0xcf9   :  { %v3098_v45 = vadd.f32 %v3097_v42, %v3096_v38  ;;  %v3117_v46 = vrot.slane %v3116_v31, 4  ;;  %v4615_v38 = vld [vmem:[%s6182_s6 + $0x108] sm:$0xf]  ;;  %v4607_v42 = vld [vmem:[%s6182_s6 + $0x100] sm:$0xf] }
 0xcfa   :  { %v3109_v47 = vadd.f32 %v3108_v43, %v3107_v29  ;;  %v3128_v13 = vrot.slane %v3127_v44, 2  ;;  %v4817_v29 = vld [vmem:[%s6182_s6 + $0x10c] sm:$0xf]  ;;  %v4616_v37 = vor.u32 %v4825_v60, %v4615_v38  ;;  %v4828_v60 = vld [vmem:[%s6182_s6 + $0x15c] sm:$0xf0] }
 0xcfb   :  { %v3099_v33 = vrot.slane %v3098_v45, 2  ;;  %v3118_v50 = vadd.f32 %v3117_v46, %v3116_v31  ;;  %v4824_v31 = vld [vmem:[%s6182_s6 + $0x13c] sm:$0xf0]  ;;  %v4816_v46 = vld [vmem:[%s6182_s6 + $0x104] sm:$0xf] }
 0xcfc   :  { %v3110_v14 = vrot.slane %v3109_v47, 1  ;;  %v3129_v52 = vadd.f32 %v3128_v13, %v3127_v44  ;;  %v4620_v44 = vor.u32 %v4817_v29, %v4617_v41  ;;  %v3407_v13 = vand.u32 %v4616_v37, %v5369_v9  ;;  %v4820_v29 = vld [vmem:[%s6182_s6 + $0x124] sm:$0xf] }
 0xcfd   :  { %v3100_v2 = vadd.f32 %v3099_v33, %v3098_v45  ;;  %v3119_v54 = vrot.slane %v3118_v50, 2  ;;  %v4608_v45 = vor.u32 %v4824_v31, %v4607_v42 }
 0xcfe   :  { %v3111_v59 = vadd.f32 %v3110_v14, %v3109_v47  ;;  %v3130_v58 = vrot.slane %v3129_v52, 1  ;;  %v4609_v47 = vld [vmem:[%s6182_s6 + $0x140] sm:$0xf0]  ;;  %v3410_v14 = vand.u32 %v4620_v44, %v5369_v9  ;;  %3483 = vmatpush.bf16.msrb.mxu2 %v3407_v13 }
 0xcff   :  { %v3101_v3 = vrot.slane %v3100_v2, 1  ;;  %v3120_v56 = vadd.f32 %v3119_v54, %v3118_v50  ;;  %v4612_v33 = vor.u32 %v4816_v46, %v4609_v47 }
 0xd00   :  { %4919 = vrcp.f32 %v3111_v59  ;;  %v3131_v55 = vadd.f32 %v3130_v58, %v3129_v52  ;;  %v3401_v52 = vand.u32 %v4608_v45, %v5369_v9  ;;  %3497 = vmatpush.bf16.msrb.mxu3 %v3410_v14  ;;  %v4631_v59 = vld [vmem:[%s6182_s6 + $0x118] sm:$0xf] }
 0xd01   :  { %v3102_v61 = vadd.f32 %v3101_v3, %v3100_v2  ;;  %v3121_v49 = vrot.slane %v3120_v56, 1  ;;  %v3404_v2 = vand.u32 %v4612_v33, %v5369_v9  ;;  %v4827_v3 = vld [vmem:[%s6182_s6 + $0x154] sm:$0xf0] }
 0xd02   :  { %3455 = vmatpush.bf16.msrb.mxu0 %v3401_v52  ;;  %v4831_v14 = vld [vmem:[%s6182_s6 + $0x174] sm:$0xf0]  ;;  %v4823_v52 = vld [vmem:[%s6182_s6 + $0x13c] sm:$0xf] }
 0xd03   :  { %4921 = vrcp.f32 %v3102_v61  ;;  %v3122_v63 = vadd.f32 %v3121_v49, %v3120_v56  ;;  %3469 = vmatpush.bf16.msra.mxu1 %v3404_v2  ;;  %v4819_v56 = vld [vmem:[%s6182_s6 + $0x11c] sm:$0xf]  ;;  %v4632_v61 = vor.u32 %v4827_v3, %v4631_v59  ;;  %v4830_v59 = vld [vmem:[%s6182_s6 + $0x16c] sm:$0xf0]  ;;  %v4822_v3 = vld [vmem:[%s6182_s6 + $0x134] sm:$0xf] }
 0xd04   :  { %v4633_v49 = vld [vmem:[%s6182_s6 + $0x158] sm:$0xf0] }
 0xd05   :  { %v4665_v2 = vld [vmem:[%s6182_s6 + $0x178] sm:$0xf0] }
 0xd06   :  { %v4920_v57 = vpop.eup %4919 }
 0xd07   :  { %v3135_v12 = vmul.f32 %v4920_v57, %v3131_v55  ;;  %v4623_v55 = vld [vmem:[%s6182_s6 + $0x110] sm:$0xf] }
 0xd08   :  { %v4826_v57 = vld [vmem:[%s6182_s6 + $0x14c] sm:$0xf0] }
 0xd09   :  { %v4922_v30 = vpop.eup %4921  ;;  %v3137_v0 = vmul.f32 %v5928_v51, %v3135_v12  ;;  %v3139_v5 = vmul.f32 %v5931_v62, %v3135_v12  ;;  %v4636_v12 = vor.u32 %v4819_v56, %v4633_v49  ;;  %v4657_v56 = vld [vmem:[%s6182_s6 + $0x170] sm:$0xf0] }
 0xd0a   :  { %v3134_v1 = vmul.f32 %v4922_v30, %v3122_v63  ;;  %v4624_v63 = vor.u32 %v4826_v57, %v4623_v55  ;;  %v4818_v30 = vld [vmem:[%s6182_s6 + $0x114] sm:$0xf]  ;;  %v4660_v55 = vor.u32 %v4822_v3, %v4657_v56 }
 0xd0b   :  { %4582 = vmatmul.msk.f32.vlgmr.msra.gmra.mxu2 %vm420_vm2, %v3137_v0  ;;  %v4625_v0 = vld [vmem:[%s6182_s6 + $0x150] sm:$0xf0] }
 0xd0c   :  { %v3136_v4 = vmul.f32 %v5936_v11, %v3134_v1  ;;  %v3138_v17 = vmul.f32 %v5939_v35, %v3134_v1  ;;  %v3192_v11 = vperm.slane %v5911_v24, 3 }
 0xd0e   :  { %3162 = vmatmul.f32.vlgmr.msrb.gmra.mxu1 %v3136_v4 }
 0xd13   :  { %4583 = vmatmul.msk.f32.gmra.mxu2 %vm420_vm2, %v3139_v5  ;;  %v3419_v5 = vand.u32 %v4632_v61, %v5369_v9  ;;  %v4668_v61 = vor.u32 %v4823_v52, %v4665_v2 }
 0xd15   :  { %3539 = vmatpush.bf16.msra.mxu2 %v3419_v5  ;;  %v4840_v5 = vld [vmem:[#allocation10 + $0x13c] sm:$0xf0] }
 0xd16   :  { %3165 = vmatmul.f32.gmra.mxu1 %v3138_v17  ;;  %v4628_v17 = vor.u32 %v4818_v30, %v4625_v0  ;;  %v3440_v30 = vand.u32 %v4660_v55, %v5369_v9  ;;  %v4841_v0 = vld [vmem:[#allocation10 + $0x144] sm:$0xf0] }
 0xd8b   :  { %v3163_v6 = vpop.f32.mrf.mxu1 }
 0xd8e   :  { %v3186_v8 = vpop.f32.mrf.mxu2 }
 0xd8f   :  { %v3187_v28 = vadd.f32 %v3186_v8, %v3163_v6  ;;  %v3422_v8 = vand.u32 %v4636_v12, %v5369_v9  ;;  %v3446_v12 = vand.u32 %v4668_v61, %v5369_v9 }
 0xd91   :  { %4585 = vmatmul.msk.f32.vlgmr.msra.gmra.mxu3 %vm159_vm1, %v3187_v28  ;;  %v3413_v28 = vand.u32 %v4624_v63, %v5369_v9 }
 0xd92   :  { %3553 = vmatpush.bf16.msra.mxu3 %v3422_v8  ;;  %v4689_v8 = vld [vmem:[#allocation10 + $0x140] sm:$0xf0] }
 0xd93   :  { %v3166_v16 = vpop.f32.mrf.mxu1  ;;  %3511 = vmatpush.bf16.msra.mxu0 %v3413_v28 }
 0xd96   :  { %v3189_v51 = vpop.f32.mrf.mxu2 }
 0xd97   :  { %v3190_v10 = vadd.f32 %v3189_v51, %v3166_v16  ;;  %v3416_v16 = vand.u32 %v4628_v17, %v5369_v9 }
 0xd99   :  { %4586 = vmatmul.msk.f32.gmra.mxu3 %vm159_vm1, %v3190_v10  ;;  %3525 = vmatpush.bf16.msrb.mxu1 %v3416_v16  ;;  %v4833_v16 = vld [vmem:[#allocation10 + $0x10c] sm:$0xf] }
 0xe14   :  { %v3219_v7 = vpop.f32.mrf.mxu3 }
 0xe15   :  { %v3220_v18 = vadd.f32 %v3219_v7, %v3192_v11 }
 0xe17   :  { %v3225_v62 = vadd.f32 %v3220_v18, %v5887_v39 }
 0xe19   :  { %v3227_v19 = vsel %vm159_vm1, %v3225_v62, 0.0 }
 0xe1a   :  { %3228 = vadd.xlane.f32.xlu1 %v3227_v19 }
 0xe1c   :  { %v3222_v35 = vpop.f32.mrf.mxu3 }
 0xe1d   :  { %v3223_v20 = vadd.f32 %v3222_v35, %v3192_v11 }
 0xe1f   :  { %v3226_v21 = vadd.f32 %v3223_v20, %v5898_v48 }
 0xe21   :  { %v3230_v22 = vsel %vm159_vm1, %v3226_v21, 0.0 }
 0xe22   :  { %3231 = vadd.xlane.f32.xlu2 %v3230_v22  ;;  %v3271_v22 = vperm.slane %v5911_v24, 4 }
 0xe8d   :  { %v3229_v23 = vpop.xlane.xlu1 %3228 }
 0xe8e   :  { %v3233_v25 = vmul.f32 %v3229_v23, %v5341_v53 }
 0xe90   :  { %v5969_v26 = vsub.f32 %v3225_v62, %v3233_v25 }
 0xe92   :  { %v3237_v27 = vmul.f32 %v5969_v26, %v5969_v26 }
 0xe94   :  { %v3239_v39 = vsel %vm159_vm1, %v3237_v27, 0.0  ;;  %v3274_v27 = vperm.slane %v5911_v24, 5  ;;  %v4639_v24 = vld [vmem:[%s6182_s6 + $0x120] sm:$0xf] }
 0xe95   :  { %3240 = vadd.xlane.f32.xlu0 %v3239_v39  ;;  %v3232_v32 = vpop.xlane.xlu2 %3231  ;;  %v4647_v39 = vld [vmem:[%s6182_s6 + $0x128] sm:$0xf]  ;;  %v4640_v31 = vor.u32 %v4828_v60, %v4639_v24 }
 0xe96   :  { %v3234_v34 = vmul.f32 %v3232_v32, %v5341_v53  ;;  %v4829_v32 = vld [vmem:[%s6182_s6 + $0x164] sm:$0xf0] }
 0xe97   :  { %v4648_v41 = vor.u32 %v4829_v32, %v4647_v39  ;;  %v3425_v13 = vand.u32 %v4640_v31, %v5369_v9  ;;  %v6123_v39 = vld [vmem:[%s6183_s7 + $0x2] ss:$4 sm:$0xff] }
 0xe98   :  { %v5975_v36 = vsub.f32 %v3226_v21, %v3234_v34  ;;  %v4844_v31 = vld [vmem:[#allocation10 + $0x15c] sm:$0xf0] }
 0xe99   :  { %v3431_v46 = vand.u32 %v4648_v41, %v5369_v9 }
 0xe9a   :  { %v3238_v48 = vmul.f32 %v5975_v36, %v5975_v36 }
 0xe9c   :  { %v3242_v15 = vsel %vm159_vm1, %v3238_v48, 0.0  ;;  %v4821_v48 = vld [vmem:[%s6182_s6 + $0x12c] sm:$0xf] }
 0xe9d   :  { %3243 = vadd.xlane.f32.xlu1 %v3242_v15 }
 0xf08   :  { %v3241_v40 = vpop.xlane.xlu0 %3240 }
 0xf09   :  { %v3245_v43 = vmul.f32 %v3241_v40, %v5341_v53  ;;  %v4641_v40 = vld [vmem:[%s6182_s6 + $0x160] sm:$0xf0] }
 0xf0b   :  { %v3247_v50 = vadd.f32 1e-05, %v3245_v43  ;;  %v4644_v43 = vor.u32 %v4820_v29, %v4641_v40 }
 0xf0d   :  { %4923 = vrsqrt.f32 %v3247_v50  ;;  %vm3255_vm3 = vweird.f32 %v3247_v50  ;;  %v3428_v33 = vand.u32 %v4644_v43, %v5369_v9  ;;  %v4836_v43 = vld [vmem:[#allocation10 + $0x124] sm:$0xf] }
 0xf10   :  { %v3244_v54 = vpop.xlane.xlu1 %3243 }
 0xf11   :  { %v3246_v58 = vmul.f32 %v3244_v54, %v5341_v53  ;;  %v4655_v54 = vld [vmem:[%s6182_s6 + $0x130] sm:$0xf] }
 0xf12   :  { %v4656_v49 = vor.u32 %v4830_v59, %v4655_v54 }
 0xf13   :  { %v4924_v1 = vpop.eup %4923  ;;  %v3248_v4 = vadd.f32 1e-05, %v3246_v58 }
 0xf14   :  { %v3250_v6 = vmul.f32 %v4924_v1, %v3247_v50  ;;  %vm3256_vm2 = vweird.f32 %v4924_v1  ;;  %v4663_v50 = vld [vmem:[%s6182_s6 + $0x138] sm:$0xf]  ;;  %v3437_v63 = vand.u32 %v4656_v49, %v5369_v9 }
 0xf15   :  { %4925 = vrsqrt.f32 %v3248_v4  ;;  %vm3257_vm4 = vmor %vm3255_vm3, %vm3256_vm2  ;;  %vm3265_vm6 = vweird.f32 %v3248_v4  ;;  %v4664_v58 = vor.u32 %v4831_v14, %v4663_v50  ;;  %v4727_v49 = vld [vmem:[#allocation10 + $0x128] sm:$0xf] }
 0xf16   :  { %v3251_v51 = vmul.f32 %v4924_v1, %v3250_v6  ;;  %v4832_v6 = vld [vmem:[#allocation10 + $0x104] sm:$0xf] }
 0xf17   :  { %v3443_v57 = vand.u32 %v4664_v58, %v5369_v9  ;;  %v4692_v28 = vor.u32 %v4832_v6, %v4689_v8  ;;  %v3305_v6 = vperm.slane %v6123_v39, 4  ;;  %v3306_v8 = vperm.slane %v6123_v39, 5 }
 0xf18   :  { %v3252_v10 = vmul.f32 0.5, %v3251_v51  ;;  %v4697_v51 = vld [vmem:[#allocation10 + $0x148] sm:$0xf0] }
 0xf1a   :  { %v3253_v11 = vsub.f32 1.5, %v3252_v10  ;;  %v4700_v10 = vor.u32 %v4833_v16, %v4697_v51 }
 0xf1b   :  { %v4926_v7 = vpop.eup %4925 }
 0xf1c   :  { %v3254_v18 = vmul.f32 %v4924_v1, %v3253_v11  ;;  %v3260_v62 = vmul.f32 %v4926_v7, %v3248_v4  ;;  %vm3266_vm5 = vweird.f32 %v4926_v7  ;;  %v4687_v4 = vld [vmem:[#allocation10 + $0x100] sm:$0xf]  ;;  %v4711_v11 = vld [vmem:[#allocation10 + $0x118] sm:$0xf] }
 0xf1d   :  { %vm3267_vm7 = vmor %vm3265_vm6, %vm3266_vm5  ;;  %v4688_v17 = vor.u32 %v4840_v5, %v4687_v4 }
 0xf1e   :  { %v3261_v19 = vmul.f32 %v4926_v7, %v3260_v62  ;;  %v3258_v35 = vsel %vm3257_vm4, %v4924_v1, %v3254_v18  ;;  %v4703_v62 = vld [vmem:[#allocation10 + $0x110] sm:$0xf] }
 0xf1f   :  { %v3269_v23 = vmul.f32 %v3258_v35, %v5969_v26  ;;  %v4649_v26 = vld [vmem:[%s6182_s6 + $0x168] sm:$0xf0]  ;;  %v4834_v35 = vld [vmem:[#allocation10 + $0x114] sm:$0xf] }
 0xf20   :  { %v3262_v20 = vmul.f32 0.5, %v3261_v19  ;;  %v4652_v42 = vor.u32 %v4821_v48, %v4649_v26  ;;  %v4842_v19 = vld [vmem:[#allocation10 + $0x14c] sm:$0xf0]  ;;  %v3301_v48 = vperm.slane %v6123_v39, 0  ;;  %v3302_v26 = vperm.slane %v6123_v39, 1 }
 0xf21   :  { %v3272_v15 = vmul.f32 %v3271_v22, %v3269_v23  ;;  %v4835_v23 = vld [vmem:[#allocation10 + $0x11c] sm:$0xf] }
 0xf22   :  { %v3263_v21 = vsub.f32 1.5, %v3262_v20  ;;  %v3434_v47 = vand.u32 %v4652_v42, %v5369_v9  ;;  %v4695_v9 = vld [vmem:[#allocation10 + $0x108] sm:$0xf]  ;;  %v4704_v20 = vor.u32 %v4842_v19, %v4703_v62 }
 0xf23   :  { %v6066_v44 = vadd.f32 %v3274_v27, %v3272_v15  ;;  %v4696_v1 = vor.u32 %v4841_v0, %v4695_v9  ;;  %v4837_v9 = vld [vmem:[#allocation10 + $0x12c] sm:$0xf] }
 0xf24   :  { %v3264_v25 = vmul.f32 %v4926_v7, %v3263_v21  ;;  %v4705_v21 = vld [vmem:[#allocation10 + $0x150] sm:$0xf0]  ;;  %v4729_v0 = vld [vmem:[#allocation10 + $0x168] sm:$0xf0] }
 0xf25   :  { %v4732_v16 = vor.u32 %v4837_v9, %v4729_v0 }
 0xf26   :  { %v3268_v34 = vsel %vm3267_vm7, %v4926_v7, %v3264_v25  ;;  %v4843_v7 = vld [vmem:[#allocation10 + $0x154] sm:$0xf0]  ;;  %v4713_v25 = vld [vmem:[#allocation10 + $0x158] sm:$0xf0] }
 0xf27   :  { %v3270_v38 = vmul.f32 %v3268_v34, %v5975_v36  ;;  %v4712_v18 = vor.u32 %v4843_v7, %v4711_v11 }
 0xf29   :  { %v3273_v37 = vmul.f32 %v3271_v22, %v3270_v38  ;;  %v4708_v22 = vor.u32 %v4834_v35, %v4705_v21 }
 0xf2b   :  { %v6068_v36 = vadd.f32 %v3274_v27, %v3273_v37  ;;  %v4716_v27 = vor.u32 %v4835_v23, %v4713_v25  ;;  %v4719_v37 = vld [vmem:[#allocation10 + $0x120] sm:$0xf]  ;;  %v4846_v23 = vld [vmem:[#allocation10 + $0x16c] sm:$0xf0]  ;;  %v4838_v25 = vld [vmem:[#allocation10 + $0x134] sm:$0xf] }
 0xf2c   :  { %v4720_v52 = vor.u32 %v4844_v31, %v4719_v37 }
 0xf2d   :  { %v3277_v45 = vpack.c.bf16 %v6068_v36, %v6066_v44 }
 0xf2f   :  { %4669 = vmatmul.msk.bf16.vlgmr.msrb.gmra.mxu0 %vm159_vm1, %v3277_v45  ;;  %4670 = vmatmul.msk.bf16.vlgmr.msra.gmra.mxu1 %vm159_vm1, %v3277_v45 }
 0xf30   :  { %4671 = vmatmul.msk.bf16.vlgmr.msrb.gmra.mxu2 %vm159_vm1, %v3277_v45  ;;  %4672 = vmatmul.msk.bf16.vlgmr.msrb.gmra.mxu3 %vm159_vm1, %v3277_v45 }
 0xf31   :  { %3595 = vmatpush.bf16.msrb.mxu2 %v3431_v46  ;;  %3609 = vmatpush.bf16.msrb.mxu3 %v3434_v47  ;;  %v3303_v46 = vperm.slane %v6123_v39, 2  ;;  %v3304_v47 = vperm.slane %v6123_v39, 3 }
 0xf32   :  { %3567 = vmatpush.bf16.msrb.mxu0 %v3425_v13  ;;  %3581 = vmatpush.bf16.msra.mxu1 %v3428_v33 }
 0xf3f   :  { %4673 = vmatmul.msk.bf16.vlgmr.msra.gmra.mxu0 %vm159_vm1, %v3277_v45  ;;  %4674 = vmatmul.msk.bf16.vlgmr.msrb.gmra.mxu1 %vm159_vm1, %v3277_v45 }
 0xf40   :  { %4675 = vmatmul.msk.bf16.vlgmr.msra.gmra.mxu2 %vm159_vm1, %v3277_v45  ;;  %4676 = vmatmul.msk.bf16.vlgmr.msra.gmra.mxu3 %vm159_vm1, %v3277_v45 }
 0xf41   :  { %3651 = vmatpush.bf16.msra.mxu2 %v3443_v57  ;;  %3665 = vmatpush.bf16.msra.mxu3 %v3446_v12 }
 0xf42   :  { %3623 = vmatpush.bf16.msra.mxu0 %v3437_v63  ;;  %3637 = vmatpush.bf16.msrb.mxu1 %v3440_v30  ;;  %v4845_v30 = vld [vmem:[#allocation10 + $0x164] sm:$0xf0] }
 0xf4f   :  { %4677 = vmatmul.msk.bf16.vlgmr.msrb.gmra.mxu0 %vm159_vm1, %v3277_v45  ;;  %4678 = vmatmul.msk.bf16.vlgmr.msra.gmra.mxu1 %vm159_vm1, %v3277_v45 }
 0xf50   :  { %4679 = vmatmul.msk.bf16.vlgmr.msrb.gmra.mxu2 %vm159_vm1, %v3277_v45  ;;  %4680 = vmatmul.msk.bf16.vlgmr.msrb.gmra.mxu3 %vm159_vm1, %v3277_v45 }
 0xf51   :  { %3853 = vmatpush.bf16.xpose.msrb.mxu2 %v4696_v1  ;;  %3825 = vmatpush.bf16.xpose.msrb.mxu0 %v4688_v17 }
 0xf52   :  { %3839 = vmatpush.bf16.xpose.msra.mxu1 %v4692_v28  ;;  %3867 = vmatpush.bf16.xpose.msrb.mxu3 %v4700_v10  ;;  %v4728_v28 = vor.u32 %v4845_v30, %v4727_v49 }
 0xf5f   :  { %4681 = vmatmul.msk.bf16.vlgmr.msra.gmra.mxu0 %vm159_vm1, %v3277_v45  ;;  %4682 = vmatmul.msk.bf16.vlgmr.msrb.gmra.mxu1 %vm159_vm1, %v3277_v45 }
 0xf60   :  { %4683 = vmatmul.msk.bf16.vlgmr.msra.gmra.mxu2 %vm159_vm1, %v3277_v45  ;;  %4684 = vmatmul.msk.bf16.vlgmr.msra.gmra.mxu3 %vm159_vm1, %v3277_v45  ;;  %v4721_v45 = vld [vmem:[#allocation10 + $0x160] sm:$0xf0] }
 0xf61   :  { %3909 = vmatpush.bf16.xpose.msra.mxu2 %v4712_v18  ;;  %3881 = vmatpush.bf16.xpose.msra.mxu0 %v4704_v20  ;;  %v4724_v2 = vor.u32 %v4836_v43, %v4721_v45  ;;  %v4735_v20 = vld [vmem:[#allocation10 + $0x130] sm:$0xf] }
 0xf62   :  { %3895 = vmatpush.bf16.xpose.msrb.mxu1 %v4708_v22  ;;  %3923 = vmatpush.bf16.xpose.msra.mxu3 %v4716_v27  ;;  %v4737_v27 = vld [vmem:[#allocation10 + $0x170] sm:$0xf0] }
 0xf63   :  { %v6136_v43 = vld [vmem:[%s6183_s7 + $0x22] ss:$4 sm:$0xff] }
 0xfac   :  { %v3457_v32 = vpop.f32.mrf.mxu0  ;;  %v3471_v34 = vpop.f32.mrf.mxu1 }
 0xfad   :  { %v3458_v24 = vadd.f32 %v3457_v32, %v3301_v48  ;;  %v3472_v15 = vadd.f32 %v3471_v34, %v3302_v26  ;;  %v3307_v32 = vperm.slane %v6123_v39, 6  ;;  %v3308_v34 = vperm.slane %v6123_v39, 7  ;;  %v4743_v39 = vld [vmem:[#allocation10 + $0x138] sm:$0xf] }
 0xfaf   :  { %v3672_v13 = vmax.f32 %v3458_v24, 0.0  ;;  %v3673_v33 = vmax.f32 %v3472_v15, 0.0 }
 0xfb3   :  { %v3485_v38 = vpop.f32.mrf.mxu2  ;;  %v3499_v60 = vpop.f32.mrf.mxu3 }
 0xfb4   :  { %v3459_v29 = vpop.f32.mrf.mxu0  ;;  %v3473_v40 = vpop.f32.mrf.mxu1  ;;  %v3486_v3 = vadd.f32 %v3485_v38, %v3303_v46  ;;  %v3500_v56 = vadd.f32 %v3499_v60, %v3304_v47  ;;  %v4736_v38 = vor.u32 %v4846_v23, %v4735_v20  ;;  %v4740_v60 = vor.u32 %v4838_v25, %v4737_v27 }
 0xfb5   :  { %v3460_v41 = vadd.f32 %v3459_v29, %v3301_v48  ;;  %v3474_v42 = vadd.f32 %v3473_v40, %v3302_v26 }
 0xfb6   :  { %v3674_v1 = vmax.f32 %v3486_v3, 0.0  ;;  %v3675_v4 = vmax.f32 %v3500_v56, 0.0  ;;  %v3309_v3 = vperm.slane %v6136_v43, 0  ;;  %v3310_v56 = vperm.slane %v6136_v43, 1 }
 0xfb7   :  { %v3688_v50 = vmax.f32 %v3460_v41, 0.0  ;;  %v3689_v14 = vmax.f32 %v3474_v42, 0.0 }
 0xfb9   :  { %v3704_v54 = vpack.c.bf16 %v3688_v50, %v3672_v13  ;;  %v3705_v59 = vpack.c.bf16 %v3689_v14, %v3673_v33  ;;  %v4847_v33 = vld [vmem:[#allocation10 + $0x174] sm:$0xf0]  ;;  %v4839_v50 = vld [vmem:[#allocation10 + $0x13c] sm:$0xf] }
 0xfba   :  { %v4745_v14 = vld [vmem:[#allocation10 + $0x178] sm:$0xf0] }
 0xfbb   :  { %v3487_v58 = vpop.f32.mrf.mxu2  ;;  %v3501_v61 = vpop.f32.mrf.mxu3  ;;  %3826 = vmatmul.bf16.vlgmr.msrb.gmra.mxu0 %v3704_v54  ;;  %3840 = vmatmul.bf16.vlgmr.msra.gmra.mxu1 %v3705_v59 }
 0xfbc   :  { %v3488_v55 = vadd.f32 %v3487_v58, %v3303_v46  ;;  %v3502_v57 = vadd.f32 %v3501_v61, %v3304_v47  ;;  %v3513_v12 = vpop.f32.mrf.mxu0  ;;  %v3527_v63 = vpop.f32.mrf.mxu1  ;;  %3937 = vmatpush.bf16.xpose.msrb.mxu0 %v4720_v52  ;;  %3951 = vmatpush.bf16.xpose.msra.mxu1 %v4724_v2  ;;  %v4744_v58 = vor.u32 %v4847_v33, %v4743_v39 }
 0xfbd   :  { %v3514_v11 = vadd.f32 %v3513_v12, %v3305_v6  ;;  %v3528_v7 = vadd.f32 %v3527_v63, %v3306_v8  ;;  %v4748_v61 = vor.u32 %v4839_v50, %v4745_v14 }
 0xfbe   :  { %v3690_v5 = vmax.f32 %v3488_v55, 0.0  ;;  %v3691_v17 = vmax.f32 %v3502_v57, 0.0 }
 0xfbf   :  { %v3676_v48 = vmax.f32 %v3514_v11, 0.0  ;;  %v3677_v26 = vmax.f32 %v3528_v7, 0.0 }
 0xfc0   :  { %v3706_v51 = vpack.c.bf16 %v3690_v5, %v3674_v1  ;;  %v3707_v10 = vpack.c.bf16 %v3691_v17, %v3675_v4  ;;  %v3311_v5 = vperm.slane %v6136_v43, 2  ;;  %v3312_v17 = vperm.slane %v6136_v43, 3 }
 0xfc2   :  { %3854 = vmatmul.bf16.vlgmr.msrb.gmra.mxu2 %v3706_v51  ;;  %3868 = vmatmul.bf16.vlgmr.msrb.gmra.mxu3 %v3707_v10 }
 0xfc3   :  { %v3541_v18 = vpop.f32.mrf.mxu2  ;;  %v3555_v62 = vpop.f32.mrf.mxu3  ;;  %3965 = vmatpush.bf16.xpose.msrb.mxu2 %v4728_v28  ;;  %3979 = vmatpush.bf16.xpose.msrb.mxu3 %v4732_v16 }
 0xfc4   :  { %v3515_v19 = vpop.f32.mrf.mxu0  ;;  %v3529_v35 = vpop.f32.mrf.mxu1  ;;  %v3542_v37 = vadd.f32 %v3541_v18, %v3307_v32  ;;  %v3556_v41 = vadd.f32 %v3555_v62, %v3308_v34 }
 0xfc5   :  { %v3516_v21 = vadd.f32 %v3515_v19, %v3305_v6  ;;  %v3530_v22 = vadd.f32 %v3529_v35, %v3306_v8 }
 0xfc6   :  { %v3678_v52 = vmax.f32 %v3542_v37, 0.0  ;;  %v3679_v2 = vmax.f32 %v3556_v41, 0.0 }
 0xfc7   :  { %v3692_v24 = vmax.f32 %v3516_v21, 0.0  ;;  %v3693_v15 = vmax.f32 %v3530_v22, 0.0 }
 0xfc9   :  { %v3708_v29 = vpack.c.bf16 %v3692_v24, %v3676_v48  ;;  %v3709_v40 = vpack.c.bf16 %v3693_v15, %v3677_v26 }
 0xfcb   :  { %v3543_v42 = vpop.f32.mrf.mxu2  ;;  %v3557_v31 = vpop.f32.mrf.mxu3  ;;  %3882 = vmatmul.bf16.vlgmr.msra.gmra.mxu0 %v3708_v29  ;;  %3896 = vmatmul.bf16.vlgmr.msrb.gmra.mxu1 %v3709_v40 }
 0xfcc   :  { %v3544_v45 = vadd.f32 %v3543_v42, %v3307_v32  ;;  %v3558_v46 = vadd.f32 %v3557_v31, %v3308_v34  ;;  %v3569_v47 = vpop.f32.mrf.mxu0  ;;  %v3583_v13 = vpop.f32.mrf.mxu1  ;;  %3993 = vmatpush.bf16.xpose.msra.mxu0 %v4736_v38  ;;  %4007 = vmatpush.bf16.xpose.msrb.mxu1 %v4740_v60  ;;  %v3313_v32 = vperm.slane %v6136_v43, 4  ;;  %v3314_v34 = vperm.slane %v6136_v43, 5 }
 0xfcd   :  { %v3570_v57 = vadd.f32 %v3569_v47, %v3309_v3  ;;  %v3584_v12 = vadd.f32 %v3583_v13, %v3310_v56  ;;  %v3315_v42 = vperm.slane %v6136_v43, 6  ;;  %v3316_v31 = vperm.slane %v6136_v43, 7 }
 0xfce   :  { %v3694_v54 = vmax.f32 %v3544_v45, 0.0  ;;  %v3695_v59 = vmax.f32 %v3558_v46, 0.0 }
 0xfcf   :  { %v3680_v6 = vmax.f32 %v3570_v57, 0.0  ;;  %v3681_v8 = vmax.f32 %v3584_v12, 0.0 }
 0xfd0   :  { %v3710_v49 = vpack.c.bf16 %v3694_v54, %v3678_v52  ;;  %v3711_v55 = vpack.c.bf16 %v3695_v59, %v3679_v2 }
 0xfd2   :  { %3910 = vmatmul.bf16.vlgmr.msra.gmra.mxu2 %v3710_v49  ;;  %3924 = vmatmul.bf16.vlgmr.msra.gmra.mxu3 %v3711_v55 }
 0xfd3   :  { %v3597_v63 = vpop.f32.mrf.mxu2  ;;  %v3611_v30 = vpop.f32.mrf.mxu3  ;;  %4021 = vmatpush.bf16.xpose.msra.mxu2 %v4744_v58  ;;  %4035 = vmatpush.bf16.xpose.msra.mxu3 %v4748_v61 }
 0xfd4   :  { %v3571_v9 = vpop.f32.mrf.mxu0  ;;  %v3585_v0 = vpop.f32.mrf.mxu1  ;;  %v3598_v11 = vadd.f32 %v3597_v63, %v3311_v5  ;;  %v3612_v7 = vadd.f32 %v3611_v30, %v3312_v17  ;;  %v4867_v30 = vld [vmem:[%s6181_s5 + $0x28] ss:$0 sm:$0xff] }
 0xfd5   :  { %v3572_v1 = vadd.f32 %v3571_v9, %v3309_v3  ;;  %v3586_v4 = vadd.f32 %v3585_v0, %v3310_v56 }
 0xfd6   :  { %v3682_v22 = vmax.f32 %v3598_v11, 0.0  ;;  %v3683_v23 = vmax.f32 %v3612_v7, 0.0 }
 0xfd7   :  { %v3696_v28 = vmax.f32 %v3572_v1, 0.0  ;;  %v3697_v16 = vmax.f32 %v3586_v4, 0.0 }
 0xfd9   :  { %v3712_v51 = vpack.c.bf16 %v3696_v28, %v3680_v6  ;;  %v3713_v10 = vpack.c.bf16 %v3697_v16, %v3681_v8 }
 0xfdb   :  { %v3599_v18 = vpop.f32.mrf.mxu2  ;;  %v3613_v62 = vpop.f32.mrf.mxu3  ;;  %3938 = vmatmul.bf16.vlgmr.msrb.gmra.mxu0 %v3712_v51  ;;  %3952 = vmatmul.bf16.vlgmr.msra.gmra.mxu1 %v3713_v10 }
 0xfdc   :  { %v3600_v19 = vadd.f32 %v3599_v18, %v3311_v5  ;;  %v3614_v35 = vadd.f32 %v3613_v62, %v3312_v17  ;;  %v3625_v20 = vpop.f32.mrf.mxu0  ;;  %v3639_v21 = vpop.f32.mrf.mxu1 }
 0xfdd   :  { %v3626_v24 = vadd.f32 %v3625_v20, %v3313_v32  ;;  %v3640_v15 = vadd.f32 %v3639_v21, %v3314_v34 }
 0xfde   :  { %v3698_v25 = vmax.f32 %v3600_v19, 0.0  ;;  %v3699_v27 = vmax.f32 %v3614_v35, 0.0 }
 0xfdf   :  { %v3684_v39 = vmax.f32 %v3626_v24, 0.0  ;;  %v3685_v45 = vmax.f32 %v3640_v15, 0.0 }
 0xfe0   :  { %v3714_v48 = vpack.c.bf16 %v3698_v25, %v3682_v22  ;;  %v3715_v26 = vpack.c.bf16 %v3699_v27, %v3683_v23 }
 0xfe2   :  { %3966 = vmatmul.bf16.vlgmr.msrb.gmra.mxu2 %v3714_v48  ;;  %3980 = vmatmul.bf16.vlgmr.msrb.gmra.mxu3 %v3715_v26 }
 0xfe3   :  { %v3653_v38 = vpop.f32.mrf.mxu2  ;;  %v3667_v60 = vpop.f32.mrf.mxu3 }
 0xfe4   :  { %v3627_v29 = vpop.f32.mrf.mxu0  ;;  %v3641_v40 = vpop.f32.mrf.mxu1  ;;  %v3654_v50 = vadd.f32 %v3653_v38, %v3315_v42  ;;  %v3668_v14 = vadd.f32 %v3667_v60, %v3316_v31 }
 0xfe5   :  { %v3628_v37 = vadd.f32 %v3627_v29, %v3313_v32  ;;  %v3642_v41 = vadd.f32 %v3641_v40, %v3314_v34 }
 0xfe6   :  { %v3686_v3 = vmax.f32 %v3654_v50, 0.0  ;;  %v3687_v56 = vmax.f32 %v3668_v14, 0.0 }
 0xfe7   :  { %v3700_v46 = vmax.f32 %v3628_v37, 0.0  ;;  %v3701_v47 = vmax.f32 %v3642_v41, 0.0 }
 0xfe9   :  { %v3716_v13 = vpack.c.bf16 %v3700_v46, %v3684_v39  ;;  %v3717_v33 = vpack.c.bf16 %v3701_v47, %v3685_v45 }
 0xfeb   :  { %v3655_v52 = vpop.f32.mrf.mxu2  ;;  %v3669_v2 = vpop.f32.mrf.mxu3  ;;  %3994 = vmatmul.bf16.vlgmr.msra.gmra.mxu0 %v3716_v13  ;;  %4008 = vmatmul.bf16.vlgmr.msrb.gmra.mxu1 %v3717_v33 }
 0xfec   :  { %v3656_v54 = vadd.f32 %v3655_v52, %v3315_v42  ;;  %v3670_v59 = vadd.f32 %v3669_v2, %v3316_v31 }
 0xfee   :  { %v3702_v58 = vmax.f32 %v3656_v54, 0.0  ;;  %v3703_v61 = vmax.f32 %v3670_v59, 0.0 }
 0xff0   :  { %v3718_v49 = vpack.c.bf16 %v3702_v58, %v3686_v3  ;;  %v3719_v43 = vpack.c.bf16 %v3703_v61, %v3687_v56 }
 0xff2   :  { %4022 = vmatmul.bf16.vlgmr.msra.gmra.mxu2 %v3718_v49  ;;  %4036 = vmatmul.bf16.vlgmr.msra.gmra.mxu3 %v3719_v43 }
0x1038   :  { %v3827_v55 = vpop.f32.mrf.mxu0  ;;  %v3841_v57 = vpop.f32.mrf.mxu1 }
0x1039   :  { %v3828_v1 = vadd.f32 %v4867_v30, %v3827_v55 }
0x103b   :  { %v3842_v17 = vadd.f32 %v3841_v57, %v3828_v1 }
0x1040   :  { %v3829_v12 = vpop.f32.mrf.mxu0  ;;  %v3843_v63 = vpop.f32.mrf.mxu1 }
0x1041   :  { %v3830_v16 = vadd.f32 %v4867_v30, %v3829_v12 }
0x1043   :  { %v3844_v11 = vadd.f32 %v3843_v63, %v3830_v16 }
0x1045   :  { %v3855_v9 = vpop.f32.mrf.mxu2  ;;  %v3869_v0 = vpop.f32.mrf.mxu3 }
0x1046   :  { %v3856_v6 = vadd.f32 %v3855_v9, %v3842_v17 }
0x1048   :  { %v3883_v4 = vpop.f32.mrf.mxu0  ;;  %v3897_v5 = vpop.f32.mrf.mxu1  ;;  %v3870_v51 = vadd.f32 %v3869_v0, %v3856_v6 }
0x104a   :  { %v3884_v18 = vadd.f32 %v3883_v4, %v3870_v51 }
0x104c   :  { %v3898_v20 = vadd.f32 %v3897_v5, %v3884_v18 }
0x104d   :  { %v3857_v8 = vpop.f32.mrf.mxu2  ;;  %v3871_v28 = vpop.f32.mrf.mxu3 }
0x104e   :  { %v3858_v62 = vadd.f32 %v3857_v8, %v3844_v11  ;;  %v4096_v11 = vld [vmem:[#allocation11] sm:$0xff] }
0x1050   :  { %v3885_v10 = vpop.f32.mrf.mxu0  ;;  %v3899_v7 = vpop.f32.mrf.mxu1  ;;  %v3872_v21 = vadd.f32 %v3871_v28, %v3858_v62 }
0x1052   :  { %v3886_v25 = vadd.f32 %v3885_v10, %v3872_v21 }
0x1054   :  { %v3900_v26 = vadd.f32 %v3899_v7, %v3886_v25 }
0x1055   :  { %v3911_v19 = vpop.f32.mrf.mxu2  ;;  %v3925_v35 = vpop.f32.mrf.mxu3 }
0x1056   :  { %v3912_v23 = vadd.f32 %v3911_v19, %v3898_v20 }
0x1058   :  { %v3939_v22 = vpop.f32.mrf.mxu0  ;;  %v3953_v27 = vpop.f32.mrf.mxu1  ;;  %v3926_v48 = vadd.f32 %v3925_v35, %v3912_v23 }
0x105a   :  { %v3940_v15 = vadd.f32 %v3939_v22, %v3926_v48 }
0x105c   :  { %v3954_v40 = vadd.f32 %v3953_v27, %v3940_v15 }
0x105d   :  { %v3913_v32 = vpop.f32.mrf.mxu2  ;;  %v3927_v34 = vpop.f32.mrf.mxu3 }
0x105e   :  { %v3914_v38 = vadd.f32 %v3913_v32, %v3900_v26  ;;  %v4957_v26 = vld [vmem:[%s6181_s5 + $0x20] sm:$0xff] }
0x1060   :  { %v3941_v24 = vpop.f32.mrf.mxu0  ;;  %v3928_v37 = vadd.f32 %v3927_v34, %v3914_v38  ;;  %v3955_v41 = vpop.f32.mrf.mxu1  ;;  %v4091_v38 = vperm.slane %v4957_v26, 7 }
0x1062   :  { %v3942_v31 = vadd.f32 %v3941_v24, %v3928_v37  ;;  %v4088_v24 = vperm.slane %v4957_v26, 6 }
0x1064   :  { %v3956_v13 = vadd.f32 %v3955_v41, %v3942_v31 }
0x1065   :  { %v3967_v60 = vpop.f32.mrf.mxu2  ;;  %v3981_v29 = vpop.f32.mrf.mxu3 }
0x1066   :  { %v3968_v42 = vadd.f32 %v3967_v60, %v3954_v40 }
0x1068   :  { %v3995_v39 = vpop.f32.mrf.mxu0  ;;  %v3982_v45 = vadd.f32 %v3981_v29, %v3968_v42  ;;  %v4009_v14 = vpop.f32.mrf.mxu1 }
0x106a   :  { %v3996_v33 = vadd.f32 %v3995_v39, %v3982_v45 }
0x106c   :  { %v4010_v52 = vadd.f32 %v4009_v14, %v3996_v33  ;;  %v4868_v33 = vld [vmem:[%s6186_s10] ss:$0 sm:$0xff] }
0x106d   :  { %v3969_v46 = vpop.f32.mrf.mxu2  ;;  %v3983_v47 = vpop.f32.mrf.mxu3 }
0x106e   :  { %v3970_v50 = vadd.f32 %v3969_v46, %v3956_v13 }
0x1070   :  { %v3984_v2 = vadd.f32 %v3983_v47, %v3970_v50  ;;  %v3997_v54 = vpop.f32.mrf.mxu0  ;;  %v4011_v43 = vpop.f32.mrf.mxu1 }
0x1072   :  { %v3998_v58 = vadd.f32 %v3997_v54, %v3984_v2 }
0x1074   :  { %v4012_v55 = vadd.f32 %v4011_v43, %v3998_v58 }
0x1075   :  { %v4023_v59 = vpop.f32.mrf.mxu2  ;;  %v4037_v3 = vpop.f32.mrf.mxu3 }
0x1076   :  { %v4024_v56 = vadd.f32 %v4023_v59, %v4010_v52 }
0x1078   :  { %v4038_v61 = vadd.f32 %v4037_v3, %v4024_v56 }
0x107a   :  { %v4042_v49 = vadd.f32 %v4038_v61, %v6066_v44 }
0x107c   :  { %v4044_v57 = vsel %vm159_vm1, %v4042_v49, 0.0 }
0x107d   :  { %v4025_v12 = vpop.f32.mrf.mxu2  ;;  %4045 = vadd.xlane.f32.xlu2 %v4044_v57  ;;  %v4039_v30 = vpop.f32.mrf.mxu3 }
0x107e   :  { %v4026_v63 = vadd.f32 %v4025_v12, %v4012_v55 }
0x1080   :  { %v4040_v9 = vadd.f32 %v4039_v30, %v4026_v63 }
0x1082   :  { %v4043_v0 = vadd.f32 %v4040_v9, %v6068_v36  ;;  %v4097_v36 = vld [vmem:[#allocation11 + $0x8] sm:$0x7f] }
0x1083   :  { %4749 = vmatpush.msk.msrb.mxu0 %vm166_vm0, %v4097_v36 }
0x1084   :  { %v4047_v1 = vsel %vm159_vm1, %v4043_v0, 0.0 }
0x1085   :  { %4048 = vadd.xlane.f32.xlu0 %v4047_v1  ;;  %4126 = vmatpush.msrb.mxu0 %v4096_v11 }
0x10f0   :  { %v4046_v4 = vpop.xlane.xlu2 %4045 }
0x10f1   :  { %v4050_v5 = vmul.f32 %v4046_v4, %v5341_v53 }
0x10f3   :  { %v4052_v17 = vsub.f32 %v4042_v49, %v4050_v5 }
0x10f5   :  { %v4054_v6 = vmul.f32 %v4052_v17, %v4052_v17 }
0x10f7   :  { %v4056_v44 = vsel %vm159_vm1, %v4054_v6, 0.0 }
0x10f8   :  { %v4049_v8 = vpop.xlane.xlu0 %4048  ;;  %4057 = vadd.xlane.f32.xlu1 %v4056_v44 }
0x10f9   :  { %v4051_v28 = vmul.f32 %v4049_v8, %v5341_v53 }
0x10fb   :  { %v4053_v16 = vsub.f32 %v4043_v0, %v4051_v28 }
0x10fd   :  { %v4055_v51 = vmul.f32 %v4053_v16, %v4053_v16 }
0x10ff   :  { %v4059_v10 = vsel %vm159_vm1, %v4055_v51, 0.0 }
0x1100   :  { %4060 = vadd.xlane.f32.xlu2 %v4059_v10 }
0x116b   :  { %v4058_v7 = vpop.xlane.xlu1 %4057 }
0x116c   :  { %v4062_v18 = vmul.f32 %v4058_v7, %v5341_v53 }
0x116e   :  { %v4064_v62 = vadd.f32 1e-05, %v4062_v18 }
0x1170   :  { %4927 = vrsqrt.f32 %v4064_v62  ;;  %vm4072_vm0 = vweird.f32 %v4064_v62 }
0x1173   :  { %v4061_v19 = vpop.xlane.xlu2 %4060 }
0x1174   :  { %v4063_v35 = vmul.f32 %v4061_v19, %v5341_v53 }
0x1176   :  { %v4928_v20 = vpop.eup %4927  ;;  %v4065_v21 = vadd.f32 1e-05, %v4063_v35 }
0x1177   :  { %v4067_v22 = vmul.f32 %v4928_v20, %v4064_v62  ;;  %vm4073_vm8 = vweird.f32 %v4928_v20 }
0x1178   :  { %4929 = vrsqrt.f32 %v4065_v21  ;;  %vm4074_vm9 = vmor %vm4072_vm0, %vm4073_vm8  ;;  %vm4082_vm11 = vweird.f32 %v4065_v21 }
0x1179   :  { %v4068_v23 = vmul.f32 %v4928_v20, %v4067_v22 }
0x117b   :  { %v4069_v25 = vmul.f32 0.5, %v4068_v23 }
0x117d   :  { %v4070_v27 = vsub.f32 1.5, %v4069_v25 }
0x117e   :  { %v4930_v32 = vpop.eup %4929 }
0x117f   :  { %v4071_v34 = vmul.f32 %v4928_v20, %v4070_v27  ;;  %v4077_v48 = vmul.f32 %v4930_v32, %v4065_v21  ;;  %vm4083_vm10 = vweird.f32 %v4930_v32 }
0x1180   :  { %vm4084_vm12 = vmor %vm4082_vm11, %vm4083_vm10 }
0x1181   :  { %v4075_v15 = vsel %vm4074_vm9, %v4928_v20, %v4071_v34  ;;  %v4078_v53 = vmul.f32 %v4930_v32, %v4077_v48 }
0x1182   :  { %v4086_v60 = vmul.f32 %v4075_v15, %v4052_v17 }
0x1183   :  { %v4079_v29 = vmul.f32 0.5, %v4078_v53 }
0x1184   :  { %v4089_v40 = vmul.f32 %v4088_v24, %v4086_v60 }
0x1185   :  { %v4080_v37 = vsub.f32 1.5, %v4079_v29 }
0x1186   :  { %v4092_v41 = vadd.f32 %v4091_v38, %v4089_v40 }
0x1187   :  { %v4081_v42 = vmul.f32 %v4930_v32, %v4080_v37 }
0x1188   :  { %v4094_v31 = vmax.f32 %v4092_v41, 0.0 }
0x1189   :  { %v4085_v39 = vsel %vm4084_vm12, %v4930_v32, %v4081_v42 }
0x118a   :  { %v4087_v45 = vmul.f32 %v4085_v39, %v4053_v16  ;;  %4750 = vmatmul.msk.f32.vlgmr.msrb.gmra.mxu0 %vm159_vm1, %v4094_v31 }
0x118c   :  { %v4090_v46 = vmul.f32 %v4088_v24, %v4087_v45 }
0x118e   :  { %v4093_v47 = vadd.f32 %v4091_v38, %v4090_v46 }
0x1190   :  { %v4095_v13 = vmax.f32 %v4093_v47, 0.0 }
0x1192   :  { %4751 = vmatmul.msk.f32.gmra.mxu0 %vm159_vm1, %v4095_v13 }
0x1207   :  { %v4128_v50 = vpop.f32.mrf.mxu0 }
0x1208   :  { %v4129_v14 = vadd.f32 %v4868_v33, %v4128_v50 }
0x120a   :  { %4134 = vst.msk [vmem:[#allocation13] sm:$0xff] %vm159_vm1, %v4129_v14 }
0x120f   :  { %v4131_v52 = vpop.f32.mrf.mxu0 }
0x1210   :  { %v4132_v2 = vadd.f32 %v4868_v33, %v4131_v52 }
0x1212   :  { %4135 = vst.msk [vmem:[#allocation13 + $0x8] sm:$0xff] %vm159_vm1, %v4132_v2 }
0x1213   :  { %4148 = dma.vmem_to_hbm [thread:$0]  %s4141_s4, 256, %s4143_s2, [#allocation4], %s5141_s16, %s5141_s16, %s5142_s17  }
0x1214   :  { %5134 = dma.done.wait [#allocation4], 256  }
0x1215   :  { %5135 = vsyncadd [#allocation4], 4294967040 }
0x1216   :  { %4153 = vsyncpa [#allocation3], 1 }
0x1217   :  { %4154 = vsyncpa [#allocation6], 1 }
0x1218   :  { %4155 = vsyncpa [#allocation9], 1 }
0x1219   :  { %4156 = vsyncpa [#allocation12], 1 }
0x121a   :  { %4157 = vsyncpa [#allocation4], 1 }

</bundles_post_ra>
